<compile_context>
chip_gen: v7x
topology: tpu7x:2x2x1
jax: 0.10.0
libtpu: 0.0.40
codegen_flags: <defaults>
</compile_context>

<pallas_src>
import jax
import jax.numpy as jnp
from jax import lax
from jax.experimental import pallas as pl
from jax.experimental.pallas import tpu as pltpu


def bottleneck_kernel(x_ref, w1_ref, b1_ref, w2_ref, b2_ref, w3_ref, b3_ref,
                      o_ref, pad_ref, col_ref):
    """One batch element per grid step.  Channel dims are lane-padded (x128).

    x_ref  : (1, H, W, Cin)       f32 input tile (NHWC); f32 kept for the skip path
    w1_ref : (Cin, Cw)            bf16 1x1 conv #1, BN scale folded in
    w2_ref : (3, 3*Cw, Cw)        bf16 3x3 conv; per-kh block, rows ordered (kw, cin)
    w3_ref : (Cw, Cexp)           bf16 1x1 conv #3, BN scale folded in
    b*_ref : (1, C)               f32 folded BatchNorm shifts
    o_ref  : (1, H, W, Cexp)      bf16 output tile
    pad_ref: (H+2, W+2, Cw)       bf16 scratch, zero-padded conv2 input
    col_ref: ((H+2)*W, 3*Cw)      bf16 scratch, kw-shifted im2col slab
    """
    _, H, W, Cin = x_ref.shape
    Cw = w1_ref.shape[1]
    cdt = pad_ref.dtype  # bf16 storage dtype for intermediate activations

    # --- conv1 (1x1) -> folded-BN shift -> ReLU ---
    xf32 = x_ref[0].reshape(H * W, Cin)                       # f32, reused for residual
    y1 = jnp.dot(xf32.astype(cdt), w1_ref[...],
                 preferred_element_type=jnp.float32)
    y1 = jnp.maximum(y1 + b1_ref[...], 0.0)                   # f32, (H*W, Cw)

    # --- conv2 (3x3, stride 1, pad 1) ---
    # Zero only the padding border; the interior is fully overwritten every step.
    pad_ref[:, 0:1, :] = jnp.zeros((H + 2, 1, Cw), cdt)
    pad_ref[:, W + 1:W + 2, :] = jnp.zeros((H + 2, 1, Cw), cdt)
    pad_ref[0:1, :, :] = jnp.zeros((1, W + 2, Cw), cdt)
    pad_ref[H + 1:H + 2, :, :] = jnp.zeros((1, W + 2, Cw), cdt)
    pad_ref[1:H + 1, 1:W + 1, :] = y1.reshape(H, W, Cw).astype(cdt)

    # 3-copy im2col slab: shift along kw only.  Slab row r*W + w, column block kw
    # holds pad[r, w + kw, :] for every padded row r.
    for kw in range(3):
        col_ref[:, kw * Cw:(kw + 1) * Cw] = (
            pad_ref[:, kw:kw + W, :].reshape((H + 2) * W, Cw))

    # kh handled by 3 accumulating K=3*Cw matmuls whose LHS are sublane-contiguous
    # row-offset (kh*W) views of the slab.
    y2 = jnp.dot(col_ref[0 * W:0 * W + H * W, :], w2_ref[0],
                 preferred_element_type=jnp.float32)
    y2 = y2 + jnp.dot(col_ref[1 * W:1 * W + H * W, :], w2_ref[1],
                      preferred_element_type=jnp.float32)
    y2 = y2 + jnp.dot(col_ref[2 * W:2 * W + H * W, :], w2_ref[2],
                      preferred_element_type=jnp.float32)
    y2 = jnp.maximum(y2 + b2_ref[...], 0.0)                   # f32, (H*W, Cw)

    # --- conv3 (1x1) -> folded-BN shift ---
    y3 = jnp.dot(y2.astype(cdt), w3_ref[...], preferred_element_type=jnp.float32)
    y3 = y3 + b3_ref[...]                                     # f32, (H*W, Cexp)

    # --- residual add (full-precision f32 skip path) + final ReLU; store bf16 ---
    out = jnp.maximum(xf32 + y3, 0.0)
    o_ref[0] = out.reshape(H, W, Cin).astype(o_ref.dtype)


def _round_up(x, m):
    return ((x + m - 1) // m) * m


def bottleneck_forward(x_nhwc, w1, bn1, w2, bn2, w3, bn3, eps=1e-5):
    """Bottleneck forward (inference-mode BN).  Returns bf16 NHWC output.

    x_nhwc: (B, H, W, Cin) float32
    w1: (Cin, Cw)        1x1 conv weight (in, out)
    w2: (3, 3, Cw, Cw)   3x3 conv weight (kh, kw, in, out)
    w3: (Cw, Cexp)       1x1 conv weight (in, out)
    bn*: (gamma, beta, running_mean, running_var), each shape (C,)
    """
    B, H, W, Cin = x_nhwc.shape
    Cw = w1.shape[1]
    Cexp = w3.shape[1]
    assert Cexp == Cin, "downsample=None requires in_planes == out_planes * EXPANSION"

    LANE = 128
    Cin_p = _round_up(Cin, LANE)
    Cw_p = _round_up(Cw, LANE)
    Cexp_p = Cin_p  # Cexp == Cin, padded identically so the residual add lines up

    # Fold BN scale into the conv weights (host side); keep only the shift.
    def fold(w, bn):
        g, b, m, v = bn
        s = g / jnp.sqrt(v + eps)
        return w * s, b - m * s          # scale broadcasts over the out-channel axis

    w1f, b1 = fold(w1, bn1)              # (Cin, Cw), (Cw,)
    w2f, b2 = fold(w2, bn2)              # (3, 3, Cw, Cw), (Cw,)
    w3f, b3 = fold(w3, bn3)              # (Cw, Cexp), (Cexp,)

    # Lane-pad channels with zeros (zeros flow through conv/BN-shift/ReLU/residual
    # as zeros, so the padded output channels are exactly zero and sliced off).
    w1p = jnp.zeros((Cin_p, Cw_p), jnp.float32).at[:Cin, :Cw].set(w1f)
    w1p = w1p.astype(jnp.bfloat16)
    w2p = jnp.zeros((3, 3, Cw_p, Cw_p), jnp.float32).at[:, :, :Cw, :Cw].set(w2f)
    w2p = w2p.reshape(3, 3 * Cw_p, Cw_p).astype(jnp.bfloat16)   # per-kh, rows=(kw,cin)
    w3p = jnp.zeros((Cw_p, Cexp_p), jnp.float32).at[:Cw, :Cexp].set(w3f)
    w3p = w3p.astype(jnp.bfloat16)
    b1p = jnp.zeros((1, Cw_p), jnp.float32).at[0, :Cw].set(b1)
    b2p = jnp.zeros((1, Cw_p), jnp.float32).at[0, :Cw].set(b2)
    b3p = jnp.zeros((1, Cexp_p), jnp.float32).at[0, :Cexp].set(b3)

    xp = jnp.zeros((B, H, W, Cin_p), jnp.float32).at[:, :, :, :Cin].set(x_nhwc)

    # Explicit VMEM budget from the actual per-step buffers (+2x headroom).
    bf16, f32 = 2, 4
    x_blk = H * W * Cin_p * f32
    o_blk = H * W * Cexp_p * bf16
    wts = (w1p.size + w2p.size + w3p.size) * bf16 + (b1p.size + b2p.size + b3p.size) * f32
    scratch = (H + 2) * (W + 2) * Cw_p * bf16 + (H + 2) * W * 3 * Cw_p * bf16
    temps = H * W * (2 * Cw_p + Cexp_p) * f32          # y1/y2/y3 f32 working sets
    est = 2 * (x_blk + o_blk) + 2 * wts + scratch + temps
    vmem_limit = int(min(max(2 * est, 16 << 20), 64 << 20))

    def build(single_buffer_consts):
        pmode = dict(pipeline_mode=pl.Buffered(1)) if single_buffer_consts else {}

        def const_spec(shape):
            return pl.BlockSpec(shape, lambda b, _n=len(shape): (0,) * _n, **pmode)

        return pl.pallas_call(
            bottleneck_kernel,
            out_shape=jax.ShapeDtypeStruct((B, H, W, Cexp_p), jnp.bfloat16),
            grid_spec=pltpu.PrefetchScalarGridSpec(
                num_scalar_prefetch=0,
                grid=(B,),
                in_specs=[
                    pl.BlockSpec((1, H, W, Cin_p), lambda b: (b, 0, 0, 0)),
                    const_spec(w1p.shape), const_spec(b1p.shape),
                    const_spec(w2p.shape), const_spec(b2p.shape),
                    const_spec(w3p.shape), const_spec(b3p.shape),
                ],
                out_specs=pl.BlockSpec((1, H, W, Cexp_p), lambda b: (b, 0, 0, 0)),
                scratch_shapes=[
                    pltpu.VMEM((H + 2, W + 2, Cw_p), jnp.bfloat16),     # padded conv2 in
                    pltpu.VMEM(((H + 2) * W, 3 * Cw_p), jnp.bfloat16),  # kw-shift slab
                ],
            ),
            compiler_params=pltpu.CompilerParams(
                dimension_semantics=("parallel",),
                vmem_limit_bytes=vmem_limit),
        )

    args = (xp, w1p, b1p, w2p, b2p, w3p, b3p)
    try:
        out_p = build(True)(*args)           # single-buffered constant operands
        jax.block_until_ready(out_p)
    except Exception:
        # This JAX build rejects pipeline_mode=Buffered(1); fall back to default
        # double-buffering of the (small) constant operands.
        out_p = build(False)(*args)

    return out_p[:, :, :, :Cexp]


# ----------------------- pure-JAX reference (for verification) -----------------------
def ref_forward(x_nhwc, w1_hwio, bn1, w2_hwio, bn2, w3_hwio, bn3, eps=1e-5):
    def conv(x, w, pad):
        return lax.conv_general_dilated(
            x, w, window_strides=(1, 1), padding=[(pad, pad), (pad, pad)],
            dimension_numbers=("NHWC", "HWIO", "NHWC"))

    def bn(x, p):
        g, b, m, v = p
        return (x - m) / jnp.sqrt(v + eps) * g + b

    y = jnp.maximum(bn(conv(x_nhwc, w1_hwio, 0), bn1), 0.0)
    y = jnp.maximum(bn(conv(y, w2_hwio, 1), bn2), 0.0)
    y = bn(conv(y, w3_hwio, 0), bn3)
    return jnp.maximum(x_nhwc + y, 0.0)


if __name__ == "__main__":
    # Small shapes consistent with the module: in_planes = out_planes * EXPANSION so
    # the identity shortcut (downsample=None) type-checks.
    B, H, W = 2, 8, 8
    out_planes = 4
    EXPANSION = 4
    in_planes = out_planes * EXPANSION          # 16
    width = out_planes * (64 // 64) * 1         # groups=1, width_per_group=64 -> 4
    Cexp = out_planes * EXPANSION               # 16
    eps = 1e-5

    key = jax.random.PRNGKey(0)
    keys = jax.random.split(key, 8)

    x_nchw = jax.random.normal(keys[0], (B, in_planes, H, W), jnp.float32)

    # Conv weights in PyTorch OIHW layout, deterministic init.
    w1_oihw = 0.1 * jax.random.normal(keys[1], (width, in_planes, 1, 1), jnp.float32)
    w2_oihw = 0.1 * jax.random.normal(keys[2], (width, width, 3, 3), jnp.float32)
    w3_oihw = 0.1 * jax.random.normal(keys[3], (Cexp, width, 1, 1), jnp.float32)

    def bn_params(k, c):
        ks = jax.random.split(k, 4)
        gamma = 1.0 + 0.1 * jax.random.normal(ks[0], (c,), jnp.float32)
        beta = 0.1 * jax.random.normal(ks[1], (c,), jnp.float32)
        mean = 0.1 * jax.random.normal(ks[2], (c,), jnp.float32)
        var = jnp.abs(jax.random.normal(ks[3], (c,), jnp.float32)) + 0.5
        return gamma, beta, mean, var

    bn1 = bn_params(keys[4], width)
    bn2 = bn_params(keys[5], width)
    bn3 = bn_params(keys[6], Cexp)

    # Kernel weight layouts: 1x1 convs as (in, out), 3x3 conv as (kh, kw, in, out).
    w1 = w1_oihw[:, :, 0, 0].T
    w2 = jnp.transpose(w2_oihw, (2, 3, 1, 0))
    w3 = w3_oihw[:, :, 0, 0].T

    # NCHW -> NHWC for the kernel.
    x_nhwc = jnp.transpose(x_nchw, (0, 2, 3, 1))
    y_nhwc = bottleneck_forward(x_nhwc, w1, bn1, w2, bn2, w3, bn3, eps=eps)
    y_nchw = jnp.transpose(y_nhwc, (0, 3, 1, 2))
    jax.block_until_ready(y_nchw)

    # Verify against pure-JAX f32 reference (kernel uses bf16 MXU inputs, bf16 output).
    w1_hwio = w1.reshape(1, 1, in_planes, width)
    w3_hwio = w3.reshape(1, 1, width, Cexp)
    y_ref = ref_forward(x_nhwc, w1_hwio, bn1, w2, bn2, w3_hwio, bn3, eps=eps)
    assert y_nchw.shape == (B, in_planes, H, W)
    y_f32 = y_nhwc.astype(jnp.float32)
    assert jnp.allclose(y_f32, y_ref, atol=5e-2, rtol=5e-2), (
        "mismatch vs reference: max abs diff "
        f"{float(jnp.max(jnp.abs(y_f32 - y_ref)))}")

    print("KERNEL_OK")
</pallas_src>

<mosaic_0001>
module attributes {stable_mosaic.version = 11 : i64} {
  func.func @bottleneck_kernel(%arg0: i32, %arg1: memref<1x8x8x128xf32, #tpu.memory_space<vmem>>, %arg2: memref<128x128xbf16, #tpu.memory_space<vmem>>, %arg3: memref<1x128xf32, #tpu.memory_space<vmem>>, %arg4: memref<3x384x128xbf16, #tpu.memory_space<vmem>>, %arg5: memref<1x128xf32, #tpu.memory_space<vmem>>, %arg6: memref<128x128xbf16, #tpu.memory_space<vmem>>, %arg7: memref<1x128xf32, #tpu.memory_space<vmem>>, %arg8: memref<1x8x8x128xbf16, #tpu.memory_space<vmem>>, %arg9: memref<10x10x128xbf16, #tpu.memory_space<vmem>>, %arg10: memref<80x384xbf16, #tpu.memory_space<vmem>>) attributes {dimension_semantics = [#tpu.dimension_semantics<parallel>], iteration_bounds = array<i64: 2>, scalar_prefetch = 0 : i64, scratch_operands = 2 : i64, tpu.core_type = #tpu.core_type<tc>, window_params = [{transform_indices = @transform_0, window_bounds = array<i64: 1, 8, 8, 128>}, {pipeline_mode = #tpu.pipeline_mode<synchronous>, transform_indices = @transform_1, window_bounds = array<i64: 128, 128>}, {pipeline_mode = #tpu.pipeline_mode<synchronous>, transform_indices = @transform_2, window_bounds = array<i64: 1, 128>}, {pipeline_mode = #tpu.pipeline_mode<synchronous>, transform_indices = @transform_3, window_bounds = array<i64: 3, 384, 128>}, {pipeline_mode = #tpu.pipeline_mode<synchronous>, transform_indices = @transform_4, window_bounds = array<i64: 1, 128>}, {pipeline_mode = #tpu.pipeline_mode<synchronous>, transform_indices = @transform_5, window_bounds = array<i64: 128, 128>}, {pipeline_mode = #tpu.pipeline_mode<synchronous>, transform_indices = @transform_6, window_bounds = array<i64: 1, 128>}, {transform_indices = @transform_7, window_bounds = array<i64: 1, 8, 8, 128>}]} {
    %c0 = arith.constant 0 : index
    %c0_0 = arith.constant 0 : index
    %c0_1 = arith.constant 0 : index
    %c0_2 = arith.constant 0 : index
    %0 = vector.load %arg1[%c0, %c0_0, %c0_1, %c0_2] : memref<1x8x8x128xf32, #tpu.memory_space<vmem>>, vector<1x8x8x128xf32>
    %1 = vector.shape_cast %0 : vector<1x8x8x128xf32> to vector<8x8x128xf32>
    %2 = vector.shape_cast %1 : vector<8x8x128xf32> to vector<64x128xf32>
    %3 = arith.truncf %2 : vector<64x128xf32> to vector<64x128xbf16>
    %c0_3 = arith.constant 0 : index
    %c0_4 = arith.constant 0 : index
    %4 = vector.load %arg2[%c0_3, %c0_4] : memref<128x128xbf16, #tpu.memory_space<vmem>>, vector<128x128xbf16>
    %cst = arith.constant dense<0.000000e+00> : vector<64x128xf32>
    %5 = tpu.matmul %3, %4, %cst {dimension_numbers = #tpu.dot_dimension_numbers<[1], [0], [0], [1], [0, 0, 1, 1], [], []>} : vector<64x128xbf16>, vector<128x128xbf16>, vector<64x128xf32> -> vector<64x128xf32>
    %c0_5 = arith.constant 0 : index
    %c0_6 = arith.constant 0 : index
    %6 = vector.load %arg3[%c0_5, %c0_6] : memref<1x128xf32, #tpu.memory_space<vmem>>, vector<1x128xf32>
    %7 = vector.broadcast %6 : vector<1x128xf32> to vector<64x128xf32>
    %8 = arith.addf %5, %7 : vector<64x128xf32>
    %cst_7 = arith.constant 0.000000e+00 : f32
    %9 = vector.broadcast %cst_7 : f32 to vector<64x128xf32>
    %10 = arith.maximumf %8, %9 : vector<64x128xf32>
    %cst_8 = arith.constant 0.000000e+00 : bf16
    %11 = vector.broadcast %cst_8 : bf16 to vector<10x1x128xbf16>
    %c0_9 = arith.constant 0 : index
    %c0_10 = arith.constant 0 : index
    %c0_11 = arith.constant 0 : index
    %12 = vector.load %arg9[%c0_9, %c0_10, %c0_11] : memref<10x10x128xbf16, #tpu.memory_space<vmem>>, vector<10x1x128xbf16>
    tpu.vector_store %arg9[%c0_9, %c0_10, %c0_11], %11 {strides = array<i32>} : memref<10x10x128xbf16, #tpu.memory_space<vmem>>, vector<10x1x128xbf16>,
    %cst_12 = arith.constant 0.000000e+00 : bf16
    %13 = vector.broadcast %cst_12 : bf16 to vector<10x1x128xbf16>
    %c0_13 = arith.constant 0 : index
    %c9 = arith.constant 9 : index
    %c0_14 = arith.constant 0 : index
    %14 = vector.load %arg9[%c0_13, %c9, %c0_14] : memref<10x10x128xbf16, #tpu.memory_space<vmem>>, vector<10x1x128xbf16>
    tpu.vector_store %arg9[%c0_13, %c9, %c0_14], %13 {strides = array<i32>} : memref<10x10x128xbf16, #tpu.memory_space<vmem>>, vector<10x1x128xbf16>,
    %cst_15 = arith.constant 0.000000e+00 : bf16
    %15 = vector.broadcast %cst_15 : bf16 to vector<1x10x128xbf16>
    %c0_16 = arith.constant 0 : index
    %c0_17 = arith.constant 0 : index
    %c0_18 = arith.constant 0 : index
    %16 = vector.load %arg9[%c0_16, %c0_17, %c0_18] : memref<10x10x128xbf16, #tpu.memory_space<vmem>>, vector<1x10x128xbf16>
    tpu.vector_store %arg9[%c0_16, %c0_17, %c0_18], %15 {strides = array<i32>} : memref<10x10x128xbf16, #tpu.memory_space<vmem>>, vector<1x10x128xbf16>,
    %cst_19 = arith.constant 0.000000e+00 : bf16
    %17 = vector.broadcast %cst_19 : bf16 to vector<1x10x128xbf16>
    %c9_20 = arith.constant 9 : index
    %c0_21 = arith.constant 0 : index
    %c0_22 = arith.constant 0 : index
    %18 = vector.load %arg9[%c9_20, %c0_21, %c0_22] : memref<10x10x128xbf16, #tpu.memory_space<vmem>>, vector<1x10x128xbf16>
    tpu.vector_store %arg9[%c9_20, %c0_21, %c0_22], %17 {strides = array<i32>} : memref<10x10x128xbf16, #tpu.memory_space<vmem>>, vector<1x10x128xbf16>,
    %19 = vector.shape_cast %10 : vector<64x128xf32> to vector<8x8x128xf32>
    %20 = arith.truncf %19 : vector<8x8x128xf32> to vector<8x8x128xbf16>
    %c1 = arith.constant 1 : index
    %c1_23 = arith.constant 1 : index
    %c0_24 = arith.constant 0 : index
    %21 = vector.load %arg9[%c1, %c1_23, %c0_24] : memref<10x10x128xbf16, #tpu.memory_space<vmem>>, vector<8x8x128xbf16>
    tpu.vector_store %arg9[%c1, %c1_23, %c0_24], %20 {strides = array<i32>} : memref<10x10x128xbf16, #tpu.memory_space<vmem>>, vector<8x8x128xbf16>,
    %c0_25 = arith.constant 0 : index
    %c0_26 = arith.constant 0 : index
    %c0_27 = arith.constant 0 : index
    %22 = vector.load %arg9[%c0_25, %c0_26, %c0_27] : memref<10x10x128xbf16, #tpu.memory_space<vmem>>, vector<10x8x128xbf16>
    %23 = vector.shape_cast %22 : vector<10x8x128xbf16> to vector<80x128xbf16>
    %c0_28 = arith.constant 0 : index
    %c0_29 = arith.constant 0 : index
    %24 = vector.load %arg10[%c0_28, %c0_29] : memref<80x384xbf16, #tpu.memory_space<vmem>>, vector<80x128xbf16>
    tpu.vector_store %arg10[%c0_28, %c0_29], %23 {strides = array<i32>} : memref<80x384xbf16, #tpu.memory_space<vmem>>, vector<80x128xbf16>,
    %c0_30 = arith.constant 0 : index
    %c1_31 = arith.constant 1 : index
    %c0_32 = arith.constant 0 : index
    %25 = vector.load %arg9[%c0_30, %c1_31, %c0_32] : memref<10x10x128xbf16, #tpu.memory_space<vmem>>, vector<10x8x128xbf16>
    %26 = vector.shape_cast %25 : vector<10x8x128xbf16> to vector<80x128xbf16>
    %c0_33 = arith.constant 0 : index
    %c128 = arith.constant 128 : index
    %27 = vector.load %arg10[%c0_33, %c128] : memref<80x384xbf16, #tpu.memory_space<vmem>>, vector<80x128xbf16>
    tpu.vector_store %arg10[%c0_33, %c128], %26 {strides = array<i32>} : memref<80x384xbf16, #tpu.memory_space<vmem>>, vector<80x128xbf16>,
    %c0_34 = arith.constant 0 : index
    %c2 = arith.constant 2 : index
    %c0_35 = arith.constant 0 : index
    %28 = vector.load %arg9[%c0_34, %c2, %c0_35] : memref<10x10x128xbf16, #tpu.memory_space<vmem>>, vector<10x8x128xbf16>
    %29 = vector.shape_cast %28 : vector<10x8x128xbf16> to vector<80x128xbf16>
    %c0_36 = arith.constant 0 : index
    %c256 = arith.constant 256 : index
    %30 = vector.load %arg10[%c0_36, %c256] : memref<80x384xbf16, #tpu.memory_space<vmem>>, vector<80x128xbf16>
    tpu.vector_store %arg10[%c0_36, %c256], %29 {strides = array<i32>} : memref<80x384xbf16, #tpu.memory_space<vmem>>, vector<80x128xbf16>,
    %c0_37 = arith.constant 0 : index
    %c0_38 = arith.constant 0 : index
    %31 = vector.load %arg10[%c0_37, %c0_38] : memref<80x384xbf16, #tpu.memory_space<vmem>>, vector<64x384xbf16>
    %c0_39 = arith.constant 0 : index
    %c0_40 = arith.constant 0 : index
    %c0_41 = arith.constant 0 : index
    %32 = vector.load %arg4[%c0_39, %c0_40, %c0_41] : memref<3x384x128xbf16, #tpu.memory_space<vmem>>, vector<1x384x128xbf16>
    %33 = vector.shape_cast %32 : vector<1x384x128xbf16> to vector<384x128xbf16>
    %cst_42 = arith.constant dense<0.000000e+00> : vector<64x128xf32>
    %34 = tpu.matmul %31, %33, %cst_42 {dimension_numbers = #tpu.dot_dimension_numbers<[1], [0], [0], [1], [0, 0, 1, 1], [], []>} : vector<64x384xbf16>, vector<384x128xbf16>, vector<64x128xf32> -> vector<64x128xf32>
    %c8 = arith.constant 8 : index
    %c0_43 = arith.constant 0 : index
    %35 = vector.load %arg10[%c8, %c0_43] : memref<80x384xbf16, #tpu.memory_space<vmem>>, vector<64x384xbf16>
    %c1_44 = arith.constant 1 : index
    %c0_45 = arith.constant 0 : index
    %c0_46 = arith.constant 0 : index
    %36 = vector.load %arg4[%c1_44, %c0_45, %c0_46] : memref<3x384x128xbf16, #tpu.memory_space<vmem>>, vector<1x384x128xbf16>
    %37 = vector.shape_cast %36 : vector<1x384x128xbf16> to vector<384x128xbf16>
    %cst_47 = arith.constant dense<0.000000e+00> : vector<64x128xf32>
    %38 = tpu.matmul %35, %37, %cst_47 {dimension_numbers = #tpu.dot_dimension_numbers<[1], [0], [0], [1], [0, 0, 1, 1], [], []>} : vector<64x384xbf16>, vector<384x128xbf16>, vector<64x128xf32> -> vector<64x128xf32>
    %39 = arith.addf %34, %38 : vector<64x128xf32>
    %c16 = arith.constant 16 : index
    %c0_48 = arith.constant 0 : index
    %40 = vector.load %arg10[%c16, %c0_48] : memref<80x384xbf16, #tpu.memory_space<vmem>>, vector<64x384xbf16>
    %c2_49 = arith.constant 2 : index
    %c0_50 = arith.constant 0 : index
    %c0_51 = arith.constant 0 : index
    %41 = vector.load %arg4[%c2_49, %c0_50, %c0_51] : memref<3x384x128xbf16, #tpu.memory_space<vmem>>, vector<1x384x128xbf16>
    %42 = vector.shape_cast %41 : vector<1x384x128xbf16> to vector<384x128xbf16>
    %cst_52 = arith.constant dense<0.000000e+00> : vector<64x128xf32>
    %43 = tpu.matmul %40, %42, %cst_52 {dimension_numbers = #tpu.dot_dimension_numbers<[1], [0], [0], [1], [0, 0, 1, 1], [], []>} : vector<64x384xbf16>, vector<384x128xbf16>, vector<64x128xf32> -> vector<64x128xf32>
    %44 = arith.addf %39, %43 : vector<64x128xf32>
    %c0_53 = arith.constant 0 : index
    %c0_54 = arith.constant 0 : index
    %45 = vector.load %arg5[%c0_53, %c0_54] : memref<1x128xf32, #tpu.memory_space<vmem>>, vector<1x128xf32>
    %46 = vector.broadcast %45 : vector<1x128xf32> to vector<64x128xf32>
    %47 = arith.addf %44, %46 : vector<64x128xf32>
    %cst_55 = arith.constant 0.000000e+00 : f32
    %48 = vector.broadcast %cst_55 : f32 to vector<64x128xf32>
    %49 = arith.maximumf %47, %48 : vector<64x128xf32>
    %50 = arith.truncf %49 : vector<64x128xf32> to vector<64x128xbf16>
    %c0_56 = arith.constant 0 : index
    %c0_57 = arith.constant 0 : index
    %51 = vector.load %arg6[%c0_56, %c0_57] : memref<128x128xbf16, #tpu.memory_space<vmem>>, vector<128x128xbf16>
    %cst_58 = arith.constant dense<0.000000e+00> : vector<64x128xf32>
    %52 = tpu.matmul %50, %51, %cst_58 {dimension_numbers = #tpu.dot_dimension_numbers<[1], [0], [0], [1], [0, 0, 1, 1], [], []>} : vector<64x128xbf16>, vector<128x128xbf16>, vector<64x128xf32> -> vector<64x128xf32>
    %c0_59 = arith.constant 0 : index
    %c0_60 = arith.constant 0 : index
    %53 = vector.load %arg7[%c0_59, %c0_60] : memref<1x128xf32, #tpu.memory_space<vmem>>, vector<1x128xf32>
    %54 = vector.broadcast %53 : vector<1x128xf32> to vector<64x128xf32>
    %55 = arith.addf %52, %54 : vector<64x128xf32>
    %56 = arith.addf %2, %55 : vector<64x128xf32>
    %cst_61 = arith.constant 0.000000e+00 : f32
    %57 = vector.broadcast %cst_61 : f32 to vector<64x128xf32>
    %58 = arith.maximumf %56, %57 : vector<64x128xf32>
    %59 = vector.shape_cast %58 : vector<64x128xf32> to vector<8x8x128xf32>
    %60 = arith.truncf %59 : vector<8x8x128xf32> to vector<8x8x128xbf16>
    %c0_62 = arith.constant 0 : index
    %c0_63 = arith.constant 0 : index
    %c0_64 = arith.constant 0 : index
    %c0_65 = arith.constant 0 : index
    %61 = vector.load %arg8[%c0_62, %c0_63, %c0_64, %c0_65] : memref<1x8x8x128xbf16, #tpu.memory_space<vmem>>, vector<1x8x8x128xbf16>
    %62 = vector.shape_cast %61 : vector<1x8x8x128xbf16> to vector<8x8x128xbf16>
    %63 = vector.shape_cast %60 : vector<8x8x128xbf16> to vector<1x8x8x128xbf16>
    tpu.vector_store %arg8[%c0_62, %c0_63, %c0_64, %c0_65], %63 {strides = array<i32>} : memref<1x8x8x128xbf16, #tpu.memory_space<vmem>>, vector<1x8x8x128xbf16>,
    return
  }
  func.func @transform_0(%arg0: i32) -> (i32, i32, i32, i32) {
    %c0_i32 = arith.constant 0 : i32
    %c0_i32_0 = arith.constant 0 : i32
    %c0_i32_1 = arith.constant 0 : i32
    %c0_i32_2 = arith.constant 0 : i32
    return %arg0, %c0_i32, %c0_i32_0, %c0_i32_1 : i32, i32, i32, i32
  }
  func.func @transform_1(%arg0: i32) -> (i32, i32) {
    %c0_i32 = arith.constant 0 : i32
    %c0_i32_0 = arith.constant 0 : i32
    %c0_i32_1 = arith.constant 0 : i32
    return %c0_i32, %c0_i32_0 : i32, i32
  }
  func.func @transform_2(%arg0: i32) -> (i32, i32) {
    %c0_i32 = arith.constant 0 : i32
    %c0_i32_0 = arith.constant 0 : i32
    %c0_i32_1 = arith.constant 0 : i32
    return %c0_i32, %c0_i32_0 : i32, i32
  }
  func.func @transform_3(%arg0: i32) -> (i32, i32, i32) {
    %c0_i32 = arith.constant 0 : i32
    %c0_i32_0 = arith.constant 0 : i32
    %c0_i32_1 = arith.constant 0 : i32
    %c0_i32_2 = arith.constant 0 : i32
    return %c0_i32, %c0_i32_0, %c0_i32_1 : i32, i32, i32
  }
  func.func @transform_4(%arg0: i32) -> (i32, i32) {
    %c0_i32 = arith.constant 0 : i32
    %c0_i32_0 = arith.constant 0 : i32
    %c0_i32_1 = arith.constant 0 : i32
    return %c0_i32, %c0_i32_0 : i32, i32
  }
  func.func @transform_5(%arg0: i32) -> (i32, i32) {
    %c0_i32 = arith.constant 0 : i32
    %c0_i32_0 = arith.constant 0 : i32
    %c0_i32_1 = arith.constant 0 : i32
    return %c0_i32, %c0_i32_0 : i32, i32
  }
  func.func @transform_6(%arg0: i32) -> (i32, i32) {
    %c0_i32 = arith.constant 0 : i32
    %c0_i32_0 = arith.constant 0 : i32
    %c0_i32_1 = arith.constant 0 : i32
    return %c0_i32, %c0_i32_0 : i32, i32
  }
  func.func @transform_7(%arg0: i32) -> (i32, i32, i32, i32) {
    %c0_i32 = arith.constant 0 : i32
    %c0_i32_0 = arith.constant 0 : i32
    %c0_i32_1 = arith.constant 0 : i32
    %c0_i32_2 = arith.constant 0 : i32
    return %arg0, %c0_i32, %c0_i32_0, %c0_i32_1 : i32, i32, i32, i32
  }
}

module attributes {stable_mosaic.version = 11 : i64} {
  func.func @bottleneck_kernel(%arg0: i32, %arg1: memref<1x8x8x128xf32, #tpu.memory_space<vmem>>, %arg2: memref<128x128xbf16, #tpu.memory_space<vmem>>, %arg3: memref<1x128xf32, #tpu.memory_space<vmem>>, %arg4: memref<3x384x128xbf16, #tpu.memory_space<vmem>>, %arg5: memref<1x128xf32, #tpu.memory_space<vmem>>, %arg6: memref<128x128xbf16, #tpu.memory_space<vmem>>, %arg7: memref<1x128xf32, #tpu.memory_space<vmem>>, %arg8: memref<1x8x8x128xbf16, #tpu.memory_space<vmem>>, %arg9: memref<10x10x128xbf16, #tpu.memory_space<vmem>>, %arg10: memref<80x384xbf16, #tpu.memory_space<vmem>>) attributes {dimension_semantics = [#tpu.dimension_semantics<parallel>], iteration_bounds = array<i64: 2>, scalar_prefetch = 0 : i64, scratch_operands = 2 : i64, tpu.core_type = #tpu.core_type<tc>, window_params = [{transform_indices = @transform_0, window_bounds = array<i64: 1, 8, 8, 128>}, {pipeline_mode = #tpu.pipeline_mode<synchronous>, transform_indices = @transform_1, window_bounds = array<i64: 128, 128>}, {pipeline_mode = #tpu.pipeline_mode<synchronous>, transform_indices = @transform_2, window_bounds = array<i64: 1, 128>}, {pipeline_mode = #tpu.pipeline_mode<synchronous>, transform_indices = @transform_3, window_bounds = array<i64: 3, 384, 128>}, {pipeline_mode = #tpu.pipeline_mode<synchronous>, transform_indices = @transform_4, window_bounds = array<i64: 1, 128>}, {pipeline_mode = #tpu.pipeline_mode<synchronous>, transform_indices = @transform_5, window_bounds = array<i64: 128, 128>}, {pipeline_mode = #tpu.pipeline_mode<synchronous>, transform_indices = @transform_6, window_bounds = array<i64: 1, 128>}, {transform_indices = @transform_7, window_bounds = array<i64: 1, 8, 8, 128>}]} {
    %c0 = arith.constant 0 : index
    %c0_0 = arith.constant 0 : index
    %c0_1 = arith.constant 0 : index
    %c0_2 = arith.constant 0 : index
    %0 = vector.load %arg1[%c0, %c0_0, %c0_1, %c0_2] : memref<1x8x8x128xf32, #tpu.memory_space<vmem>>, vector<1x8x8x128xf32>
    %1 = vector.shape_cast %0 : vector<1x8x8x128xf32> to vector<8x8x128xf32>
    %2 = vector.shape_cast %1 : vector<8x8x128xf32> to vector<64x128xf32>
    %3 = arith.truncf %2 : vector<64x128xf32> to vector<64x128xbf16>
    %c0_3 = arith.constant 0 : index
    %c0_4 = arith.constant 0 : index
    %4 = vector.load %arg2[%c0_3, %c0_4] : memref<128x128xbf16, #tpu.memory_space<vmem>>, vector<128x128xbf16>
    %cst = arith.constant dense<0.000000e+00> : vector<64x128xf32>
    %5 = tpu.matmul %3, %4, %cst {dimension_numbers = #tpu.dot_dimension_numbers<[1], [0], [0], [1], [0, 0, 1, 1], [], []>} : vector<64x128xbf16>, vector<128x128xbf16>, vector<64x128xf32> -> vector<64x128xf32>
    %c0_5 = arith.constant 0 : index
    %c0_6 = arith.constant 0 : index
    %6 = vector.load %arg3[%c0_5, %c0_6] : memref<1x128xf32, #tpu.memory_space<vmem>>, vector<1x128xf32>
    %7 = vector.broadcast %6 : vector<1x128xf32> to vector<64x128xf32>
    %8 = arith.addf %5, %7 : vector<64x128xf32>
    %cst_7 = arith.constant 0.000000e+00 : f32
    %9 = vector.broadcast %cst_7 : f32 to vector<64x128xf32>
    %10 = arith.maximumf %8, %9 : vector<64x128xf32>
    %cst_8 = arith.constant 0.000000e+00 : bf16
    %11 = vector.broadcast %cst_8 : bf16 to vector<10x1x128xbf16>
    %c0_9 = arith.constant 0 : index
    %c0_10 = arith.constant 0 : index
    %c0_11 = arith.constant 0 : index
    %12 = vector.load %arg9[%c0_9, %c0_10, %c0_11] : memref<10x10x128xbf16, #tpu.memory_space<vmem>>, vector<10x1x128xbf16>
    tpu.vector_store %arg9[%c0_9, %c0_10, %c0_11], %11 {strides = array<i32>} : memref<10x10x128xbf16, #tpu.memory_space<vmem>>, vector<10x1x128xbf16>,
    %cst_12 = arith.constant 0.000000e+00 : bf16
    %13 = vector.broadcast %cst_12 : bf16 to vector<10x1x128xbf16>
    %c0_13 = arith.constant 0 : index
    %c9 = arith.constant 9 : index
    %c0_14 = arith.constant 0 : index
    %14 = vector.load %arg9[%c0_13, %c9, %c0_14] : memref<10x10x128xbf16, #tpu.memory_space<vmem>>, vector<10x1x128xbf16>
    tpu.vector_store %arg9[%c0_13, %c9, %c0_14], %13 {strides = array<i32>} : memref<10x10x128xbf16, #tpu.memory_space<vmem>>, vector<10x1x128xbf16>,
    %cst_15 = arith.constant 0.000000e+00 : bf16
    %15 = vector.broadcast %cst_15 : bf16 to vector<1x10x128xbf16>
    %c0_16 = arith.constant 0 : index
    %c0_17 = arith.constant 0 : index
    %c0_18 = arith.constant 0 : index
    %16 = vector.load %arg9[%c0_16, %c0_17, %c0_18] : memref<10x10x128xbf16, #tpu.memory_space<vmem>>, vector<1x10x128xbf16>
    tpu.vector_store %arg9[%c0_16, %c0_17, %c0_18], %15 {strides = array<i32>} : memref<10x10x128xbf16, #tpu.memory_space<vmem>>, vector<1x10x128xbf16>,
    %cst_19 = arith.constant 0.000000e+00 : bf16
    %17 = vector.broadcast %cst_19 : bf16 to vector<1x10x128xbf16>
    %c9_20 = arith.constant 9 : index
    %c0_21 = arith.constant 0 : index
    %c0_22 = arith.constant 0 : index
    %18 = vector.load %arg9[%c9_20, %c0_21, %c0_22] : memref<10x10x128xbf16, #tpu.memory_space<vmem>>, vector<1x10x128xbf16>
    tpu.vector_store %arg9[%c9_20, %c0_21, %c0_22], %17 {strides = array<i32>} : memref<10x10x128xbf16, #tpu.memory_space<vmem>>, vector<1x10x128xbf16>,
    %19 = vector.shape_cast %10 : vector<64x128xf32> to vector<8x8x128xf32>
    %20 = arith.truncf %19 : vector<8x8x128xf32> to vector<8x8x128xbf16>
    %c1 = arith.constant 1 : index
    %c1_23 = arith.constant 1 : index
    %c0_24 = arith.constant 0 : index
    %21 = vector.load %arg9[%c1, %c1_23, %c0_24] : memref<10x10x128xbf16, #tpu.memory_space<vmem>>, vector<8x8x128xbf16>
    tpu.vector_store %arg9[%c1, %c1_23, %c0_24], %20 {strides = array<i32>} : memref<10x10x128xbf16, #tpu.memory_space<vmem>>, vector<8x8x128xbf16>,
    %c0_25 = arith.constant 0 : index
    %c0_26 = arith.constant 0 : index
    %c0_27 = arith.constant 0 : index
    %22 = vector.load %arg9[%c0_25, %c0_26, %c0_27] : memref<10x10x128xbf16, #tpu.memory_space<vmem>>, vector<10x8x128xbf16>
    %23 = vector.shape_cast %22 : vector<10x8x128xbf16> to vector<80x128xbf16>
    %c0_28 = arith.constant 0 : index
    %c0_29 = arith.constant 0 : index
    %24 = vector.load %arg10[%c0_28, %c0_29] : memref<80x384xbf16, #tpu.memory_space<vmem>>, vector<80x128xbf16>
    tpu.vector_store %arg10[%c0_28, %c0_29], %23 {strides = array<i32>} : memref<80x384xbf16, #tpu.memory_space<vmem>>, vector<80x128xbf16>,
    %c0_30 = arith.constant 0 : index
    %c1_31 = arith.constant 1 : index
    %c0_32 = arith.constant 0 : index
    %25 = vector.load %arg9[%c0_30, %c1_31, %c0_32] : memref<10x10x128xbf16, #tpu.memory_space<vmem>>, vector<10x8x128xbf16>
    %26 = vector.shape_cast %25 : vector<10x8x128xbf16> to vector<80x128xbf16>
    %c0_33 = arith.constant 0 : index
    %c128 = arith.constant 128 : index
    %27 = vector.load %arg10[%c0_33, %c128] : memref<80x384xbf16, #tpu.memory_space<vmem>>, vector<80x128xbf16>
    tpu.vector_store %arg10[%c0_33, %c128], %26 {strides = array<i32>} : memref<80x384xbf16, #tpu.memory_space<vmem>>, vector<80x128xbf16>,
    %c0_34 = arith.constant 0 : index
    %c2 = arith.constant 2 : index
    %c0_35 = arith.constant 0 : index
    %28 = vector.load %arg9[%c0_34, %c2, %c0_35] : memref<10x10x128xbf16, #tpu.memory_space<vmem>>, vector<10x8x128xbf16>
    %29 = vector.shape_cast %28 : vector<10x8x128xbf16> to vector<80x128xbf16>
    %c0_36 = arith.constant 0 : index
    %c256 = arith.constant 256 : index
    %30 = vector.load %arg10[%c0_36, %c256] : memref<80x384xbf16, #tpu.memory_space<vmem>>, vector<80x128xbf16>
    tpu.vector_store %arg10[%c0_36, %c256], %29 {strides = array<i32>} : memref<80x384xbf16, #tpu.memory_space<vmem>>, vector<80x128xbf16>,
    %c0_37 = arith.constant 0 : index
    %c0_38 = arith.constant 0 : index
    %31 = vector.load %arg10[%c0_37, %c0_38] : memref<80x384xbf16, #tpu.memory_space<vmem>>, vector<64x384xbf16>
    %c0_39 = arith.constant 0 : index
    %c0_40 = arith.constant 0 : index
    %c0_41 = arith.constant 0 : index
    %32 = vector.load %arg4[%c0_39, %c0_40, %c0_41] : memref<3x384x128xbf16, #tpu.memory_space<vmem>>, vector<1x384x128xbf16>
    %33 = vector.shape_cast %32 : vector<1x384x128xbf16> to vector<384x128xbf16>
    %cst_42 = arith.constant dense<0.000000e+00> : vector<64x128xf32>
    %34 = tpu.matmul %31, %33, %cst_42 {dimension_numbers = #tpu.dot_dimension_numbers<[1], [0], [0], [1], [0, 0, 1, 1], [], []>} : vector<64x384xbf16>, vector<384x128xbf16>, vector<64x128xf32> -> vector<64x128xf32>
    %c8 = arith.constant 8 : index
    %c0_43 = arith.constant 0 : index
    %35 = vector.load %arg10[%c8, %c0_43] : memref<80x384xbf16, #tpu.memory_space<vmem>>, vector<64x384xbf16>
    %c1_44 = arith.constant 1 : index
    %c0_45 = arith.constant 0 : index
    %c0_46 = arith.constant 0 : index
    %36 = vector.load %arg4[%c1_44, %c0_45, %c0_46] : memref<3x384x128xbf16, #tpu.memory_space<vmem>>, vector<1x384x128xbf16>
    %37 = vector.shape_cast %36 : vector<1x384x128xbf16> to vector<384x128xbf16>
    %cst_47 = arith.constant dense<0.000000e+00> : vector<64x128xf32>
    %38 = tpu.matmul %35, %37, %cst_47 {dimension_numbers = #tpu.dot_dimension_numbers<[1], [0], [0], [1], [0, 0, 1, 1], [], []>} : vector<64x384xbf16>, vector<384x128xbf16>, vector<64x128xf32> -> vector<64x128xf32>
    %39 = arith.addf %34, %38 : vector<64x128xf32>
    %c16 = arith.constant 16 : index
    %c0_48 = arith.constant 0 : index
    %40 = vector.load %arg10[%c16, %c0_48] : memref<80x384xbf16, #tpu.memory_space<vmem>>, vector<64x384xbf16>
    %c2_49 = arith.constant 2 : index
    %c0_50 = arith.constant 0 : index
    %c0_51 = arith.constant 0 : index
    %41 = vector.load %arg4[%c2_49, %c0_50, %c0_51] : memref<3x384x128xbf16, #tpu.memory_space<vmem>>, vector<1x384x128xbf16>
    %42 = vector.shape_cast %41 : vector<1x384x128xbf16> to vector<384x128xbf16>
    %cst_52 = arith.constant dense<0.000000e+00> : vector<64x128xf32>
    %43 = tpu.matmul %40, %42, %cst_52 {dimension_numbers = #tpu.dot_dimension_numbers<[1], [0], [0], [1], [0, 0, 1, 1], [], []>} : vector<64x384xbf16>, vector<384x128xbf16>, vector<64x128xf32> -> vector<64x128xf32>
    %44 = arith.addf %39, %43 : vector<64x128xf32>
    %c0_53 = arith.constant 0 : index
    %c0_54 = arith.constant 0 : index
    %45 = vector.load %arg5[%c0_53, %c0_54] : memref<1x128xf32, #tpu.memory_space<vmem>>, vector<1x128xf32>
    %46 = vector.broadcast %45 : vector<1x128xf32> to vector<64x128xf32>
    %47 = arith.addf %44, %46 : vector<64x128xf32>
    %cst_55 = arith.constant 0.000000e+00 : f32
    %48 = vector.broadcast %cst_55 : f32 to vector<64x128xf32>
    %49 = arith.maximumf %47, %48 : vector<64x128xf32>
    %50 = arith.truncf %49 : vector<64x128xf32> to vector<64x128xbf16>
    %c0_56 = arith.constant 0 : index
    %c0_57 = arith.constant 0 : index
    %51 = vector.load %arg6[%c0_56, %c0_57] : memref<128x128xbf16, #tpu.memory_space<vmem>>, vector<128x128xbf16>
    %cst_58 = arith.constant dense<0.000000e+00> : vector<64x128xf32>
    %52 = tpu.matmul %50, %51, %cst_58 {dimension_numbers = #tpu.dot_dimension_numbers<[1], [0], [0], [1], [0, 0, 1, 1], [], []>} : vector<64x128xbf16>, vector<128x128xbf16>, vector<64x128xf32> -> vector<64x128xf32>
    %c0_59 = arith.constant 0 : index
    %c0_60 = arith.constant 0 : index
    %53 = vector.load %arg7[%c0_59, %c0_60] : memref<1x128xf32, #tpu.memory_space<vmem>>, vector<1x128xf32>
    %54 = vector.broadcast %53 : vector<1x128xf32> to vector<64x128xf32>
    %55 = arith.addf %52, %54 : vector<64x128xf32>
    %56 = arith.addf %2, %55 : vector<64x128xf32>
    %cst_61 = arith.constant 0.000000e+00 : f32
    %57 = vector.broadcast %cst_61 : f32 to vector<64x128xf32>
    %58 = arith.maximumf %56, %57 : vector<64x128xf32>
    %59 = vector.shape_cast %58 : vector<64x128xf32> to vector<8x8x128xf32>
    %60 = arith.truncf %59 : vector<8x8x128xf32> to vector<8x8x128xbf16>
    %c0_62 = arith.constant 0 : index
    %c0_63 = arith.constant 0 : index
    %c0_64 = arith.constant 0 : index
    %c0_65 = arith.constant 0 : index
    %61 = vector.load %arg8[%c0_62, %c0_63, %c0_64, %c0_65] : memref<1x8x8x128xbf16, #tpu.memory_space<vmem>>, vector<1x8x8x128xbf16>
    %62 = vector.shape_cast %61 : vector<1x8x8x128xbf16> to vector<8x8x128xbf16>
    %63 = vector.shape_cast %60 : vector<8x8x128xbf16> to vector<1x8x8x128xbf16>
    tpu.vector_store %arg8[%c0_62, %c0_63, %c0_64, %c0_65], %63 {strides = array<i32>} : memref<1x8x8x128xbf16, #tpu.memory_space<vmem>>, vector<1x8x8x128xbf16>,
    return
  }
  func.func @transform_0(%arg0: i32) -> (i32, i32, i32, i32) {
    %c0_i32 = arith.constant 0 : i32
    %c0_i32_0 = arith.constant 0 : i32
    %c0_i32_1 = arith.constant 0 : i32
    %c0_i32_2 = arith.constant 0 : i32
    return %arg0, %c0_i32, %c0_i32_0, %c0_i32_1 : i32, i32, i32, i32
  }
  func.func @transform_1(%arg0: i32) -> (i32, i32) {
    %c0_i32 = arith.constant 0 : i32
    %c0_i32_0 = arith.constant 0 : i32
    %c0_i32_1 = arith.constant 0 : i32
    return %c0_i32, %c0_i32_0 : i32, i32
  }
  func.func @transform_2(%arg0: i32) -> (i32, i32) {
    %c0_i32 = arith.constant 0 : i32
    %c0_i32_0 = arith.constant 0 : i32
    %c0_i32_1 = arith.constant 0 : i32
    return %c0_i32, %c0_i32_0 : i32, i32
  }
  func.func @transform_3(%arg0: i32) -> (i32, i32, i32) {
    %c0_i32 = arith.constant 0 : i32
    %c0_i32_0 = arith.constant 0 : i32
    %c0_i32_1 = arith.constant 0 : i32
    %c0_i32_2 = arith.constant 0 : i32
    return %c0_i32, %c0_i32_0, %c0_i32_1 : i32, i32, i32
  }
  func.func @transform_4(%arg0: i32) -> (i32, i32) {
    %c0_i32 = arith.constant 0 : i32
    %c0_i32_0 = arith.constant 0 : i32
    %c0_i32_1 = arith.constant 0 : i32
    return %c0_i32, %c0_i32_0 : i32, i32
  }
  func.func @transform_5(%arg0: i32) -> (i32, i32) {
    %c0_i32 = arith.constant 0 : i32
    %c0_i32_0 = arith.constant 0 : i32
    %c0_i32_1 = arith.constant 0 : i32
    return %c0_i32, %c0_i32_0 : i32, i32
  }
  func.func @transform_6(%arg0: i32) -> (i32, i32) {
    %c0_i32 = arith.constant 0 : i32
    %c0_i32_0 = arith.constant 0 : i32
    %c0_i32_1 = arith.constant 0 : i32
    return %c0_i32, %c0_i32_0 : i32, i32
  }
  func.func @transform_7(%arg0: i32) -> (i32, i32, i32, i32) {
    %c0_i32 = arith.constant 0 : i32
    %c0_i32_0 = arith.constant 0 : i32
    %c0_i32_1 = arith.constant 0 : i32
    %c0_i32_2 = arith.constant 0 : i32
    return %arg0, %c0_i32, %c0_i32_0, %c0_i32_1 : i32, i32, i32, i32
  }
}

</mosaic_0001>

<bundles_post_ra>
// kernel: tpu_custom_call.1
= control target key start
LH: loop header
LB: loop body
LE: loop exit
PB: predicated region body
PF: predicated region fallthrough
CT: control target
= control target key end

     0   :  { %12 = vsyncpa [#allocation5], 0  ;;  %s4014_s0 = inlined_call_operand.hbm [shape: f32[2,8,8,128], index: 0, kind: input, shape index: {}]   ;;  %s4015_s1 = inlined_call_operand.hbm [shape: bf16[128,128], index: 1, kind: input, shape index: {}]   ;;  %s4016_s2 = inlined_call_operand.vmem [shape: f32[1,128], index: 2, kind: input, shape index: {}]   ;;  %s4017_s3 = inlined_call_operand.hbm [shape: bf16[3,384,128], index: 3, kind: input, shape index: {}]   ;;  %s4018_s4 = inlined_call_operand.vmem [shape: f32[1,128], index: 4, kind: input, shape index: {}]   ;;  %s4019_s5 = inlined_call_operand.hbm [shape: bf16[128,128], index: 5, kind: input, shape index: {}]   ;;  %s4020_s6 = inlined_call_operand.vmem [shape: f32[1,128], index: 6, kind: input, shape index: {}]   ;;  %s4021_s7 = inlined_call_operand.hbm [shape: bf16[2,8,8,128], index: 7, kind: output, shape index: {}]  }
   0x1   :  { %14 = vsyncpa [#allocation5 + $0x1], 0 }
   0x2   :  { %15 = vsyncpa [#allocation8], 0 }
   0x3   :  { %16 = vsyncpa [#allocation11], 0 }
   0x4   :  { %17 = vsyncpa [#allocation6], 0 }
   0x5   :  { %19 = vsyncpa [#allocation6 + $0x1], 0  ;;  %s3387_s24 = smov 0   ;;  %s3389_s25 = smov 0  }
   0x6   :  { %s3391_s26 = smov 0   ;;  %s3393_s27 = smov 0  }
   0x7 LB: > { %s3408_s28 = sadd.s32 4294967295, %s3333_s27   ;;  %s2443_s29 = sadd.s32 4294967294, %s3333_s27   ;;  %s3333_s27 = sphi %s3393_s27, %s4057_s27   ;;  %s3329_s26 = sphi %s3391_s26, %s4056_s26   ;;  %s3325_s25 = sphi %s3389_s25, %s4055_s25   ;;  %s3321_s24 = sphi %s3387_s24, %s4054_s24  }
   0x8   : > { %p45_p0 = scmp.ne.s32.totalorder %s3325_s25, %s3321_s24  ;;  %p4022_p1 = scmp.eq.s32.totalorder %s3408_s28, 0 }
   0x9   : > { %p201_p3 = scmp.eq.s32.totalorder %s2443_s29, 1  ;;  %p2444_p5 = scmp.ge.s32.totalorder %s3333_s27, 1 }
   0xa   : > { %p3417_p4 = por %p4022_p1, %p45_p0  ;;  %p208_p7 = scmp.lt.s32.totalorder %s3333_s27, 3 }
   0xb   : > { %p3422_p6 = por %p201_p3, %p45_p0  ;;  %s3335_s10 = smov [#allocation7]  }
   0xc   : > { %s4026_s30 = scalar_select %p3417_p4, 1, 0 }
   0xd   : > { %s4027_s8 = scalar_select %p3422_p6, 1, 0 }
   0xe   : > { %p3427_p8 = pnand %p2444_p5, %p208_p7  ;;  %s220_s11 = sshll.u32 %s3335_s10, 4  ;;  %s3431_s11 = int_to_ptr.vmem [resolvable:$true] %s220_s11 }
   0xf   : > { %4028 = sst [smem:[#allocation17_spill]] %s4027_s8  ;;  %s3336_s13 = smov [#allocation9]  }
  0x10   : > { %s4029_s9 = scalar_select %p3427_p8, 1, 0 }
  0x11   : > { %p2976_p9 = pneg %p3427_p8  ;;  %s236_s14 = sshll.u32 %s3336_s13, 4  ;;  %s3442_s14 = int_to_ptr.vmem [resolvable:$true] %s236_s14 }
  0x12   : > { %s3337_s15 = smov [#allocation10]   ;;  %s3145_s19 = scalar_lea.hbm %s4015_s1, 1024 }
  0x13   : > { %p3438_p11 = pnand %p2976_p9, %p4022_p1  ;;  %s3444_s16 = sshll.u32 %s3337_s15, 4  ;;  %s253_s16 = int_to_ptr.vmem [resolvable:$true] %s3444_s16 }
  0x14   : > { %p3146_p12 = scmp.ne.s32.totalorder %s4015_s1, %s3145_s19  ;;  %p3152_p5 = scmp.lt.u32.totalorder %s3145_s19, %s4015_s1 }
  0x15   : > { %p3454_p13 = pneg %p3438_p11 }
  0x17   : > { %p3148_p0 = pnand %p3454_p13, %p3146_p12 }
  0x19   : > { %p3149_p3 = pneg %p3148_p0 }
  0x1b   : > { %p3154_p7 = pnand %p3152_p5, %p3149_p3 }
  0x1d   : > { %3157 = shalt.err (!%p3154_p7)
}
  0x1e   : > { %s3158_s10 = scalar_lea.vmem %s3431_s11, 1024  ;;  %p3166_p2 = scmp.lt.s32.totalorder %s3431_s11, %s3431_s11 }
  0x1f   : > { %p3159_p9 = scmp.ne.s32.totalorder %s3431_s11, %s3158_s10  ;;  %p3167_p6 = scmp.lt.s32.totalorder %s3158_s10, %s3158_s10 }
  0x21   : > { %p3161_p10 = pnand %p3159_p9, %p3454_p13  ;;  %p3168_p12 = por %p3167_p6, %p3166_p2 }
  0x23   : > { %p3162_p1 = pneg %p3161_p10 }
  0x25   : > { %p3169_p0 = pnand %p3168_p12, %p3162_p1 }
  0x27   : > { %3172 = shalt.err (!%p3169_p0)
}
  0x28   : > { %s3338_s13 = smov 64   ;;  %s3339_s15 = smov 4  }
  0x29   : > { %2979 = dma.hbm_to_vmem [thread:$0]  (!%p3438_p11), %s4015_s1, 1024, %s3431_s11, [#allocation8], %s3338_s13, %s3338_s13, %s3339_s15  }
  0x2a   : > { %s3173_s21 = scalar_lea.hbm %s4017_s3, 9216 }
  0x2b   : > { %p3174_p1 = scmp.ne.s32.totalorder %s4017_s3, %s3173_s21  ;;  %p3180_p10 = scmp.lt.u32.totalorder %s3173_s21, %s4017_s3 }
  0x2d   : > { %p3176_p2 = pnand %p3174_p1, %p3454_p13 }
  0x2f   : > { %p3177_p6 = pneg %p3176_p2 }
  0x31   : > { %p3182_p3 = pnand %p3180_p10, %p3177_p6 }
  0x33   : > { %3185 = shalt.err (!%p3182_p3)
}
  0x34   : > { %s3186_s11 = scalar_lea.vmem %s3442_s14, 9216  ;;  %p3194_p12 = scmp.lt.s32.totalorder %s3442_s14, %s3442_s14 }
  0x35   : > { %p3187_p5 = scmp.ne.s32.totalorder %s3442_s14, %s3186_s11  ;;  %p3195_p0 = scmp.lt.s32.totalorder %s3186_s11, %s3186_s11 }
  0x37   : > { %p3189_p7 = pnand %p3187_p5, %p3454_p13  ;;  %p3196_p1 = por %p3195_p0, %p3194_p12 }
  0x39   : > { %p3190_p9 = pneg %p3189_p7 }
  0x3b   : > { %p3197_p2 = pnand %p3196_p1, %p3190_p9 }
  0x3d   : > { %3200 = shalt.err (!%p3197_p2)
}
  0x3e   : > { %2982 = dma.hbm_to_vmem [thread:$0]  (!%p3438_p11), %s4017_s3, 9216, %s3442_s14, [#allocation8], %s3338_s13, %s3338_s13, %s3339_s15  }
  0x3f   : > { %s3201_s20 = scalar_lea.hbm %s4019_s5, 1024 }
  0x40   : > { %p3202_p6 = scmp.ne.s32.totalorder %s4019_s5, %s3201_s20  ;;  %p3208_p5 = scmp.lt.u32.totalorder %s3201_s20, %s4019_s5 }
  0x42   : > { %p3204_p10 = pnand %p3202_p6, %p3454_p13 }
  0x44   : > { %p3205_p3 = pneg %p3204_p10 }
  0x46   : > { %p3210_p7 = pnand %p3208_p5, %p3205_p3 }
  0x48   : > { %3213 = shalt.err (!%p3210_p7)
}
  0x49   : > { %s3214_s11 = scalar_lea.vmem %s253_s16, 1024  ;;  %p3222_p1 = scmp.lt.s32.totalorder %s253_s16, %s253_s16 }
  0x4a   : > { %p3215_p9 = scmp.ne.s32.totalorder %s253_s16, %s3214_s11  ;;  %p3223_p2 = scmp.lt.s32.totalorder %s3214_s11, %s3214_s11 }
  0x4c   : > { %p3217_p12 = pnand %p3215_p9, %p3454_p13  ;;  %p3224_p4 = por %p3223_p2, %p3222_p1 }
  0x4e   : > { %p3218_p0 = pneg %p3217_p12 }
  0x50   : > { %p3225_p8 = pnand %p3224_p4, %p3218_p0 }
  0x52   : > { %3228 = shalt.err (!%p3225_p8)
}
  0x53   : > { %2985 = dma.hbm_to_vmem [thread:$0]  (!%p3438_p11), %s4019_s5, 1024, %s253_s16, [#allocation11], %s3338_s13, %s3338_s13, %s3339_s15  }
  0x54   : > { %s3527_s22 = sadd.s32 1, %s3333_s27   ;;  %s32_s17 = sadd.s32 1, %s3329_s26 }
  0x55   : > { %s29_s12 = ssub.s32 %s3333_s27, %s3527_s22  ;;  %p39_p8 = scmp.ne.s32.totalorder %s3329_s26, %s3325_s25 }
  0x56   : > { %p30_p4 = scmp.eq.s32.totalorder %s29_s12, 0  ;;  %p40_p13 = scmp.eq.s32.totalorder %s3333_s27, 0 }
  0x57   : > { %p2997_p6 = scmp.lt.s32.totalorder %s3333_s27, 2  ;;  %p4032_p3 = scmp.eq.s32.totalorder %s3408_s28, 1 }
  0x58   : > { %s3537_s18 = scalar_select %p30_p4, %s3329_s26, %s32_s17  }
  0x59   : > { %p41_p10 = por %p40_p13, %p39_p8  ;;  %p3541_p5 = por %p4032_p3, %p39_p8 }
  0x5a   : > { %s269_s20 = sand.u32 1, %s3329_s26   ;;  %s2587_s21 = sshll.u32 %s3333_s27, 10 }
  0x5b   : > { %s2449_s16 = sshll.u32 %s269_s20, 6  ;;  %s3550_s23 = scalar_lea.hbm %s4014_s0, %s2587_s21 }
  0x5c   : > { %s273_s29 = scalar_lea.vmem [#allocation4], %s2449_s16  ;;  %p3552_p11 = pnand %p2997_p6, %p41_p10 }
  0x5d   : > { %s280_s10 = sshll.u32 %s273_s29, 4  ;;  %s3558_s14 = scalar_lea.sflag [#allocation5], %s269_s20  ;;  %s3556_s10 = int_to_ptr.vmem [resolvable:$true] %s280_s10 }
  0x5e   : > { %s3229_s8 = scalar_lea.hbm %s3550_s23, 1024  ;;  %p3231_p9 = pneg %p3552_p11 }
  0x5f   : > { %p3230_p7 = scmp.ne.s32.totalorder %s3550_s23, %s3229_s8  ;;  %s3234_s21 = scalar_lea.hbm %s4014_s0, 2048 }
  0x60   : > { %p3235_p1 = scmp.lt.u32.totalorder %s3550_s23, %s4014_s0  ;;  %p3236_p2 = scmp.lt.u32.totalorder %s3234_s21, %s3229_s8 }
  0x61   : > { %p3232_p12 = pnand %p3231_p9, %p3230_p7  ;;  %p3238_p8 = scmp.lt.u32.totalorder %s3229_s8, %s3550_s23 }
  0x62   : > { %p3237_p4 = por %p3236_p2, %p3235_p1 }
  0x63   : > { %p3233_p0 = pneg %p3232_p12 }
  0x64   : > { %p3239_p13 = por %p3238_p8, %p3237_p4 }
  0x66   : > { %p3240_p6 = pnand %p3239_p13, %p3233_p0 }
  0x68   : > { %3243 = shalt.err (!%p3240_p6)
}
  0x69   : > { %s3244_s20 = scalar_lea.vmem %s3556_s10, 1024  ;;  %s3340_s15 = smov [#allocation4]  }
  0x6a   : > { %p3245_p10 = scmp.ne.s32.totalorder %s3556_s10, %s3244_s20  ;;  %s3249_s29 = sshll.u32 %s3340_s15, 4  ;;  %s3250_s29 = int_to_ptr.vmem [resolvable:$false] %s3249_s29 }
  0x6b   : > { %s3251_s12 = scalar_lea.vmem %s3250_s29, 2048  ;;  %p3252_p12 = scmp.lt.s32.totalorder %s3556_s10, %s3250_s29 }
  0x6c   : > { %p3247_p3 = pnand %p3245_p10, %p3231_p9  ;;  %p3253_p1 = scmp.lt.s32.totalorder %s3251_s12, %s3244_s20 }
  0x6e   : > { %p3248_p7 = pneg %p3247_p3  ;;  %p3254_p2 = por %p3253_p1, %p3252_p12 }
  0x70   : > { %p3255_p4 = pnand %p3254_p2, %p3248_p7 }
  0x72   : > { %3258 = shalt.err (!%p3255_p4)
}
  0x73   : > { %s3341_s8 = smov 128   ;;  %s3342_s17 = smov 8  }
  0x74   : > { %2989 = dma.hbm_to_vmem [thread:$0]  (!%p3552_p11), %s3550_s23, 1024, %s3556_s10, %s3558_s14, %s3341_s8, %s3341_s8, %s3342_s17  }
  0x75   : > { %p4035_p9 = scmp.ne.s32.totalorder %s4029_s9, 0 }
  0x76   : > { %s3589_s21 = sand.u32 (!%p4035_p9), 1, %s3325_s25   ;;  %p4036_p0 = scmp.ne.s32.totalorder (!%p4035_p9), %s4026_s30, 0 }
  0x77   : > { %292 = sbr.rel (%p4035_p9) target bundleno = 989 (0x3dd), region = 48  ;;  %s2453_s16 = sshll.u32 (!%p4035_p9), %s3589_s21, 6 }
  0x78   : > { %s295_s13 = scalar_lea.sflag (!%p4035_p9), [#allocation5], %s3589_s21  ;;  %s3593_s20 = scalar_lea.vmem (!%p4035_p9), [#allocation4], %s2453_s16 }
  0x7e   : > { %3304 = dma.done.wait (%p4036_p0), %s295_s13, 1024  }
  0x7f   : > { %3306 = vsyncadd (%p4036_p0), %s295_s13, 4294966272  ;;  %p4037_p11 = scmp.eq.s32.totalorder %s3408_s28, 0 }
  0x81   : > { %3308 = dma.done.wait (%p4037_p11), [#allocation8], 10240   ;;  %p4038_p8 = pmov %p4037_p11 }
  0x83   : > { %3310 = vsyncadd (%p4038_p8), [#allocation8], 4294957056  ;;  %p4039_p13 = pmov %p4038_p8 }
  0x84   : > { %p4040_p6 = pmov %p4038_p8 }
  0x85   : > { %3312 = dma.done.wait (%p4039_p13), [#allocation11], 1024  }
  0x86   : > { %3314 = vsyncadd (%p4040_p6), [#allocation11], 4294966272  ;;  %v3044_v0 = vld [vmem:[#allocation7] sm:$0xff]   ;;  %v3045_v1 = vld [vmem:[#allocation7 + $0x8] sm:$0xff]   ;;  %vm498_vm0 = vcmask 1040384   ;;  %v3343_v34 = vmov 0  }
  0x87   : > { %2800 = vmatprep.subr.bf16.mxu0 %v3044_v0  ;;  %v3046_v2 = vld [vmem:[#allocation7 + $0x10] sm:$0xff]   ;;  %v3047_v3 = vld [vmem:[#allocation7 + $0x18] sm:$0xff]   ;;  %v342_v4 = vld [vmem:[%s3593_s20] sm:$0xff]  ;;  %vm499_vm1 = vsmask.f32 256  ;;  %vm681_vm5 = vcmask 1043456  }
  0x88   : > { %2801 = vmatpush3.bf16.msra.mxu0 %v3044_v0  ;;  %v343_v5 = vld [vmem:[%s3593_s20 + $0x8] sm:$0xff]  ;;  %v3048_v7 = vld [vmem:[#allocation7 + $0x20] sm:$0xff]   ;;  %v3050_v9 = vld [vmem:[#allocation7 + $0x30] sm:$0xff]   ;;  %vm531_vm2 = vsmask.f32 7938  ;;  %vm1004_vm7 = vcmask 1042432  }
  0x89   : > { %2802 = vmatprep.subr.bf16.mxu0 %v3045_v1  ;;  %v350_v6 = vpack.c.bf16 %v343_v5, %v342_v4  ;;  %v3049_v8 = vld [vmem:[#allocation7 + $0x28] sm:$0xff]   ;;  %v3051_v10 = vld [vmem:[#allocation7 + $0x38] sm:$0xff]   ;;  %v344_v11 = vld [vmem:[%s3593_s20 + $0x10] sm:$0xff]  ;;  %vm1005_vm8 = vcmask 1046532   ;;  %vm796_vm9 = vsmask.f32 3328 }
  0x8a   : > { %v345_v12 = vld [vmem:[%s3593_s20 + $0x18] sm:$0xff]  ;;  %v346_v13 = vld [vmem:[%s3593_s20 + $0x20] sm:$0xff]  ;;  %v347_v14 = vld [vmem:[%s3593_s20 + $0x28] sm:$0xff]  ;;  %vm797_vm10 = vsmask.f32 7440  ;;  %s2457_s15 = sshll.u32 %s3589_s21, 5 }
  0x8b   : > { %2816 = vmatprep.mubr.bf16.mxu0 %v350_v6  ;;  %v351_v15 = vpack.c.bf16 %v345_v12, %v344_v11  ;;  %v352_v16 = vpack.c.bf16 %v347_v14, %v346_v13  ;;  %v348_v17 = vld [vmem:[%s3593_s20 + $0x30] sm:$0xff]  ;;  %v349_v18 = vld [vmem:[%s3593_s20 + $0x38] sm:$0xff]  ;;  %vm3615_vm3 = vmand %vm498_vm0, %vm499_vm1  ;;  %s340_s29 = scalar_lea.vmem [#allocation12], %s2457_s15  ;;  %s2596_s8 = sshll.u32 %s3408_s28, 9 }
  0x8c   : > { %2803 = vmatpush3.bf16.msra.mxu0 %v3045_v1  ;;  %v353_v19 = vpack.c.bf16 %v349_v18, %v348_v17  ;;  %v501_v21 = vld [vmem:[#allocation2] sm:$0x1]  ;;  %v510_v22 = vld [vmem:[#allocation2 + $0x18] sm:$0x1]  ;;  %v528_v25 = vld [vmem:[#allocation2 + $0x48] sm:$0x1]  ;;  %s3970_s13 = scalar_lea.hbm %s4021_s7, %s2596_s8 }
  0x8d   : > { %2804 = vmatprep.subr.bf16.mxu0 %v3046_v2  ;;  %v502_v23 = vsel %vm3615_vm3, 0, %v501_v21  ;;  %v511_v24 = vsel %vm3615_vm3, 0, %v510_v22  ;;  %vm3624_vm4 = vmand %vm498_vm0, %vm531_vm2  ;;  %v533_v27 = vld [vmem:[#allocation2 + $0x4] sm:$0x1]  ;;  %v529_v28 = vsel %vm3615_vm3, 0, %v528_v25  ;;  %v3052_v47 = vld [vmem:[#allocation9 + $0x140] sm:$0xff]  }
  0x8e   : > { %503 = vst [vmem:[#allocation2] sm:$0x1] %v502_v23  ;;  %512 = vst [vmem:[#allocation2 + $0x18] sm:$0x1] %v511_v24  ;;  %v534_v29 = vsel %vm3624_vm4, 0, %v533_v27  ;;  %v3055_v56 = vld [vmem:[#allocation9 + $0x148] sm:$0xff]  }
  0x8f   : > { %v542_v30 = vld [vmem:[#allocation2 + $0x1c] sm:$0x1]  ;;  %v560_v31 = vld [vmem:[#allocation2 + $0x4c] sm:$0x1]  ;;  %530 = vst [vmem:[#allocation2 + $0x48] sm:$0x1] %v529_v28  ;;  %vm3697_vm6 = vmand %vm681_vm5, %vm531_vm2 }
  0x90   : > { %2805 = vmatpush3.bf16.msra.mxu0 %v3046_v2  ;;  %535 = vst [vmem:[#allocation2 + $0x4] sm:$0x1] %v534_v29  ;;  %v543_v32 = vsel %vm3624_vm4, 0, %v542_v30  ;;  %v561_v33 = vsel %vm3624_vm4, 0, %v560_v31  ;;  %563 = vst [vmem:[#allocation2] sm:$0xf] %v3343_v34 }
  0x91   : > { %2806 = vmatprep.subr.bf16.mxu0 %v3047_v3  ;;  %v504_v35 = vld [vmem:[#allocation2 + $0x8] sm:$0x1]  ;;  %v536_v36 = vld [vmem:[#allocation2 + $0xc] sm:$0x1]  ;;  %544 = vst [vmem:[#allocation2 + $0x1c] sm:$0x1] %v543_v32  ;;  %vm3744_vm11 = vmor %vm1004_vm7, %vm1005_vm8 }
  0x92   : > { %562 = vst [vmem:[#allocation2 + $0x4c] sm:$0x1] %v561_v33  ;;  %564 = vst [vmem:[#allocation2 + $0x4] sm:$0x1] %v3343_v34  ;;  %v505_v37 = vsel %vm3615_vm3, 0, %v504_v35  ;;  %v537_v38 = vsel %vm3624_vm4, 0, %v536_v36 }
  0x93   : > { %566 = vst [vmem:[#allocation2 + $0x48] sm:$0xf] %v3343_v34  ;;  %v513_v39 = vld [vmem:[#allocation2 + $0x20] sm:$0x1]  ;;  %v545_v40 = vld [vmem:[#allocation2 + $0x24] sm:$0x1]  ;;  %vm3787_vm12 = vmor %vm796_vm9, %vm797_vm10 }
  0x94   : > { %2807 = vmatpush3.bf16.msra.mxu0 %v3047_v3  ;;  %567 = vst [vmem:[#allocation2 + $0x4c] sm:$0x1] %v3343_v34  ;;  %506 = vst [vmem:[#allocation2 + $0x8] sm:$0x1] %v505_v37  ;;  %v514_v41 = vsel %vm3615_vm3, 0, %v513_v39  ;;  %v546_v42 = vsel %vm3624_vm4, 0, %v545_v40 }
  0x95   : > { %2808 = vmatprep.subr.bf16.mxu0 %v3048_v7  ;;  %538 = vst [vmem:[#allocation2 + $0xc] sm:$0x1] %v537_v38  ;;  %v507_v43 = vld [vmem:[#allocation2 + $0x10] sm:$0x1]  ;;  %v539_v44 = vld [vmem:[#allocation2 + $0x14] sm:$0x1] }
  0x96   : > { %515 = vst [vmem:[#allocation2 + $0x20] sm:$0x1] %v514_v41  ;;  %547 = vst [vmem:[#allocation2 + $0x24] sm:$0x1] %v546_v42  ;;  %v508_v45 = vsel %vm3615_vm3, 0, %v507_v43  ;;  %v540_v46 = vsel %vm3624_vm4, 0, %v539_v44 }
  0x97   : > { %509 = vst [vmem:[#allocation2 + $0x10] sm:$0x1] %v508_v45  ;;  %541 = vst [vmem:[#allocation2 + $0x14] sm:$0x1] %v540_v46  ;;  %v516_v48 = vld [vmem:[#allocation2 + $0x28] sm:$0x1] }
  0x98   : > { %2809 = vmatpush3.bf16.msra.mxu0 %v3048_v7  ;;  %v517_v49 = vsel %vm3615_vm3, 0, %v516_v48  ;;  %v548_v50 = vld [vmem:[#allocation2 + $0x2c] sm:$0x1]  ;;  %v522_v51 = vld [vmem:[#allocation2 + $0x38] sm:$0x1]  ;;  %v3056_v4 = vld [vmem:[#allocation9 + $0x108] sm:$0xff]  }
  0x99   : > { %2810 = vmatprep.subr.bf16.mxu0 %v3049_v8  ;;  %v554_v52 = vld [vmem:[#allocation2 + $0x3c] sm:$0x1]  ;;  %518 = vst [vmem:[#allocation2 + $0x28] sm:$0x1] %v517_v49  ;;  %v523_v53 = vsel %vm3615_vm3, 0, %v522_v51  ;;  %v549_v55 = vsel %vm3624_vm4, 0, %v548_v50 }
  0x9a   : > { %v555_v54 = vsel %vm3624_vm4, 0, %v554_v52  ;;  %524 = vst [vmem:[#allocation2 + $0x38] sm:$0x1] %v523_v53  ;;  %550 = vst [vmem:[#allocation2 + $0x2c] sm:$0x1] %v549_v55  ;;  %v3053_v59 = vld [vmem:[#allocation9 + $0x100] sm:$0xff]  }
  0x9b   : > { %556 = vst [vmem:[#allocation2 + $0x3c] sm:$0x1] %v555_v54  ;;  %v525_v57 = vld [vmem:[#allocation2 + $0x40] sm:$0x1]  ;;  %v557_v58 = vld [vmem:[#allocation2 + $0x44] sm:$0x1]  ;;  %2632 = vmatprep.subr.bf16.mxu1 %v3053_v59 }
  0x9c   : > { %2811 = vmatpush3.bf16.msra.mxu0 %v3049_v8  ;;  %v526_v60 = vsel %vm3615_vm3, 0, %v525_v57  ;;  %v558_v61 = vsel %vm3624_vm4, 0, %v557_v58  ;;  %v3054_v62 = vld [vmem:[#allocation9 + $0xc0] sm:$0xff]   ;;  %v3058_v63 = vld [vmem:[#allocation9 + $0x150] sm:$0xff]   ;;  %v519_v0 = vld [vmem:[#allocation2 + $0x30] sm:$0x1] }
  0x9d   : > { %2812 = vmatprep.subr.bf16.mxu0 %v3050_v9  ;;  %527 = vst [vmem:[#allocation2 + $0x40] sm:$0x1] %v526_v60  ;;  %559 = vst [vmem:[#allocation2 + $0x44] sm:$0x1] %v558_v61  ;;  %v551_v1 = vld [vmem:[#allocation2 + $0x34] sm:$0x1]  ;;  %2633 = vmatpush3.bf16.msra.mxu1 %v3054_v62 }
  0x9e   : > { %v520_v2 = vsel %vm3615_vm3, 0, %v519_v0  ;;  %v552_v3 = vsel %vm3624_vm4, 0, %v551_v1  ;;  %v3057_v5 = vld [vmem:[#allocation9 + $0xc8] sm:$0xff]   ;;  %2634 = vmatprep.subr.bf16.mxu1 %v3056_v4  ;;  %v3061_v6 = vld [vmem:[#allocation9 + $0x158] sm:$0xff]   ;;  %v3059_v7 = vld [vmem:[#allocation9 + $0x110] sm:$0xff]   ;;  %s2341_s12 = sshll.u32 %s340_s29, 4  ;;  %s3965_s12 = int_to_ptr.vmem [resolvable:$true] %s2341_s12 }
  0x9f   : > { %521 = vst [vmem:[#allocation2 + $0x30] sm:$0x1] %v520_v2  ;;  %553 = vst [vmem:[#allocation2 + $0x34] sm:$0x1] %v552_v3  ;;  %v3060_v8 = vld [vmem:[#allocation9 + $0xd0] sm:$0xff]   ;;  %v3063_v11 = vld [vmem:[#allocation9 + $0xd8] sm:$0xff]  }
  0xa0   : > { %2813 = vmatpush3.bf16.msra.mxu0 %v3050_v9  ;;  %v3064_v9 = vld [vmem:[#allocation9 + $0x160] sm:$0xff]   ;;  %v3067_v12 = vld [vmem:[#allocation9 + $0x168] sm:$0xff]   ;;  %v3071_v18 = vld [vmem:[#allocation9 + $0x130] sm:$0xff]   ;;  %s3259_s28 = scalar_lea.vmem %s3965_s12, 512  ;;  %s3344_s30 = smov [#allocation12]  }
  0xa1   : > { %2814 = vmatprep.subr.bf16.mxu0 %v3051_v10  ;;  %2635 = vmatpush3.bf16.msra.mxu1 %v3057_v5  ;;  %v3065_v13 = vld [vmem:[#allocation9 + $0x120] sm:$0xff]   ;;  %v3069_v17 = vld [vmem:[#allocation9 + $0xe8] sm:$0xff]   ;;  %v3073_v21 = vld [vmem:[#allocation9 + $0x178] sm:$0xff]   ;;  %p3260_p10 = scmp.ne.s32.totalorder %s3965_s12, %s3259_s28  ;;  %s3263_s9 = sshll.u32 %s3344_s30, 4  ;;  %s3264_s9 = int_to_ptr.vmem [resolvable:$false] %s3263_s9 }
  0xa2   : > { %2636 = vmatprep.subr.bf16.mxu1 %v3059_v7  ;;  %v3066_v14 = vld [vmem:[#allocation9 + $0xe0] sm:$0xff]   ;;  %v3074_v22 = vld [vmem:[#allocation9 + $0x138] sm:$0xff]   ;;  %v695_v58 = vld [vmem:[#allocation2 + $0x18] sm:$0xf]  ;;  %s3265_s23 = scalar_lea.vmem %s3264_s9, 1024  ;;  %p3266_p12 = scmp.lt.s32.totalorder %s3965_s12, %s3264_s9 }
  0xa3   : > { %v3664_v23 = vld [vmem:[#allocation9 + $0x80] sm:$0xff]   ;;  %v3075_v24 = vld [vmem:[#allocation9 + $0xf8] sm:$0xff]   ;;  %v698_v59 = vld [vmem:[#allocation2 + $0x1c] sm:$0x1]  ;;  %p3261_p3 = pnand %p3260_p10, %p3541_p5  ;;  %p3267_p1 = scmp.lt.s32.totalorder %s3265_s23, %s3259_s28 }
  0xa4   : > { %2815 = vmatpush3.bf16.msra.mxu0 %v3051_v10  ;;  %v3062_v10 = vld [vmem:[#allocation9 + $0x118] sm:$0xff]   ;;  %v3077_v25 = vld [vmem:[#allocation9 + $0x40] sm:$0xff]  }
  0xa5   : > { %2824 = vmatprep.subr.bf16.mxu0 %v3052_v47  ;;  %2637 = vmatpush3.bf16.msra.mxu1 %v3060_v8  ;;  %v776_v26 = vld [vmem:[#allocation2] sm:$0xf]  ;;  %v3676_v36 = vld [vmem:[#allocation2 + $0x4] sm:$0x1]  ;;  %v3686_v45 = vld [vmem:[#allocation2 + $0x48] sm:$0xf]  ;;  %p3262_p7 = pneg %p3261_p3  ;;  %p3268_p2 = por %p3267_p1, %p3266_p12 }
  0xa6   : > { %2638 = vmatprep.subr.bf16.mxu1 %v3062_v10  ;;  %v3670_v27 = vld [vmem:[%s4016_s2] ss:$0 sm:$0xff]  ;;  %v800_v28 = vshrl.u32 %v776_v26, 16  ;;  %v803_v29 = vshll.u32 %v776_v26, 16  ;;  %v3674_v35 = vld [vmem:[#allocation2] sm:$0xe] }
  0xa7   : > { %2817 = vmatmul.mubr.bf16.vlgmr.msra.gmra.mrb[0].mxu0 %v351_v15  ;;  %v3070_v15 = vld [vmem:[#allocation9 + $0x170] sm:$0xff]   ;;  %v3679_v40 = vld [vmem:[#allocation2 + $0x4] sm:$0x1]  ;;  %v2485_v48 = vrot.slane %v3674_v35, 9  ;;  %v1009_v51 = vrot.slane %v3676_v36, 5  ;;  %p3269_p4 = pnand %p3268_p2, %p3262_p7 }
  0xa8   : > { %2820 = vmatprep.mubr.bf16.mxu0 %v352_v16  ;;  %2825 = vmatpush3.bf16.msra.mxu0 %v3052_v47  ;;  %v3068_v16 = vld [vmem:[#allocation9 + $0x128] sm:$0xff]   ;;  %v3681_v41 = vrot.slane %v800_v28, 4  ;;  %v3683_v42 = vrot.slane %v803_v29, 5  ;;  %v809_v52 = vshll.u32 %v3679_v40, 16  ;;  %v683_v1 = vld [vmem:[#allocation2 + $0x8] sm:$0xf] }
  0xa9   : > { %2826 = vmatprep.subr.bf16.mxu0 %v3055_v56  ;;  %2639 = vmatpush3.bf16.msra.mxu1 %v3063_v11  ;;  %v686_v8 = vld [vmem:[#allocation2 + $0xc] sm:$0x1] }
  0xaa   : > { %2640 = vmatprep.subr.bf16.mxu1 %v3065_v13  ;;  %v806_v55 = vor.u32 %v3683_v42, %v3681_v41  ;;  %v929_v42 = vshll.u32 %v3686_v45, 16 }
  0xac   : > { %2827 = vmatpush3.bf16.msra.mxu0 %v3055_v56  ;;  %v926_v56 = vshrl.u32 %v3686_v45, 16 }
  0xad   : > { %2828 = vmatprep.subr.bf16.mxu0 %v3058_v63  ;;  %2641 = vmatpush3.bf16.msra.mxu1 %v3066_v14 }
  0xae   : > { %2642 = vmatprep.subr.bf16.mxu1 %v3068_v16  ;;  %v701_v16 = vld [vmem:[#allocation2 + $0x20] sm:$0xf]  ;;  %v3737_v41 = vrot.slane %v926_v56, 4 }
  0xaf   : > { %2821 = vmatmul.mubr.bf16.gmra.mrb[4].mxu0 %v353_v19  ;;  %v3072_v19 = vld [vmem:[#allocation9 + $0xf0] sm:$0xff]  }
  0xb0   : > { %2829 = vmatpush3.bf16.msra.mxu0 %v3058_v63 }
  0xb1   : > { %2830 = vmatprep.subr.bf16.mxu0 %v3061_v6  ;;  %2643 = vmatpush3.bf16.msra.mxu1 %v3069_v17 }
  0xb2   : > { %2644 = vmatprep.subr.bf16.mxu1 %v3071_v18 }
  0xb4   : > { %2831 = vmatpush3.bf16.msra.mxu0 %v3061_v6 }
  0xb5   : > { %2832 = vmatprep.subr.bf16.mxu0 %v3064_v9  ;;  %2645 = vmatpush3.bf16.msra.mxu1 %v3072_v19 }
  0xb6   : > { %2646 = vmatprep.subr.bf16.mxu1 %v3074_v22  ;;  %v704_v22 = vld [vmem:[#allocation2 + $0x24] sm:$0x1] }
  0xb8   : > { %2833 = vmatpush3.bf16.msra.mxu0 %v3064_v9 }
  0xb9   : > { %2834 = vmatprep.subr.bf16.mxu0 %v3067_v12  ;;  %2647 = vmatpush3.bf16.msra.mxu1 %v3075_v24 }
  0xba   : > { %2684 = vmatprep.subr.bf16.mxu1 %v3077_v25 }
  0xbc   : > { %2835 = vmatpush3.bf16.msra.mxu0 %v3067_v12 }
  0xbd   : > { %2836 = vmatprep.subr.bf16.mxu0 %v3070_v15 }
  0xc0   : > { %2837 = vmatpush3.bf16.msra.mxu0 %v3070_v15 }
  0xc1   : > { %2838 = vmatprep.subr.bf16.mxu0 %v3073_v21 }
  0xc4   : > { %2839 = vmatpush3.bf16.msra.mxu0 %v3073_v21 }
  0xc5   : > { %2848 = vmatprep.subr.bf16.mxu0 %v3664_v23 }
 0x17a   : > { %v2818_v30 = vpop.f32.mrb[0].mxu0 }
 0x17b   : > { %v468_v31 = vadd.f32 %v2818_v30, %v3670_v27  ;;  %v459_v32 = vpop.f32.mrb[1].mxu0 }
 0x17c   : > { %v460_v33 = vadd.f32 %v3670_v27, %v459_v32  ;;  %v2819_v34 = vpop.f32.mrb[2].mxu0  ;;  %v692_v32 = vld [vmem:[#allocation2 + $0x14] sm:$0x1] }
 0x17d   : > { %v492_v37 = vmax.f32 %v468_v31, 0.0  ;;  %v471_v38 = vadd.f32 %v2819_v34, %v3670_v27  ;;  %v462_v39 = vpop.f32.mrb[3].mxu0  ;;  %v689_v31 = vld [vmem:[#allocation2 + $0x10] sm:$0xf] }
 0x17e   : > { %v490_v43 = vmax.f32 %v460_v33, 0.0  ;;  %v463_v44 = vadd.f32 %v3670_v27, %v462_v39 }
 0x17f   : > { %v2590_v46 = vpack.c.bf16 %v492_v37, %v492_v37  ;;  %v493_v47 = vmax.f32 %v471_v38, 0.0 }
 0x180   : > { %v2588_v49 = vpack.c.bf16 %v490_v43, %v490_v43  ;;  %v491_v50 = vmax.f32 %v463_v44, 0.0 }
 0x181   : > { %v617_v53 = vshrl.u32 %v2590_v46, 16  ;;  %v2591_v54 = vpack.c.bf16 %v493_v47, %v493_v47  ;;  %v620_v57 = vshll.u32 %v2590_v46, 16 }
 0x182   : > { %v601_v60 = vshrl.u32 %v2588_v49, 16  ;;  %v604_v61 = vshll.u32 %v2588_v49, 16  ;;  %v2589_v62 = vpack.c.bf16 %v491_v50, %v491_v50  ;;  %v2822_v63 = vpop.f32.mrb[4].mxu0 }
 0x183   : > { %v619_v0 = vrot.slane %v617_v53, 7  ;;  %v625_v2 = vshrl.u32 %v2591_v54, 16  ;;  %v628_v3 = vshll.u32 %v2591_v54, 16  ;;  %v484_v4 = vadd.f32 %v2822_v63, %v3670_v27  ;;  %v475_v5 = vpop.f32.mrb[5].mxu0  ;;  %v3720_v54 = vld [vmem:[#allocation2 + $0x48] sm:$0xe] }
 0x184   : > { %v603_v7 = vrot.slane %v601_v60, 7  ;;  %v609_v9 = vshrl.u32 %v2589_v62, 16  ;;  %v612_v10 = vshll.u32 %v2589_v62, 16  ;;  %v476_v11 = vadd.f32 %v3670_v27, %v475_v5  ;;  %v2823_v12 = vpop.f32.mrb[6].mxu0  ;;  %v707_v62 = vld [vmem:[#allocation2 + $0x28] sm:$0xf] }
 0x185   : > { %v622_v13 = vor.u32 %v620_v57, %v619_v0  ;;  %v623_v14 = vrot.slane %v619_v0, 4  ;;  %v627_v15 = vrot.slane %v625_v2, 7  ;;  %v496_v17 = vmax.f32 %v484_v4, 0.0  ;;  %v478_v18 = vpop.f32.mrb[7].mxu0  ;;  %v3722_v57 = vld [vmem:[#allocation2 + $0x4c] sm:$0x1] }
 0x186   : > { %v606_v19 = vor.u32 %v604_v61, %v603_v7  ;;  %v607_v21 = vrot.slane %v603_v7, 4  ;;  %v611_v24 = vrot.slane %v609_v9, 7  ;;  %v494_v25 = vmax.f32 %v476_v11, 0.0  ;;  %v710_v9 = vld [vmem:[#allocation2 + $0x2c] sm:$0x1] }
 0x187   : > { %v696_v26 = vsel %vm3697_vm6, %v622_v13, %v695_v58  ;;  %v699_v28 = vsel %vm3615_vm3, %v623_v14, %v698_v59  ;;  %v630_v29 = vor.u32 %v628_v3, %v627_v15  ;;  %v631_v30 = vrot.slane %v627_v15, 4  ;;  %v719_v3 = vld [vmem:[#allocation2 + $0x38] sm:$0xf]  ;;  %v3740_v13 = vld [vmem:[#allocation2 + $0x4c] sm:$0x1] }
 0x188   : > { %697 = vst [vmem:[#allocation2 + $0x18] sm:$0xf] %v696_v26  ;;  %700 = vst [vmem:[#allocation2 + $0x1c] sm:$0x1] %v699_v28  ;;  %v684_v33 = vsel %vm3697_vm6, %v606_v19, %v683_v1  ;;  %v687_v34 = vsel %vm3615_vm3, %v607_v21, %v686_v8  ;;  %v614_v37 = vor.u32 %v612_v10, %v611_v24  ;;  %v615_v38 = vrot.slane %v611_v24, 4 }
 0x189   : > { %685 = vst [vmem:[#allocation2 + $0x8] sm:$0xf] %v684_v33  ;;  %688 = vst [vmem:[#allocation2 + $0xc] sm:$0x1] %v687_v34  ;;  %v702_v39 = vsel %vm3697_vm6, %v630_v29, %v701_v16  ;;  %v705_v43 = vsel %vm3615_vm3, %v631_v30, %v704_v22  ;;  %v2594_v44 = vpack.c.bf16 %v496_v17, %v496_v17  ;;  %v3727_v1 = vrot.slane %v806_v55, 4 }
 0x18a   : > { %v2592_v46 = vpack.c.bf16 %v494_v25, %v494_v25  ;;  %703 = vst [vmem:[#allocation2 + $0x20] sm:$0xf] %v702_v39  ;;  %706 = vst [vmem:[#allocation2 + $0x24] sm:$0x1] %v705_v43  ;;  %v690_v47 = vsel %vm3697_vm6, %v614_v37, %v689_v31  ;;  %v693_v49 = vsel %vm3615_vm3, %v615_v38, %v692_v32  ;;  %v2494_v5 = vrot.slane %v3720_v54, 9 }
 0x18b   : > { %v487_v50 = vadd.f32 %v2823_v12, %v3670_v27  ;;  %v479_v53 = vadd.f32 %v3670_v27, %v478_v18  ;;  %691 = vst [vmem:[#allocation2 + $0x10] sm:$0xf] %v690_v47  ;;  %694 = vst [vmem:[#allocation2 + $0x14] sm:$0x1] %v693_v49  ;;  %v649_v58 = vshrl.u32 %v2594_v44, 16  ;;  %v652_v59 = vshll.u32 %v2594_v44, 16 }
 0x18c   : > { %v633_v60 = vshrl.u32 %v2592_v46, 16  ;;  %v636_v61 = vshll.u32 %v2592_v46, 16  ;;  %v3731_v27 = vrot.slane %v809_v52, 5  ;;  %v1045_v7 = vrot.slane %v3722_v57, 5  ;;  %v722_v8 = vld [vmem:[#allocation2 + $0x3c] sm:$0x1] }
 0x18d   : > { %v497_v63 = vmax.f32 %v487_v50, 0.0  ;;  %v495_v0 = vmax.f32 %v479_v53, 0.0  ;;  %v651_v2 = vrot.slane %v649_v58, 7  ;;  %v725_v30 = vld [vmem:[#allocation2 + $0x40] sm:$0xf]  ;;  %v3764_v37 = vrot.slane %v929_v42, 5 }
 0x18e   : > { %v635_v4 = vrot.slane %v633_v60, 7  ;;  %v728_v31 = vld [vmem:[#allocation2 + $0x44] sm:$0x1]  ;;  %v713_v32 = vld [vmem:[#allocation2 + $0x30] sm:$0xf]  ;;  %v935_v38 = vshll.u32 %v3740_v13, 16  ;;  %v1010_v47 = vsel %vm3744_vm11, %v2485_v48, %v1009_v51 }
 0x18f   : > { %v2595_v10 = vpack.c.bf16 %v497_v63, %v497_v63  ;;  %v2593_v11 = vpack.c.bf16 %v495_v0, %v495_v0  ;;  %v654_v40 = vor.u32 %v652_v59, %v651_v2  ;;  %v655_v52 = vrot.slane %v651_v2, 4  ;;  %v716_v33 = vld [vmem:[#allocation2 + $0x34] sm:$0x1]  ;;  %v970_v34 = vld [vmem:[#allocation2 + $0x18] sm:$0xe] }
 0x190   : > { %v638_v55 = vor.u32 %v636_v61, %v635_v4  ;;  %v639_v12 = vrot.slane %v635_v4, 4  ;;  %v966_v18 = vld [vmem:[#allocation2 + $0x8] sm:$0xe]  ;;  %v967_v44 = vld [vmem:[#allocation2 + $0xc] sm:$0x1]  ;;  %v2488_v4 = vrot.slane %v970_v34, 9 }
 0x191   : > { %v657_v14 = vshrl.u32 %v2595_v10, 16  ;;  %v660_v15 = vshll.u32 %v2595_v10, 16  ;;  %v641_v16 = vshrl.u32 %v2593_v11, 16  ;;  %v644_v17 = vshll.u32 %v2593_v11, 16  ;;  %v3748_v56 = vld [vmem:[#allocation2 + $0x20] sm:$0xf] }
 0x192   : > { %v3750_v45 = vld [vmem:[#allocation2 + $0x20] sm:$0xe]  ;;  %v3752_v21 = vld [vmem:[#allocation2 + $0x24] sm:$0x1]  ;;  %v720_v22 = vsel %vm3697_vm6, %v654_v40, %v719_v3  ;;  %v723_v24 = vsel %vm3615_vm3, %v655_v52, %v722_v8  ;;  %v708_v25 = vsel %vm3697_vm6, %v638_v55, %v707_v62  ;;  %v711_v26 = vsel %vm3615_vm3, %v639_v12, %v710_v9  ;;  %v968_v46 = vld [vmem:[#allocation2 + $0x10] sm:$0xe] }
 0x193   : > { %v856_v28 = vshrl.u32 %v3748_v56, 16  ;;  %v859_v29 = vshll.u32 %v3748_v56, 16  ;;  %721 = vst [vmem:[#allocation2 + $0x38] sm:$0xf] %v720_v22  ;;  %724 = vst [vmem:[#allocation2 + $0x3c] sm:$0x1] %v723_v24 }
 0x194   : > { %709 = vst [vmem:[#allocation2 + $0x28] sm:$0xf] %v708_v25  ;;  %712 = vst [vmem:[#allocation2 + $0x2c] sm:$0x1] %v711_v26  ;;  %v659_v39 = vrot.slane %v657_v14, 7  ;;  %v643_v43 = vrot.slane %v641_v16, 7 }
 0x195   : > { %v2489_v49 = vrot.slane %v3750_v45, 9  ;;  %v1025_v50 = vrot.slane %v3752_v21, 5  ;;  %v969_v53 = vld [vmem:[#allocation2 + $0x14] sm:$0x1]  ;;  %v2486_v58 = vrot.slane %v966_v18, 9  ;;  %v1013_v59 = vrot.slane %v967_v44, 5 }
 0x196   : > { %v662_v60 = vor.u32 %v660_v15, %v659_v39  ;;  %v663_v61 = vrot.slane %v659_v39, 4  ;;  %v646_v62 = vor.u32 %v644_v17, %v643_v43  ;;  %v647_v63 = vrot.slane %v643_v43, 4  ;;  %v971_v0 = vld [vmem:[#allocation2 + $0x1c] sm:$0x1]  ;;  %v778_v2 = vld [vmem:[#allocation2 + $0x8] sm:$0xf] }
 0x197   : > { %v1014_v36 = vsel %vm3744_vm11, %v2486_v58, %v1013_v59  ;;  %v2487_v35 = vrot.slane %v968_v46, 9  ;;  %v1017_v3 = vrot.slane %v969_v53, 5  ;;  %v782_v11 = vld [vmem:[#allocation2 + $0x18] sm:$0xf]  ;;  %v1021_v42 = vrot.slane %v971_v0, 5  ;;  %v3102_v10 = vld [vmem:[#allocation9 + $0xb8] sm:$0xff]  }
 0x198   : > { %v726_v48 = vsel %vm3697_vm6, %v662_v60, %v725_v30  ;;  %v729_v51 = vsel %vm3615_vm3, %v663_v61, %v728_v31  ;;  %v714_v8 = vsel %vm3697_vm6, %v646_v62, %v713_v32  ;;  %v717_v9 = vsel %vm3615_vm3, %v647_v63, %v716_v33  ;;  %v3793_v6 = vld [vmem:[#allocation2] ss:$8 sps:$4 sm:$0xff]   ;;  %v780_v55 = vld [vmem:[#allocation2 + $0x10] sm:$0xf]  ;;  %v779_v14 = vld [vmem:[#allocation2 + $0xc] sm:$0x1] }
 0x199   : > { %727 = vst [vmem:[#allocation2 + $0x40] sm:$0xf] %v726_v48  ;;  %730 = vst [vmem:[#allocation2 + $0x44] sm:$0x1] %v729_v51  ;;  %v3791_v40 = vcombine.low %v1010_v47, %v1014_v36  ;;  %v814_v52 = vshrl.u32 %v778_v2, 16  ;;  %v1018_v12 = vsel %vm3744_vm11, %v2487_v35, %v1017_v3  ;;  %v812_v18 = vsel %vm3787_vm12, %v3727_v1, %v3731_v27 }
 0x19a   : > { %715 = vst [vmem:[#allocation2 + $0x30] sm:$0xf] %v714_v8  ;;  %718 = vst [vmem:[#allocation2 + $0x34] sm:$0x1] %v717_v9  ;;  %v3797_v15 = vld [vmem:[#allocation2 + $0x38] sm:$0xf]  ;;  %v1026_v45 = vsel %vm3744_vm11, %v2489_v49, %v1025_v50  ;;  %v3813_v21 = vsel %vm3744_vm11, %v2494_v5, %v1045_v7  ;;  %v1022_v25 = vsel %vm3744_vm11, %v2488_v4, %v1021_v42 }
 0x19b   : > { %v974_v20 = vld [vmem:[#allocation2 + $0x28] sm:$0xe]  ;;  %v975_v16 = vld [vmem:[#allocation2 + $0x2c] sm:$0x1]  ;;  %1067 = vst [vmem:[#allocation3 + $0x10] sm:$0xff] %v3791_v40  ;;  %771 = vst [vmem:[#allocation3] sm:$0xff] %v3793_v6  ;;  %v3821_v30 = vcombine.low %v1018_v12, %v1022_v25 }
 0x19c   : > { %v781_v17 = vld [vmem:[#allocation2 + $0x14] sm:$0x1]  ;;  %v2490_v22 = vrot.slane %v974_v20, 9  ;;  %v1029_v24 = vrot.slane %v975_v16, 5  ;;  %v816_v26 = vrot.slane %v814_v52, 4  ;;  %v817_v31 = vshll.u32 %v778_v2, 16 }
 0x19d   : > { %v3817_v1 = vld [vmem:[#allocation2 + $0x10] ss:$8 sps:$4 sm:$0xff]   ;;  %v3819_v27 = vld [vmem:[#allocation2 + $0x28] sm:$0xf]  ;;  %v823_v57 = vshll.u32 %v779_v14, 16  ;;  %v828_v32 = vshrl.u32 %v780_v55, 16 }
 0x19e   : > { %v898_v54 = vshrl.u32 %v3797_v15, 16  ;;  %v831_v33 = vshll.u32 %v780_v55, 16  ;;  %v842_v5 = vshrl.u32 %v782_v11, 16  ;;  %v845_v7 = vshll.u32 %v782_v11, 16  ;;  %v783_v39 = vld [vmem:[#allocation2 + $0x1c] sm:$0x1] }
 0x19f   : > { %v901_v34 = vshll.u32 %v3797_v15, 16  ;;  %v819_v43 = vrot.slane %v817_v31, 5  ;;  %v830_v44 = vrot.slane %v828_v32, 4  ;;  %v837_v46 = vshll.u32 %v781_v17, 16  ;;  %v978_v4 = vld [vmem:[#allocation2 + $0x38] sm:$0xe] }
 0x1a0   : > { %v870_v47 = vshrl.u32 %v3819_v27, 16  ;;  %v873_v49 = vshll.u32 %v3819_v27, 16  ;;  %v833_v53 = vrot.slane %v831_v33, 5  ;;  %v1030_v58 = vsel %vm3744_vm11, %v2490_v22, %v1029_v24  ;;  %v979_v48 = vld [vmem:[#allocation2 + $0x3c] sm:$0x1]  ;;  %v3081_v16 = vld [vmem:[#allocation9 + $0x88] sm:$0xff]  }
 0x1a1   : > { %v3827_v50 = vld [vmem:[#allocation2 + $0x30] sm:$0xf]  ;;  %v1218_v59 = vrot.slane %v3821_v30, 4  ;;  %v820_v60 = vor.u32 %v819_v43, %v816_v26  ;;  %v825_v61 = vrot.slane %v823_v57, 5  ;;  %v844_v62 = vrot.slane %v842_v5, 4 }
 0x1a2   : > { %v1134_v63 = vld [vmem:[#allocation3 + $0x10] sm:$0xf0]  ;;  %v834_v0 = vor.u32 %v833_v53, %v830_v44  ;;  %v847_v2 = vrot.slane %v845_v7, 5  ;;  %v851_v36 = vshll.u32 %v783_v39, 16  ;;  %v3832_v35 = vcombine.low %v1026_v45, %v1030_v58  ;;  %v976_v3 = vld [vmem:[#allocation2 + $0x30] sm:$0xe] }
 0x1a3   : > { %v884_v51 = vshrl.u32 %v3827_v50, 16  ;;  %v1217_v8 = vrot.slane %v1134_v63, 4  ;;  %v821_v9 = vrot.slane %v820_v60, 4  ;;  %v839_v11 = vrot.slane %v837_v46, 5  ;;  %v785_v42 = vld [vmem:[#allocation2 + $0x24] sm:$0x1] }
 0x1a4   : > { %v887_v52 = vshll.u32 %v3827_v50, 16  ;;  %v835_v55 = vrot.slane %v834_v0, 4  ;;  %v848_v20 = vor.u32 %v847_v2, %v844_v62  ;;  %v1224_v12 = vrot.slane %v3832_v35, 4  ;;  %v977_v14 = vld [vmem:[#allocation2 + $0x34] sm:$0x1]  ;;  %v3084_v62 = vld [vmem:[#allocation9 + $0x90] sm:$0xff]  }
 0x1a5   : > { %v1219_v17 = vsel %vm681_vm5, %v1217_v8, %v1218_v59  ;;  %v826_v45 = vsel %vm3787_vm12, %v821_v9, %v825_v61  ;;  %v853_v22 = vrot.slane %v851_v36, 5  ;;  %v3840_v24 = vld [vmem:[#allocation3] sm:$0xf0]  ;;  %v2491_v25 = vrot.slane %v976_v3, 9  ;;  %v787_v26 = vld [vmem:[#allocation2 + $0x2c] sm:$0x1] }
 0x1a6   : > { %2840 = vmatprep.mubr.bf16.mxu0 %v1219_v17  ;;  %v840_v27 = vsel %vm3787_vm12, %v835_v55, %v839_v11  ;;  %v849_v31 = vrot.slane %v848_v20, 4  ;;  %v3844_v57 = vcombine.low %v812_v18, %v826_v45  ;;  %v1225_v32 = vsel %vm681_vm5, %v1218_v59, %v1224_v12  ;;  %v980_v33 = vld [vmem:[#allocation2 + $0x40] sm:$0xe]  ;;  %v981_v58 = vld [vmem:[#allocation2 + $0x44] sm:$0x1] }
 0x1a7   : > { %2841 = vmatmul.mubr.bf16.vlgmr.msra.gmra.mrb[8].mxu0 %v1225_v32  ;;  %v1033_v5 = vrot.slane %v977_v14, 5  ;;  %v2492_v7 = vrot.slane %v978_v4, 9  ;;  %v1037_v39 = vrot.slane %v979_v48, 5  ;;  %v858_v43 = vrot.slane %v856_v28, 4  ;;  %v3849_v44 = vld [vmem:[#allocation2 + $0x20] ss:$8 sps:$4 sm:$0xff]  }
 0x1a8   : > { %v854_v46 = vsel %vm3787_vm12, %v849_v31, %v853_v22  ;;  %959 = vst [vmem:[#allocation3 + $0x8] sm:$0xff] %v3844_v57  ;;  %2849 = vmatpush3.bf16.msra.mxu0 %v3664_v23  ;;  %v861_v18 = vrot.slane %v859_v29, 5  ;;  %v865_v50 = vshll.u32 %v785_v42, 16  ;;  %v872_v53 = vrot.slane %v870_v47, 4  ;;  %v3866_v0 = vld [vmem:[#allocation2 + $0x30] ss:$8 sps:$4 sm:$0xff]  }
 0x1a9   : > { %v3857_v59 = vcombine.low %v840_v27, %v854_v46  ;;  %v1034_v28 = vsel %vm3744_vm11, %v2491_v25, %v1033_v5  ;;  %v1038_v60 = vsel %vm3744_vm11, %v2492_v7, %v1037_v39  ;;  %2850 = vmatprep.subr.bf16.mxu0 %v3081_v16  ;;  %v875_v61 = vrot.slane %v873_v49, 5  ;;  %v789_v3 = vld [vmem:[#allocation2 + $0x34] sm:$0x1]  ;;  %v791_v4 = vld [vmem:[#allocation2 + $0x3c] sm:$0x1]  ;;  %v3088_v17 = vld [vmem:[#allocation9 + $0x98] sm:$0xff]  }
 0x1aa   : > { %v1211_v63 = vrot.slane %v3840_v24, 4  ;;  %v3864_v23 = vcombine.low %v1034_v28, %v1038_v60  ;;  %v862_v56 = vor.u32 %v861_v18, %v858_v43  ;;  %v879_v29 = vshll.u32 %v787_v26, 16  ;;  %v3873_v45 = vld [vmem:[#allocation2 + $0x40] ss:$8 sps:$4 sm:$0xff]   ;;  %v793_v39 = vld [vmem:[#allocation2 + $0x44] sm:$0x1] }
 0x1ab   : > { %v876_v47 = vor.u32 %v875_v61, %v872_v53  ;;  %v2493_v2 = vrot.slane %v980_v33, 9  ;;  %v1041_v36 = vrot.slane %v981_v58, 5  ;;  %v932_v48 = vor.u32 %v3764_v37, %v3737_v41  ;;  %v792_v22 = vld [vmem:[#allocation2 + $0x40] sm:$0xf]  ;;  %775 = vst [vmem:[#allocation3 + $0x60] sm:$0xff] %v3873_v45  ;;  %v3082_v46 = vld [vmem:[#allocation9 + $0x48] sm:$0xff]  }
 0x1ac   : > { %v1230_v8 = vrot.slane %v3864_v23, 4  ;;  %2851 = vmatpush3.bf16.msra.mxu0 %v3081_v16  ;;  %v863_v49 = vrot.slane %v862_v56, 4  ;;  %v867_v9 = vrot.slane %v865_v50, 5  ;;  %v881_v11 = vrot.slane %v879_v29, 5  ;;  %v3091_v58 = vld [vmem:[#allocation9 + $0xa0] sm:$0xff]   ;;  %v3083_v29 = vld [vmem:[#allocation9 + $0x8] sm:$0xff]  }
 0x1ad   : > { %v877_v42 = vrot.slane %v876_v47, 4  ;;  %2852 = vmatprep.subr.bf16.mxu0 %v3084_v62  ;;  %v1042_v55 = vsel %vm3744_vm11, %v2493_v2, %v1041_v36  ;;  %v886_v20 = vrot.slane %v884_v51, 4  ;;  %v889_v14 = vrot.slane %v887_v52, 5 }
 0x1ae   : > { %v1215_v24 = vrot.slane %v3857_v59, 4  ;;  %v1231_v41 = vsel %vm681_vm5, %v1224_v12, %v1230_v8  ;;  %v868_v37 = vsel %vm3787_vm12, %v863_v49, %v867_v9  ;;  %v3882_v16 = vcombine.low %v1042_v55, %v3813_v21  ;;  %v3080_v12 = vld [vmem:[#allocation9] sm:$0xff]  }
 0x1af   : > { %v1133_v19 = vld [vmem:[#allocation3 + $0x8] sm:$0xf0]  ;;  %2844 = vmatprep.mubr.bf16.mxu0 %v1231_v41  ;;  %v882_v51 = vsel %vm3787_vm12, %v877_v42, %v881_v11  ;;  %v890_v52 = vor.u32 %v889_v14, %v886_v20  ;;  %v893_v25 = vshll.u32 %v789_v3, 16  ;;  %v900_v26 = vrot.slane %v898_v54, 4 }
 0x1b0   : > { %v1214_v27 = vrot.slane %v1133_v19, 4  ;;  %v3889_v31 = vcombine.low %v868_v37, %v882_v51  ;;  %1071 = vst [vmem:[#allocation3 + $0x70] sm:$0xff] %v3882_v16  ;;  %2853 = vmatpush3.bf16.msra.mxu0 %v3084_v62  ;;  %v903_v21 = vrot.slane %v901_v34, 5  ;;  %v907_v32 = vshll.u32 %v791_v4, 16  ;;  %v3085_v3 = vld [vmem:[#allocation9 + $0x50] sm:$0xff]  }
 0x1b1   : > { %v1212_v33 = vrot.slane %v3817_v1, 4  ;;  %v891_v5 = vrot.slane %v890_v52, 4  ;;  %v895_v7 = vrot.slane %v893_v25, 5  ;;  %2854 = vmatprep.subr.bf16.mxu0 %v3088_v17  ;;  %v912_v54 = vshrl.u32 %v792_v22, 16  ;;  %v3098_v37 = vld [vmem:[#allocation9 + $0xb0] sm:$0xff]   ;;  %v3090_v52 = vld [vmem:[#allocation9 + $0x18] sm:$0xff]  }
 0x1b2   : > { %v1216_v43 = vsel %vm681_vm5, %v1214_v27, %v1215_v24  ;;  %v1222_v18 = vrot.slane %v3889_v31, 4  ;;  %v904_v50 = vor.u32 %v903_v21, %v900_v26  ;;  %v909_v53 = vrot.slane %v907_v32, 5  ;;  %v3094_v26 = vld [vmem:[#allocation9 + $0x20] sm:$0xff]   ;;  %v1144_v21 = vld [vmem:[#allocation3 + $0x60] sm:$0xf] }
 0x1b3   : > { %1426 = vmatprep.mubr.bf16.mxu1 %v1216_v43  ;;  %v1213_v15 = vsel %vm681_vm5, %v1211_v63, %v1212_v33  ;;  %v914_v34 = vrot.slane %v912_v54, 4  ;;  %v915_v28 = vshll.u32 %v792_v22, 16  ;;  %v896_v61 = vsel %vm3787_vm12, %v891_v5, %v895_v7  ;;  %v3095_v63 = vld [vmem:[#allocation9 + $0xa8] sm:$0xff]   ;;  %v3089_v22 = vld [vmem:[#allocation9 + $0x58] sm:$0xff]   ;;  %v3099_v7 = vld [vmem:[#allocation9 + $0x70] sm:$0xff]  }
 0x1b4   : > { %1427 = vmatmul.mubr.bf16.vlgmr.msra.gmra.mrb[0].mxu1 %v1213_v15  ;;  %v1223_v60 = vsel %vm681_vm5, %v1215_v24, %v1222_v18  ;;  %v905_v62 = vrot.slane %v904_v50, 4  ;;  %2855 = vmatpush3.bf16.msra.mxu0 %v3088_v17  ;;  %v921_v56 = vshll.u32 %v793_v39, 16  ;;  %v933_v2 = vrot.slane %v932_v48, 4  ;;  %v3087_v48 = vld [vmem:[#allocation9 + $0x10] sm:$0xff]   ;;  %v3108_v43 = vld [vmem:[#allocation9 + $0x208] sm:$0xff]   ;;  %v3106_v15 = vld [vmem:[#allocation9 + $0x1c0] sm:$0xff]  }
 0x1b5   : > { %2685 = vmatpush3.bf16.msra.mxu1 %v3080_v12  ;;  %1434 = vmatprep.mubr.bf16.mxu1 %v1223_v60  ;;  %v917_v47 = vrot.slane %v915_v28, 5  ;;  %v937_v36 = vrot.slane %v935_v38, 5  ;;  %v1220_v9 = vrot.slane %v3849_v44, 4  ;;  %v1226_v25 = vrot.slane %v3866_v0, 4  ;;  %v3105_v12 = vld [vmem:[#allocation9 + $0x200] sm:$0xff]   ;;  %v3109_v60 = vld [vmem:[#allocation9 + $0x1c8] sm:$0xff]  }
 0x1b6   : > { %2686 = vmatprep.subr.bf16.mxu1 %v3082_v46  ;;  %v910_v4 = vsel %vm3787_vm12, %v905_v62, %v909_v53  ;;  %2856 = vmatprep.subr.bf16.mxu0 %v3091_v58  ;;  %v923_v55 = vrot.slane %v921_v56, 5  ;;  %v1232_v39 = vrot.slane %v1144_v21, 4  ;;  %v3101_v46 = vld [vmem:[#allocation9 + $0x30] sm:$0xff]   ;;  %v3107_v28 = vld [vmem:[#allocation9 + $0x180] sm:$0xff]   ;;  %v3120_v56 = vld [vmem:[#allocation9 + $0x228] sm:$0xff]  }
 0x1b7   : > { %v1146_v49 = vld [vmem:[#allocation3 + $0x70] sm:$0xf]  ;;  %v3906_v11 = vcombine.low %v896_v61, %v910_v4  ;;  %v918_v42 = vor.u32 %v917_v47, %v914_v34  ;;  %v938_v14 = vsel %vm3787_vm12, %v933_v2, %v937_v36  ;;  %v1221_v24 = vsel %vm681_vm5, %v1212_v33, %v1220_v9  ;;  %v3097_v33 = vld [vmem:[#allocation9 + $0x28] sm:$0xff]   ;;  %v3111_v53 = vld [vmem:[#allocation9 + $0x210] sm:$0xff]  }
 0x1b8   : > { %v1236_v20 = vrot.slane %v1146_v49, 4  ;;  %2857 = vmatpush3.bf16.msra.mxu0 %v3091_v58  ;;  %v1227_v27 = vsel %vm681_vm5, %v1220_v9, %v1226_v25  ;;  %v1233_v50 = vsel %vm681_vm5, %v1226_v25, %v1232_v39  ;;  %v3104_v58 = vld [vmem:[#allocation9 + $0x38] sm:$0xff]   ;;  %v3117_v61 = vld [vmem:[#allocation9 + $0x220] sm:$0xff]   ;;  %v3112_v62 = vld [vmem:[#allocation9 + $0x1d0] sm:$0xff]  }
 0x1b9   : > { %2687 = vmatpush3.bf16.msra.mxu1 %v3083_v29  ;;  %v1228_v13 = vrot.slane %v3906_v11, 4  ;;  %v919_v38 = vrot.slane %v918_v42, 4  ;;  %2858 = vmatprep.subr.bf16.mxu0 %v3095_v63  ;;  %v3114_v34 = vld [vmem:[#allocation9 + $0x218] sm:$0xff]   ;;  %v3113_v29 = vld [vmem:[#allocation9 + $0x190] sm:$0xff]   ;;  %v3118_v2 = vld [vmem:[#allocation9 + $0x1e0] sm:$0xff]  }
 0x1ba   : > { %v1237_v17 = vsel %vm681_vm5, %v1230_v8, %v1236_v20  ;;  %2688 = vmatprep.subr.bf16.mxu1 %v3085_v3  ;;  %v3092_v8 = vld [vmem:[#allocation9 + $0x60] sm:$0xff]   ;;  %v3115_v47 = vld [vmem:[#allocation9 + $0x1d8] sm:$0xff]   ;;  %v3121_v3 = vld [vmem:[#allocation9 + $0x1e8] sm:$0xff]  }
 0x1bb   : > { %2845 = vmatmul.mubr.bf16.gmra.mrb[12].mxu0 %v1237_v17  ;;  %v924_v41 = vsel %vm3787_vm12, %v919_v38, %v923_v55  ;;  %v1229_v19 = vsel %vm681_vm5, %v1222_v18, %v1228_v13  ;;  %v3103_v18 = vld [vmem:[#allocation9 + $0x78] sm:$0xff]   ;;  %v3122_v4 = vld [vmem:[#allocation9 + $0x1a8] sm:$0xff]   ;;  %v3124_v49 = vld [vmem:[#allocation9 + $0x1f0] sm:$0xff]  }
 0x1bc   : > { %1435 = vmatmul.mubr.bf16.gmra.mrb[4].mxu1 %v1221_v24  ;;  %2864 = vmatprep.mubr.bf16.mxu0 %v3791_v40  ;;  %v3919_v51 = vcombine.low %v924_v41, %v938_v14  ;;  %v3096_v40 = vld [vmem:[#allocation9 + $0x68] sm:$0xff]   ;;  %v3126_v36 = vld [vmem:[#allocation9 + $0x238] sm:$0xff]   ;;  %v3125_v9 = vld [vmem:[#allocation9 + $0x1b0] sm:$0xff]  }
 0x1bd   : > { %2689 = vmatpush3.bf16.msra.mxu1 %v3087_v48  ;;  %1442 = vmatprep.mubr.bf16.mxu1 %v1229_v19  ;;  %v3127_v42 = vld [vmem:[#allocation9 + $0x1f8] sm:$0xff]  }
 0x1be   : > { %2690 = vmatprep.subr.bf16.mxu1 %v3089_v22  ;;  %963 = vst [vmem:[#allocation3 + $0x68] sm:$0xff] %v3919_v51  ;;  %2859 = vmatpush3.bf16.msra.mxu0 %v3095_v63  ;;  %v3119_v63 = vld [vmem:[#allocation9 + $0x1a0] sm:$0xff]   ;;  %v3128_v55 = vld [vmem:[#allocation9 + $0x1b8] sm:$0xff]  }
 0x1bf   : > { %2860 = vmatprep.subr.bf16.mxu0 %v3098_v37 }
 0x1c1   : > { %2691 = vmatpush3.bf16.msra.mxu1 %v3090_v52 }
 0x1c2   : > { %2692 = vmatprep.subr.bf16.mxu1 %v3092_v8  ;;  %2861 = vmatpush3.bf16.msra.mxu0 %v3098_v37 }
 0x1c3   : > { %2862 = vmatprep.subr.bf16.mxu0 %v3102_v10 }
 0x1c4   : > { %1443 = vmatmul.mubr.bf16.gmra.mrb[8].mxu1 %v1227_v27 }
 0x1c5   : > { %2693 = vmatpush3.bf16.msra.mxu1 %v3094_v26  ;;  %v1145_v32 = vld [vmem:[#allocation3 + $0x68] sm:$0xf] }
 0x1c6   : > { %v1234_v5 = vrot.slane %v1145_v32, 4  ;;  %2694 = vmatprep.subr.bf16.mxu1 %v3096_v40  ;;  %2863 = vmatpush3.bf16.msra.mxu0 %v3102_v10 }
 0x1c7   : > { %2872 = vmatprep.subr.bf16.mxu0 %v3105_v12 }
 0x1c8   : > { %v1235_v54 = vsel %vm681_vm5, %v1228_v13, %v1234_v5 }
 0x1c9   : > { %1450 = vmatprep.mubr.bf16.mxu1 %v1235_v54  ;;  %2695 = vmatpush3.bf16.msra.mxu1 %v3097_v33 }
 0x1ca   : > { %2696 = vmatprep.subr.bf16.mxu1 %v3099_v7  ;;  %2865 = vmatmul.mubr.bf16.vlgmr.msra.gmra.mrb[8].mxu0 %v3821_v30 }
 0x1cb   : > { %2868 = vmatprep.mubr.bf16.mxu0 %v3832_v35  ;;  %2873 = vmatpush3.bf16.msra.mxu0 %v3105_v12 }
 0x1cc   : > { %1451 = vmatmul.mubr.bf16.gmra.mrb[12].mxu1 %v1233_v50  ;;  %2874 = vmatprep.subr.bf16.mxu0 %v3108_v43 }
 0x1cd   : > { %2697 = vmatpush3.bf16.msra.mxu1 %v3101_v46  ;;  %1700 = vmatprep.mubr.bf16.mxu1 %v3844_v57  ;;  %v3110_v57 = vld [vmem:[#allocation9 + $0x188] sm:$0xff]  }
 0x1ce   : > { %2698 = vmatprep.subr.bf16.mxu1 %v3103_v18 }
 0x1cf   : > { %2875 = vmatpush3.bf16.msra.mxu0 %v3108_v43 }
 0x1d0   : > { %2876 = vmatprep.subr.bf16.mxu0 %v3111_v53 }
 0x1d1   : > { %2699 = vmatpush3.bf16.msra.mxu1 %v3104_v58 }
 0x1d2   : > { %2736 = vmatprep.subr.bf16.mxu1 %v3106_v15  ;;  %2869 = vmatmul.mubr.bf16.gmra.mrb[12].mxu0 %v3864_v23 }
 0x1d3   : > { %2877 = vmatpush3.bf16.msra.mxu0 %v3111_v53  ;;  %2888 = vmatprep.mubr.bf16.mxu0 %v3821_v30  ;;  %v3116_v30 = vld [vmem:[#allocation9 + $0x198] sm:$0xff]  }
 0x1d4   : > { %1701 = vmatmul.mubr.bf16.vlgmr.msra.gmra.mrb[16].mxu1 %v3793_v6  ;;  %2878 = vmatprep.subr.bf16.mxu0 %v3114_v34  ;;  %v3123_v6 = vld [vmem:[#allocation9 + $0x230] sm:$0xff]  }
 0x1d5   : > { %2737 = vmatpush3.bf16.msra.mxu1 %v3107_v28  ;;  %1708 = vmatprep.mubr.bf16.mxu1 %v3857_v59 }
 0x1d6   : > { %2738 = vmatprep.subr.bf16.mxu1 %v3109_v60 }
 0x1d7   : > { %2879 = vmatpush3.bf16.msra.mxu0 %v3114_v34 }
 0x1d8   : > { %2880 = vmatprep.subr.bf16.mxu0 %v3117_v61 }
 0x1d9   : > { %2739 = vmatpush3.bf16.msra.mxu1 %v3110_v57 }
 0x1da   : > { %2740 = vmatprep.subr.bf16.mxu1 %v3112_v62 }
 0x1db   : > { %2881 = vmatpush3.bf16.msra.mxu0 %v3117_v61 }
 0x1dc   : > { %1709 = vmatmul.mubr.bf16.gmra.mrb[20].mxu1 %v3817_v1  ;;  %2882 = vmatprep.subr.bf16.mxu0 %v3120_v56 }
 0x1dd   : > { %2741 = vmatpush3.bf16.msra.mxu1 %v3113_v29  ;;  %1716 = vmatprep.mubr.bf16.mxu1 %v3889_v31 }
 0x1de   : > { %2742 = vmatprep.subr.bf16.mxu1 %v3115_v47 }
 0x1df   : > { %2883 = vmatpush3.bf16.msra.mxu0 %v3120_v56 }
 0x1e0   : > { %2884 = vmatprep.subr.bf16.mxu0 %v3123_v6 }
 0x1e1   : > { %2743 = vmatpush3.bf16.msra.mxu1 %v3116_v30 }
 0x1e2   : > { %2744 = vmatprep.subr.bf16.mxu1 %v3118_v2 }
 0x1e3   : > { %2885 = vmatpush3.bf16.msra.mxu0 %v3123_v6 }
 0x1e4   : > { %1717 = vmatmul.mubr.bf16.gmra.mrb[24].mxu1 %v3849_v44  ;;  %2886 = vmatprep.subr.bf16.mxu0 %v3126_v36 }
 0x1e5   : > { %2745 = vmatpush3.bf16.msra.mxu1 %v3119_v63  ;;  %1724 = vmatprep.mubr.bf16.mxu1 %v3906_v11 }
 0x1e6   : > { %2746 = vmatprep.subr.bf16.mxu1 %v3121_v3 }
 0x1e7   : > { %2887 = vmatpush3.bf16.msra.mxu0 %v3126_v36 }
 0x1e9   : > { %2747 = vmatpush3.bf16.msra.mxu1 %v3122_v4 }
 0x1ea   : > { %2748 = vmatprep.subr.bf16.mxu1 %v3124_v49  ;;  %2889 = vmatmul.mubr.bf16.vlgmr.msra.gmra.mrb[8].mxu0 %v3832_v35  ;;  %v3129_v35 = vld [vmem:[#allocation10] sm:$0xff]  }
 0x1eb   : > { %2892 = vmatprep.mubr.bf16.mxu0 %v3864_v23  ;;  %v3131_v23 = vld [vmem:[#allocation10 + $0x10] sm:$0xff]  }
 0x1ec   : > { %1725 = vmatmul.mubr.bf16.gmra.mrb[28].mxu1 %v3866_v0 }
 0x1ed   : > { %2749 = vmatpush3.bf16.msra.mxu1 %v3125_v9  ;;  %2026 = vmatprep.mubr.bf16.mxu1 %v3857_v59  ;;  %v3130_v59 = vld [vmem:[#allocation10 + $0x8] sm:$0xff]  }
 0x1ee   : > { %2750 = vmatprep.subr.bf16.mxu1 %v3127_v42 }
 0x1f1   : > { %2751 = vmatpush3.bf16.msra.mxu1 %v3128_v55 }
 0x1f2   : > { %2893 = vmatmul.mubr.bf16.gmra.mrb[12].mxu0 %v3882_v16  ;;  %2896 = vmatprep.subr.bf16.mxu1 %v3129_v35  ;;  %v3133_v16 = vld [vmem:[#allocation10 + $0x20] sm:$0xff]  }
 0x1f4   : > { %2027 = vmatmul.mubr.bf16.vlgmr.msra.gmra.mrb[32].mxu1 %v3817_v1  ;;  %v3132_v1 = vld [vmem:[#allocation10 + $0x18] sm:$0xff]  }
 0x1f5   : > { %2034 = vmatprep.mubr.bf16.mxu1 %v3889_v31  ;;  %2897 = vmatpush3.bf16.msra.mxu1 %v3129_v35 }
 0x1f6   : > { %2898 = vmatprep.subr.bf16.mxu1 %v3130_v59 }
 0x1f9   : > { %2899 = vmatpush3.bf16.msra.mxu1 %v3130_v59 }
 0x1fa   : > { %2900 = vmatprep.subr.bf16.mxu1 %v3131_v23 }
 0x1fc   : > { %2035 = vmatmul.mubr.bf16.gmra.mrb[36].mxu1 %v3849_v44  ;;  %v3134_v44 = vld [vmem:[#allocation10 + $0x28] sm:$0xff]  }
 0x1fd   : > { %2042 = vmatprep.mubr.bf16.mxu1 %v3906_v11  ;;  %2901 = vmatpush3.bf16.msra.mxu1 %v3131_v23 }
 0x1fe   : > { %2902 = vmatprep.subr.bf16.mxu1 %v3132_v1 }
 0x201   : > { %2903 = vmatpush3.bf16.msra.mxu1 %v3132_v1 }
 0x202   : > { %2904 = vmatprep.subr.bf16.mxu1 %v3133_v16 }
 0x204   : > { %2043 = vmatmul.mubr.bf16.gmra.mrb[40].mxu1 %v3866_v0  ;;  %v3135_v0 = vld [vmem:[#allocation10 + $0x30] sm:$0xff]  }
 0x205   : > { %2050 = vmatprep.mubr.bf16.mxu1 %v3919_v51  ;;  %2905 = vmatpush3.bf16.msra.mxu1 %v3133_v16 }
 0x206   : > { %2906 = vmatprep.subr.bf16.mxu1 %v3134_v44 }
 0x209   : > { %2907 = vmatpush3.bf16.msra.mxu1 %v3134_v44 }
 0x20a   : > { %2908 = vmatprep.subr.bf16.mxu1 %v3135_v0 }
 0x20c   : > { %2051 = vmatmul.mubr.bf16.gmra.mrb[44].mxu1 %v3873_v45  ;;  %v3136_v45 = vld [vmem:[#allocation10 + $0x38] sm:$0xff]  }
 0x20d   : > { %2909 = vmatpush3.bf16.msra.mxu1 %v3135_v0 }
 0x20e   : > { %2910 = vmatprep.subr.bf16.mxu1 %v3136_v45 }
 0x211   : > { %2911 = vmatpush3.bf16.msra.mxu1 %v3136_v45 }
 0x287   : > { %v2648_v31 = vpop.f32.mrb[0].mxu1 }
 0x288   : > { %v2649_v11 = vpop.f32.mrb[1].mxu1 }
 0x289   : > { %v2650_v20 = vadd.f32 %v2649_v11, %v2648_v31  ;;  %v2651_v48 = vpop.f32.mrb[2].mxu1 }
 0x28a   : > { %v2652_v13 = vpop.f32.mrb[3].mxu1 }
 0x28b   : > { %v2653_v38 = vadd.f32 %v2652_v13, %v2651_v48 }
 0x28f   : > { %v2654_v14 = vpop.f32.mrb[4].mxu1 }
 0x290   : > { %v2655_v17 = vpop.f32.mrb[5].mxu1 }
 0x291   : > { %v2656_v22 = vadd.f32 %v2655_v17, %v2654_v14  ;;  %v2657_v24 = vpop.f32.mrb[6].mxu1  ;;  %v2572_v17 = vld [vmem:[%s4018_s4] ss:$0 sm:$0xff] }
 0x292   : > { %v2658_v41 = vpop.f32.mrb[7].mxu1 }
 0x293   : > { %v2659_v37 = vadd.f32 %v2658_v41, %v2657_v24 }
 0x297   : > { %v2660_v19 = vpop.f32.mrb[8].mxu1 }
 0x298   : > { %v2661_v51 = vpop.f32.mrb[9].mxu1 }
 0x299   : > { %v2662_v52 = vadd.f32 %v2661_v51, %v2660_v19  ;;  %v2663_v8 = vpop.f32.mrb[10].mxu1 }
 0x29a   : > { %v2664_v25 = vpop.f32.mrb[11].mxu1 }
 0x29b   : > { %v2665_v10 = vadd.f32 %v2664_v25, %v2663_v8 }
 0x29f   : > { %v2666_v26 = vpop.f32.mrb[12].mxu1 }
 0x2a0   : > { %v2667_v40 = vpop.f32.mrb[13].mxu1 }
 0x2a1   : > { %v2668_v27 = vadd.f32 %v2667_v40, %v2666_v26  ;;  %v2669_v12 = vpop.f32.mrb[14].mxu1 }
 0x2a2   : > { %v2670_v21 = vpop.f32.mrb[15].mxu1 }
 0x2a3   : > { %v2671_v32 = vadd.f32 %v2670_v21, %v2669_v12 }
 0x2a7   : > { %v2700_v33 = vpop.f32.mrb[16].mxu1 }
 0x2a8   : > { %v2701_v5 = vpop.f32.mrb[17].mxu1 }
 0x2a9   : > { %v2702_v7 = vadd.f32 %v2701_v5, %v2700_v33  ;;  %v2703_v39 = vpop.f32.mrb[18].mxu1 }
 0x2aa   : > { %v2704_v54 = vpop.f32.mrb[19].mxu1 }
 0x2ab   : > { %v2923_v43 = vadd.f32 %v2702_v7, %v2650_v20  ;;  %v2705_v46 = vadd.f32 %v2704_v54, %v2703_v39 }
 0x2ad   : > { %v2929_v18 = vadd.f32 %v2705_v46, %v2653_v38 }
 0x2af   : > { %v2706_v50 = vpop.f32.mrb[20].mxu1 }
 0x2b0   : > { %v2707_v53 = vpop.f32.mrb[21].mxu1 }
 0x2b1   : > { %v2708_v58 = vadd.f32 %v2707_v53, %v2706_v50  ;;  %v2709_v15 = vpop.f32.mrb[22].mxu1 }
 0x2b2   : > { %v2710_v34 = vpop.f32.mrb[23].mxu1 }
 0x2b3   : > { %v2920_v28 = vadd.f32 %v2708_v58, %v2656_v22  ;;  %v2711_v60 = vadd.f32 %v2710_v34, %v2709_v15 }
 0x2b5   : > { %v2926_v61 = vadd.f32 %v2711_v60, %v2659_v37 }
 0x2b7   : > { %v2712_v57 = vpop.f32.mrb[24].mxu1 }
 0x2b8   : > { %v2713_v62 = vpop.f32.mrb[25].mxu1 }
 0x2b9   : > { %v2714_v56 = vadd.f32 %v2713_v62, %v2712_v57  ;;  %v2715_v29 = vpop.f32.mrb[26].mxu1 }
 0x2ba   : > { %v2716_v47 = vpop.f32.mrb[27].mxu1 }
 0x2bb   : > { %v2935_v6 = vadd.f32 %v2714_v56, %v2662_v52  ;;  %v2717_v30 = vadd.f32 %v2716_v47, %v2715_v29 }
 0x2bd   : > { %v2941_v2 = vadd.f32 %v2717_v30, %v2665_v10  ;;  %v2890_v36 = vpop.f32.mrb[8].mxu0 }
 0x2be   : > { %v2093_v63 = vpop.f32.mrb[9].mxu0 }
 0x2bf   : > { %v2718_v3 = vpop.f32.mrb[28].mxu1  ;;  %v2891_v4 = vpop.f32.mrb[10].mxu0 }
 0x2c0   : > { %v2719_v49 = vpop.f32.mrb[29].mxu1  ;;  %v2096_v9 = vpop.f32.mrb[11].mxu0 }
 0x2c1   : > { %v2720_v42 = vadd.f32 %v2719_v49, %v2718_v3  ;;  %v2721_v55 = vpop.f32.mrb[30].mxu1 }
 0x2c2   : > { %v2722_v35 = vpop.f32.mrb[31].mxu1 }
 0x2c3   : > { %v2932_v59 = vadd.f32 %v2720_v42, %v2668_v27  ;;  %v2723_v23 = vadd.f32 %v2722_v35, %v2721_v55 }
 0x2c5   : > { %v2938_v1 = vadd.f32 %v2723_v23, %v2671_v32  ;;  %v2894_v16 = vpop.f32.mrb[12].mxu0 }
 0x2c6   : > { %v2109_v44 = vpop.f32.mrb[13].mxu0 }
 0x2c7   : > { %v2752_v0 = vpop.f32.mrb[32].mxu1  ;;  %v2895_v45 = vpop.f32.mrb[14].mxu0 }
 0x2c8   : > { %v2753_v31 = vpop.f32.mrb[33].mxu1  ;;  %v2112_v11 = vpop.f32.mrb[15].mxu0 }
 0x2c9   : > { %v2754_v20 = vadd.f32 %v2753_v31, %v2752_v0  ;;  %v2755_v48 = vpop.f32.mrb[34].mxu1 }
 0x2ca   : > { %v2756_v13 = vpop.f32.mrb[35].mxu1 }
 0x2cb   : > { %v2924_v38 = vadd.f32 %v2923_v43, %v2754_v20  ;;  %v2757_v14 = vadd.f32 %v2756_v13, %v2755_v48  ;;  %v3137_v48 = vld [vmem:[%s3593_s20 + $0x10] sm:$0xff] }
 0x2cd   : > { %v2925_v22 = vadd.f32 %v2924_v38, %v2093_v63  ;;  %v2930_v24 = vadd.f32 %v2929_v18, %v2757_v14 }
 0x2cf   : > { %v2931_v41 = vadd.f32 %v2930_v24, %v2096_v9  ;;  %v2758_v37 = vpop.f32.mrb[36].mxu1  ;;  %v2139_v19 = vadd.f32 %v2925_v22, %v2572_v17 }
 0x2d0   : > { %v2759_v51 = vpop.f32.mrb[37].mxu1 }
 0x2d1   : > { %v2760_v52 = vadd.f32 %v2759_v51, %v2758_v37  ;;  %v2761_v8 = vpop.f32.mrb[38].mxu1  ;;  %v2140_v25 = vadd.f32 %v2931_v41, %v2572_v17  ;;  %v2147_v27 = vmax.f32 %v2139_v19, 0.0  ;;  %v3139_v41 = vld [vmem:[%s3593_s20 + $0x18] sm:$0xff]  ;;  %v3140_v19 = vld [vmem:[%s3593_s20 + $0x8] sm:$0xff] }
 0x2d2   : > { %v2762_v10 = vpop.f32.mrb[39].mxu1 }
 0x2d3   : > { %v2921_v26 = vadd.f32 %v2920_v28, %v2760_v52  ;;  %v2763_v40 = vadd.f32 %v2762_v10, %v2761_v8  ;;  %v2148_v12 = vmax.f32 %v2140_v25, 0.0 }
 0x2d5   : > { %v2922_v21 = vadd.f32 %v2921_v26, %v2890_v36  ;;  %v2927_v32 = vadd.f32 %v2926_v61, %v2763_v40  ;;  %v2155_v33 = vpack.c.bf16 %v2148_v12, %v2147_v27 }
 0x2d7   : > { %v2141_v5 = vadd.f32 %v2922_v21, %v2572_v17  ;;  %v2928_v7 = vadd.f32 %v2927_v32, %v2891_v4  ;;  %v2764_v39 = vpop.f32.mrb[40].mxu1  ;;  %2912 = vmatprep.mubr.bf16.mxu1 %v2155_v33 }
 0x2d8   : > { %v2765_v54 = vpop.f32.mrb[41].mxu1 }
 0x2d9   : > { %v2142_v43 = vadd.f32 %v2928_v7, %v2572_v17  ;;  %v2766_v46 = vadd.f32 %v2765_v54, %v2764_v39  ;;  %v2767_v18 = vpop.f32.mrb[42].mxu1  ;;  %v2149_v53 = vmax.f32 %v2141_v5, 0.0  ;;  %v3141_v5 = vld [vmem:[%s3593_s20 + $0x30] sm:$0xff] }
 0x2da   : > { %v2768_v50 = vpop.f32.mrb[43].mxu1 }
 0x2db   : > { %v2150_v58 = vmax.f32 %v2142_v43, 0.0  ;;  %v2936_v15 = vadd.f32 %v2935_v6, %v2766_v46  ;;  %v2769_v34 = vadd.f32 %v2768_v50, %v2767_v18  ;;  %v3142_v43 = vld [vmem:[%s3593_s20 + $0x20] sm:$0xff]  ;;  %v3143_v50 = vld [vmem:[%s3593_s20 + $0x38] sm:$0xff] }
 0x2dd   : > { %v2156_v28 = vpack.c.bf16 %v2150_v58, %v2149_v53  ;;  %v2937_v60 = vadd.f32 %v2936_v15, %v2109_v44  ;;  %v2942_v57 = vadd.f32 %v2941_v2, %v2769_v34  ;;  %v3144_v58 = vld [vmem:[%s3593_s20 + $0x28] sm:$0xff] }
 0x2df   : > { %v2943_v62 = vadd.f32 %v2942_v57, %v2112_v11  ;;  %v2770_v56 = vpop.f32.mrb[44].mxu1  ;;  %2913 = vmatmul.mubr.bf16.vlgmr.msra.gmra.mrb[48].mxu1 %v2156_v28  ;;  %v2143_v61 = vadd.f32 %v2937_v60, %v2572_v17 }
 0x2e0   : > { %v2771_v29 = vpop.f32.mrb[45].mxu1 }
 0x2e1   : > { %v2772_v47 = vadd.f32 %v2771_v29, %v2770_v56  ;;  %v2773_v30 = vpop.f32.mrb[46].mxu1  ;;  %v2144_v36 = vadd.f32 %v2943_v62, %v2572_v17  ;;  %v2151_v49 = vmax.f32 %v2143_v61, 0.0 }
 0x2e2   : > { %v2774_v63 = vpop.f32.mrb[47].mxu1 }
 0x2e3   : > { %v2933_v3 = vadd.f32 %v2932_v59, %v2772_v47  ;;  %v2775_v4 = vadd.f32 %v2774_v63, %v2773_v30  ;;  %v2152_v9 = vmax.f32 %v2144_v36, 0.0  ;;  %v2573_v59 = vld [vmem:[%s4020_s6] ss:$0 sm:$0xff] }
 0x2e5   : > { %v2934_v42 = vadd.f32 %v2933_v3, %v2894_v16  ;;  %v2939_v55 = vadd.f32 %v2938_v1, %v2775_v4  ;;  %v2157_v6 = vpack.c.bf16 %v2152_v9, %v2151_v49 }
 0x2e7   : > { %v2940_v35 = vadd.f32 %v2939_v55, %v2895_v45  ;;  %2916 = vmatprep.mubr.bf16.mxu1 %v2157_v6  ;;  %v2145_v2 = vadd.f32 %v2934_v42, %v2572_v17 }
 0x2e9   : > { %v2146_v23 = vadd.f32 %v2940_v35, %v2572_v17  ;;  %v2153_v44 = vmax.f32 %v2145_v2, 0.0  ;;  %v3138_v17 = vld [vmem:[%s3593_s20] sm:$0xff]  ;;  %s2328_s20 = scalar_lea.sflag [#allocation6], %s3589_s21 }
 0x2eb   : > { %v2154_v0 = vmax.f32 %v2146_v23, 0.0 }
 0x2ed   : > { %v2158_v31 = vpack.c.bf16 %v2154_v0, %v2153_v44 }
 0x2ef   : > { %2917 = vmatmul.mubr.bf16.gmra.mrb[52].mxu1 %v2158_v31 }
 0x3b2   : > { %v2914_v16 = vpop.f32.mrb[48].mxu1 }
 0x3b3   : > { %v2273_v1 = vadd.f32 %v2914_v16, %v2573_v59  ;;  %v2264_v11 = vpop.f32.mrb[49].mxu1 }
 0x3b4   : > { %v2265_v20 = vadd.f32 %v2573_v59, %v2264_v11  ;;  %v2915_v45 = vpop.f32.mrb[50].mxu1 }
 0x3b5   : > { %v2297_v13 = vadd.f32 %v3137_v48, %v2273_v1  ;;  %v2276_v38 = vadd.f32 %v2915_v45, %v2573_v59  ;;  %v2267_v14 = vpop.f32.mrb[51].mxu1 }
 0x3b6   : > { %v2295_v22 = vadd.f32 %v3138_v17, %v2265_v20  ;;  %v2268_v24 = vadd.f32 %v2573_v59, %v2267_v14 }
 0x3b7   : > { %v2298_v37 = vadd.f32 %v3139_v41, %v2276_v38  ;;  %v2305_v52 = vmax.f32 %v2297_v13, 0.0 }
 0x3b8   : > { %v2296_v51 = vadd.f32 %v3140_v19, %v2268_v24  ;;  %v2303_v25 = vmax.f32 %v2295_v22, 0.0 }
 0x3b9   : > { %v2306_v8 = vmax.f32 %v2298_v37, 0.0 }
 0x3ba   : > { %v2304_v10 = vmax.f32 %v2296_v51, 0.0 }
 0x3bb   : > { %v2605_v26 = vpack.c.bf16 %v2306_v8, %v2305_v52 }
 0x3bc   : > { %v2600_v40 = vpack.c.bf16 %v2304_v10, %v2303_v25 }
 0x3bd   : > { %2617 = vst [vmem:[%s340_s29 + $0x8] sm:$0xff] %v2605_v26  }
 0x3be   : > { %2601 = vst [vmem:[%s340_s29] sm:$0xff] %v2600_v40  }
 0x3c2   : > { %v2918_v27 = vpop.f32.mrb[52].mxu1 }
 0x3c3   : > { %v2289_v12 = vadd.f32 %v2918_v27, %v2573_v59  ;;  %v2280_v21 = vpop.f32.mrb[53].mxu1 }
 0x3c4   : > { %v2281_v32 = vadd.f32 %v2573_v59, %v2280_v21  ;;  %v2919_v33 = vpop.f32.mrb[54].mxu1 }
 0x3c5   : > { %v2301_v7 = vadd.f32 %v3141_v5, %v2289_v12  ;;  %v2292_v39 = vadd.f32 %v2919_v33, %v2573_v59  ;;  %v2283_v54 = vpop.f32.mrb[55].mxu1 }
 0x3c6   : > { %v2299_v46 = vadd.f32 %v3142_v43, %v2281_v32  ;;  %v2284_v18 = vadd.f32 %v2573_v59, %v2283_v54 }
 0x3c7   : > { %v2302_v53 = vadd.f32 %v3143_v50, %v2292_v39  ;;  %v2309_v34 = vmax.f32 %v2301_v7, 0.0 }
 0x3c8   : > { %v2300_v15 = vadd.f32 %v3144_v58, %v2284_v18  ;;  %v2307_v60 = vmax.f32 %v2299_v46, 0.0 }
 0x3c9   : > { %v2310_v28 = vmax.f32 %v2302_v53, 0.0 }
 0x3ca   : > { %v2308_v57 = vmax.f32 %v2300_v15, 0.0 }
 0x3cb   : > { %v2615_v62 = vpack.c.bf16 %v2310_v28, %v2309_v34 }
 0x3cc   : > { %v2610_v56 = vpack.c.bf16 %v2308_v57, %v2307_v60 }
 0x3cd   : > { %2619 = vst [vmem:[%s340_s29 + $0x18] sm:$0xff] %v2615_v62  }
 0x3ce   : > { %2618 = vst [vmem:[%s340_s29 + $0x10] sm:$0xff] %v2610_v56  }
 0x3cf   : > { %3272 = shalt.err (!%p3269_p4)
}
 0x3d0   : > { %s3273_s10 = scalar_lea.hbm %s3970_s13, 512  ;;  %s3277_s15 = scalar_lea.hbm %s4021_s7, 1024 }
 0x3d1   : > { %p3274_p9 = scmp.ne.s32.totalorder %s3970_s13, %s3273_s10  ;;  %p3278_p8 = scmp.lt.u32.totalorder %s3970_s13, %s4021_s7 }
 0x3d2   : > { %p3279_p13 = scmp.lt.u32.totalorder %s3277_s15, %s3273_s10  ;;  %p3281_p10 = scmp.lt.u32.totalorder %s3273_s10, %s3970_s13 }
 0x3d3   : > { %p3275_p0 = pnand %p3274_p9, %p3541_p5 }
 0x3d4   : > { %p3280_p6 = por %p3279_p13, %p3278_p8 }
 0x3d5   : > { %p3276_p11 = pneg %p3275_p0 }
 0x3d6   : > { %p3282_p3 = por %p3281_p10, %p3280_p6 }
 0x3d8   : > { %p3283_p7 = pnand %p3282_p3, %p3276_p11 }
 0x3da   : > { %3286 = shalt.err (!%p3283_p7)
}
 0x3db   : > { %s3345_s17 = smov 64   ;;  %s3346_s16 = smov 4  }
 0x3dc   : > { %2974 = dma.vmem_to_hbm [thread:$0]  (%p3541_p5), %s3965_s12, 512, %s3970_s13, %s2328_s20, %s3345_s17, %s3345_s17, %s3346_s16  }
 0x3dd PF: > { %s4051_s28 = sld [smem:[#allocation17_spill]]  ;;  %s2356_s30 = sand.u32 1, %s3321_s24  }
 0x3de   : > { %p4053_p1 = scmp.ge.s32.totalorder %s3333_s27, 2  ;;  %s2357_s9 = scalar_lea.sflag [#allocation6], %s2356_s30 }
 0x3e3   : > { %p4052_p12 = scmp.ne.s32.totalorder %s4051_s28, 0 }
 0x3e5   : > { %p2991_p2 = pnand %p4053_p1, %p4052_p12 }
 0x3e7   : > { %3316 = dma.done.wait (!%p2991_p2), %s2357_s9, 512  }
 0x3e8   : > { %3318 = vsyncadd (!%p2991_p2), %s2357_s9, 4294966784  ;;  %p22_p4 = scmp.ge.s32.totalorder %s3527_s22, 4   ;;  %s4054_s24 = smov %s3325_s25 }
 0x3e9   : > { %s4055_s25 = smov %s3329_s26  ;;  %s4056_s26 = smov %s3537_s18 }
 0x3ea   : > { %s4057_s27 = smov %s3527_s22  ;;  %24 = sbr.rel (!%p22_p4) target bundleno = 7 (0x7), region = 109 }
 0x3f1   :  { %2362 = vsyncpa [#allocation5], 1 }
 0x3f2   :  { %2364 = vsyncpa [#allocation5 + $0x1], 1 }
 0x3f3   :  { %2365 = vsyncpa [#allocation8], 1 }
 0x3f4   :  { %2366 = vsyncpa [#allocation11], 1 }
 0x3f5   :  { %2367 = vsyncpa [#allocation6], 1 }
 0x3f6   :  { %2369 = vsyncpa [#allocation6 + $0x1], 1 }

// kernel: tpu_custom_call.1
= control target key start
LH: loop header
LB: loop body
LE: loop exit
PB: predicated region body
PF: predicated region fallthrough
CT: control target
= control target key end

     0   :  { %12 = vsyncpa [#allocation5], 0  ;;  %s4014_s0 = inlined_call_operand.hbm [shape: f32[2,8,8,128], index: 0, kind: input, shape index: {}]   ;;  %s4015_s1 = inlined_call_operand.hbm [shape: bf16[128,128], index: 1, kind: input, shape index: {}]   ;;  %s4016_s2 = inlined_call_operand.vmem [shape: f32[1,128], index: 2, kind: input, shape index: {}]   ;;  %s4017_s3 = inlined_call_operand.hbm [shape: bf16[3,384,128], index: 3, kind: input, shape index: {}]   ;;  %s4018_s4 = inlined_call_operand.vmem [shape: f32[1,128], index: 4, kind: input, shape index: {}]   ;;  %s4019_s5 = inlined_call_operand.hbm [shape: bf16[128,128], index: 5, kind: input, shape index: {}]   ;;  %s4020_s6 = inlined_call_operand.vmem [shape: f32[1,128], index: 6, kind: input, shape index: {}]   ;;  %s4021_s7 = inlined_call_operand.hbm [shape: bf16[2,8,8,128], index: 7, kind: output, shape index: {}]  }
   0x1   :  { %14 = vsyncpa [#allocation5 + $0x1], 0 }
   0x2   :  { %15 = vsyncpa [#allocation8], 0 }
   0x3   :  { %16 = vsyncpa [#allocation11], 0 }
   0x4   :  { %17 = vsyncpa [#allocation6], 0 }
   0x5   :  { %19 = vsyncpa [#allocation6 + $0x1], 0  ;;  %s3387_s24 = smov 0   ;;  %s3389_s25 = smov 0  }
   0x6   :  { %s3391_s26 = smov 0   ;;  %s3393_s27 = smov 0  }
   0x7 LB: > { %s3408_s28 = sadd.s32 4294967295, %s3333_s27   ;;  %s2443_s29 = sadd.s32 4294967294, %s3333_s27   ;;  %s3333_s27 = sphi %s3393_s27, %s4057_s27   ;;  %s3329_s26 = sphi %s3391_s26, %s4056_s26   ;;  %s3325_s25 = sphi %s3389_s25, %s4055_s25   ;;  %s3321_s24 = sphi %s3387_s24, %s4054_s24  }
   0x8   : > { %p45_p0 = scmp.ne.s32.totalorder %s3325_s25, %s3321_s24  ;;  %p4022_p1 = scmp.eq.s32.totalorder %s3408_s28, 0 }
   0x9   : > { %p201_p3 = scmp.eq.s32.totalorder %s2443_s29, 1  ;;  %p2444_p5 = scmp.ge.s32.totalorder %s3333_s27, 1 }
   0xa   : > { %p3417_p4 = por %p4022_p1, %p45_p0  ;;  %p208_p7 = scmp.lt.s32.totalorder %s3333_s27, 3 }
   0xb   : > { %p3422_p6 = por %p201_p3, %p45_p0  ;;  %s3335_s10 = smov [#allocation7]  }
   0xc   : > { %s4026_s30 = scalar_select %p3417_p4, 1, 0 }
   0xd   : > { %s4027_s8 = scalar_select %p3422_p6, 1, 0 }
   0xe   : > { %p3427_p8 = pnand %p2444_p5, %p208_p7  ;;  %s220_s11 = sshll.u32 %s3335_s10, 4  ;;  %s3431_s11 = int_to_ptr.vmem [resolvable:$true] %s220_s11 }
   0xf   : > { %4028 = sst [smem:[#allocation17_spill]] %s4027_s8  ;;  %s3336_s13 = smov [#allocation9]  }
  0x10   : > { %s4029_s9 = scalar_select %p3427_p8, 1, 0 }
  0x11   : > { %p2976_p9 = pneg %p3427_p8  ;;  %s236_s14 = sshll.u32 %s3336_s13, 4  ;;  %s3442_s14 = int_to_ptr.vmem [resolvable:$true] %s236_s14 }
  0x12   : > { %s3337_s15 = smov [#allocation10]   ;;  %s3145_s19 = scalar_lea.hbm %s4015_s1, 1024 }
  0x13   : > { %p3438_p11 = pnand %p2976_p9, %p4022_p1  ;;  %s3444_s16 = sshll.u32 %s3337_s15, 4  ;;  %s253_s16 = int_to_ptr.vmem [resolvable:$true] %s3444_s16 }
  0x14   : > { %p3146_p12 = scmp.ne.s32.totalorder %s4015_s1, %s3145_s19  ;;  %p3152_p5 = scmp.lt.u32.totalorder %s3145_s19, %s4015_s1 }
  0x15   : > { %p3454_p13 = pneg %p3438_p11 }
  0x17   : > { %p3148_p0 = pnand %p3454_p13, %p3146_p12 }
  0x19   : > { %p3149_p3 = pneg %p3148_p0 }
  0x1b   : > { %p3154_p7 = pnand %p3152_p5, %p3149_p3 }
  0x1d   : > { %3157 = shalt.err (!%p3154_p7)
}
  0x1e   : > { %s3158_s10 = scalar_lea.vmem %s3431_s11, 1024  ;;  %p3166_p2 = scmp.lt.s32.totalorder %s3431_s11, %s3431_s11 }
  0x1f   : > { %p3159_p9 = scmp.ne.s32.totalorder %s3431_s11, %s3158_s10  ;;  %p3167_p6 = scmp.lt.s32.totalorder %s3158_s10, %s3158_s10 }
  0x21   : > { %p3161_p10 = pnand %p3159_p9, %p3454_p13  ;;  %p3168_p12 = por %p3167_p6, %p3166_p2 }
  0x23   : > { %p3162_p1 = pneg %p3161_p10 }
  0x25   : > { %p3169_p0 = pnand %p3168_p12, %p3162_p1 }
  0x27   : > { %3172 = shalt.err (!%p3169_p0)
}
  0x28   : > { %s3338_s13 = smov 64   ;;  %s3339_s15 = smov 4  }
  0x29   : > { %2979 = dma.hbm_to_vmem [thread:$0]  (!%p3438_p11), %s4015_s1, 1024, %s3431_s11, [#allocation8], %s3338_s13, %s3338_s13, %s3339_s15  }
  0x2a   : > { %s3173_s21 = scalar_lea.hbm %s4017_s3, 9216 }
  0x2b   : > { %p3174_p1 = scmp.ne.s32.totalorder %s4017_s3, %s3173_s21  ;;  %p3180_p10 = scmp.lt.u32.totalorder %s3173_s21, %s4017_s3 }
  0x2d   : > { %p3176_p2 = pnand %p3174_p1, %p3454_p13 }
  0x2f   : > { %p3177_p6 = pneg %p3176_p2 }
  0x31   : > { %p3182_p3 = pnand %p3180_p10, %p3177_p6 }
  0x33   : > { %3185 = shalt.err (!%p3182_p3)
}
  0x34   : > { %s3186_s11 = scalar_lea.vmem %s3442_s14, 9216  ;;  %p3194_p12 = scmp.lt.s32.totalorder %s3442_s14, %s3442_s14 }
  0x35   : > { %p3187_p5 = scmp.ne.s32.totalorder %s3442_s14, %s3186_s11  ;;  %p3195_p0 = scmp.lt.s32.totalorder %s3186_s11, %s3186_s11 }
  0x37   : > { %p3189_p7 = pnand %p3187_p5, %p3454_p13  ;;  %p3196_p1 = por %p3195_p0, %p3194_p12 }
  0x39   : > { %p3190_p9 = pneg %p3189_p7 }
  0x3b   : > { %p3197_p2 = pnand %p3196_p1, %p3190_p9 }
  0x3d   : > { %3200 = shalt.err (!%p3197_p2)
}
  0x3e   : > { %2982 = dma.hbm_to_vmem [thread:$0]  (!%p3438_p11), %s4017_s3, 9216, %s3442_s14, [#allocation8], %s3338_s13, %s3338_s13, %s3339_s15  }
  0x3f   : > { %s3201_s20 = scalar_lea.hbm %s4019_s5, 1024 }
  0x40   : > { %p3202_p6 = scmp.ne.s32.totalorder %s4019_s5, %s3201_s20  ;;  %p3208_p5 = scmp.lt.u32.totalorder %s3201_s20, %s4019_s5 }
  0x42   : > { %p3204_p10 = pnand %p3202_p6, %p3454_p13 }
  0x44   : > { %p3205_p3 = pneg %p3204_p10 }
  0x46   : > { %p3210_p7 = pnand %p3208_p5, %p3205_p3 }
  0x48   : > { %3213 = shalt.err (!%p3210_p7)
}
  0x49   : > { %s3214_s11 = scalar_lea.vmem %s253_s16, 1024  ;;  %p3222_p1 = scmp.lt.s32.totalorder %s253_s16, %s253_s16 }
  0x4a   : > { %p3215_p9 = scmp.ne.s32.totalorder %s253_s16, %s3214_s11  ;;  %p3223_p2 = scmp.lt.s32.totalorder %s3214_s11, %s3214_s11 }
  0x4c   : > { %p3217_p12 = pnand %p3215_p9, %p3454_p13  ;;  %p3224_p4 = por %p3223_p2, %p3222_p1 }
  0x4e   : > { %p3218_p0 = pneg %p3217_p12 }
  0x50   : > { %p3225_p8 = pnand %p3224_p4, %p3218_p0 }
  0x52   : > { %3228 = shalt.err (!%p3225_p8)
}
  0x53   : > { %2985 = dma.hbm_to_vmem [thread:$0]  (!%p3438_p11), %s4019_s5, 1024, %s253_s16, [#allocation11], %s3338_s13, %s3338_s13, %s3339_s15  }
  0x54   : > { %s3527_s22 = sadd.s32 1, %s3333_s27   ;;  %s32_s17 = sadd.s32 1, %s3329_s26 }
  0x55   : > { %s29_s12 = ssub.s32 %s3333_s27, %s3527_s22  ;;  %p39_p8 = scmp.ne.s32.totalorder %s3329_s26, %s3325_s25 }
  0x56   : > { %p30_p4 = scmp.eq.s32.totalorder %s29_s12, 0  ;;  %p40_p13 = scmp.eq.s32.totalorder %s3333_s27, 0 }
  0x57   : > { %p2997_p6 = scmp.lt.s32.totalorder %s3333_s27, 2  ;;  %p4032_p3 = scmp.eq.s32.totalorder %s3408_s28, 1 }
  0x58   : > { %s3537_s18 = scalar_select %p30_p4, %s3329_s26, %s32_s17  }
  0x59   : > { %p41_p10 = por %p40_p13, %p39_p8  ;;  %p3541_p5 = por %p4032_p3, %p39_p8 }
  0x5a   : > { %s269_s20 = sand.u32 1, %s3329_s26   ;;  %s2587_s21 = sshll.u32 %s3333_s27, 10 }
  0x5b   : > { %s2449_s16 = sshll.u32 %s269_s20, 6  ;;  %s3550_s23 = scalar_lea.hbm %s4014_s0, %s2587_s21 }
  0x5c   : > { %s273_s29 = scalar_lea.vmem [#allocation4], %s2449_s16  ;;  %p3552_p11 = pnand %p2997_p6, %p41_p10 }
  0x5d   : > { %s280_s10 = sshll.u32 %s273_s29, 4  ;;  %s3558_s14 = scalar_lea.sflag [#allocation5], %s269_s20  ;;  %s3556_s10 = int_to_ptr.vmem [resolvable:$true] %s280_s10 }
  0x5e   : > { %s3229_s8 = scalar_lea.hbm %s3550_s23, 1024  ;;  %p3231_p9 = pneg %p3552_p11 }
  0x5f   : > { %p3230_p7 = scmp.ne.s32.totalorder %s3550_s23, %s3229_s8  ;;  %s3234_s21 = scalar_lea.hbm %s4014_s0, 2048 }
  0x60   : > { %p3235_p1 = scmp.lt.u32.totalorder %s3550_s23, %s4014_s0  ;;  %p3236_p2 = scmp.lt.u32.totalorder %s3234_s21, %s3229_s8 }
  0x61   : > { %p3232_p12 = pnand %p3231_p9, %p3230_p7  ;;  %p3238_p8 = scmp.lt.u32.totalorder %s3229_s8, %s3550_s23 }
  0x62   : > { %p3237_p4 = por %p3236_p2, %p3235_p1 }
  0x63   : > { %p3233_p0 = pneg %p3232_p12 }
  0x64   : > { %p3239_p13 = por %p3238_p8, %p3237_p4 }
  0x66   : > { %p3240_p6 = pnand %p3239_p13, %p3233_p0 }
  0x68   : > { %3243 = shalt.err (!%p3240_p6)
}
  0x69   : > { %s3244_s20 = scalar_lea.vmem %s3556_s10, 1024  ;;  %s3340_s15 = smov [#allocation4]  }
  0x6a   : > { %p3245_p10 = scmp.ne.s32.totalorder %s3556_s10, %s3244_s20  ;;  %s3249_s29 = sshll.u32 %s3340_s15, 4  ;;  %s3250_s29 = int_to_ptr.vmem [resolvable:$false] %s3249_s29 }
  0x6b   : > { %s3251_s12 = scalar_lea.vmem %s3250_s29, 2048  ;;  %p3252_p12 = scmp.lt.s32.totalorder %s3556_s10, %s3250_s29 }
  0x6c   : > { %p3247_p3 = pnand %p3245_p10, %p3231_p9  ;;  %p3253_p1 = scmp.lt.s32.totalorder %s3251_s12, %s3244_s20 }
  0x6e   : > { %p3248_p7 = pneg %p3247_p3  ;;  %p3254_p2 = por %p3253_p1, %p3252_p12 }
  0x70   : > { %p3255_p4 = pnand %p3254_p2, %p3248_p7 }
  0x72   : > { %3258 = shalt.err (!%p3255_p4)
}
  0x73   : > { %s3341_s8 = smov 128   ;;  %s3342_s17 = smov 8  }
  0x74   : > { %2989 = dma.hbm_to_vmem [thread:$0]  (!%p3552_p11), %s3550_s23, 1024, %s3556_s10, %s3558_s14, %s3341_s8, %s3341_s8, %s3342_s17  }
  0x75   : > { %p4035_p9 = scmp.ne.s32.totalorder %s4029_s9, 0 }
  0x76   : > { %s3589_s21 = sand.u32 (!%p4035_p9), 1, %s3325_s25   ;;  %p4036_p0 = scmp.ne.s32.totalorder (!%p4035_p9), %s4026_s30, 0 }
  0x77   : > { %292 = sbr.rel (%p4035_p9) target bundleno = 989 (0x3dd), region = 48  ;;  %s2453_s16 = sshll.u32 (!%p4035_p9), %s3589_s21, 6 }
  0x78   : > { %s295_s13 = scalar_lea.sflag (!%p4035_p9), [#allocation5], %s3589_s21  ;;  %s3593_s20 = scalar_lea.vmem (!%p4035_p9), [#allocation4], %s2453_s16 }
  0x7e   : > { %3304 = dma.done.wait (%p4036_p0), %s295_s13, 1024  }
  0x7f   : > { %3306 = vsyncadd (%p4036_p0), %s295_s13, 4294966272  ;;  %p4037_p11 = scmp.eq.s32.totalorder %s3408_s28, 0 }
  0x81   : > { %3308 = dma.done.wait (%p4037_p11), [#allocation8], 10240   ;;  %p4038_p8 = pmov %p4037_p11 }
  0x83   : > { %3310 = vsyncadd (%p4038_p8), [#allocation8], 4294957056  ;;  %p4039_p13 = pmov %p4038_p8 }
  0x84   : > { %p4040_p6 = pmov %p4038_p8 }
  0x85   : > { %3312 = dma.done.wait (%p4039_p13), [#allocation11], 1024  }
  0x86   : > { %3314 = vsyncadd (%p4040_p6), [#allocation11], 4294966272  ;;  %v3044_v0 = vld [vmem:[#allocation7] sm:$0xff]   ;;  %v3045_v1 = vld [vmem:[#allocation7 + $0x8] sm:$0xff]   ;;  %vm498_vm0 = vcmask 1040384   ;;  %v3343_v34 = vmov 0  }
  0x87   : > { %2800 = vmatprep.subr.bf16.mxu0 %v3044_v0  ;;  %v3046_v2 = vld [vmem:[#allocation7 + $0x10] sm:$0xff]   ;;  %v3047_v3 = vld [vmem:[#allocation7 + $0x18] sm:$0xff]   ;;  %v342_v4 = vld [vmem:[%s3593_s20] sm:$0xff]  ;;  %vm499_vm1 = vsmask.f32 256  ;;  %vm681_vm5 = vcmask 1043456  }
  0x88   : > { %2801 = vmatpush3.bf16.msra.mxu0 %v3044_v0  ;;  %v343_v5 = vld [vmem:[%s3593_s20 + $0x8] sm:$0xff]  ;;  %v3048_v7 = vld [vmem:[#allocation7 + $0x20] sm:$0xff]   ;;  %v3050_v9 = vld [vmem:[#allocation7 + $0x30] sm:$0xff]   ;;  %vm531_vm2 = vsmask.f32 7938  ;;  %vm1004_vm7 = vcmask 1042432  }
  0x89   : > { %2802 = vmatprep.subr.bf16.mxu0 %v3045_v1  ;;  %v350_v6 = vpack.c.bf16 %v343_v5, %v342_v4  ;;  %v3049_v8 = vld [vmem:[#allocation7 + $0x28] sm:$0xff]   ;;  %v3051_v10 = vld [vmem:[#allocation7 + $0x38] sm:$0xff]   ;;  %v344_v11 = vld [vmem:[%s3593_s20 + $0x10] sm:$0xff]  ;;  %vm1005_vm8 = vcmask 1046532   ;;  %vm796_vm9 = vsmask.f32 3328 }
  0x8a   : > { %v345_v12 = vld [vmem:[%s3593_s20 + $0x18] sm:$0xff]  ;;  %v346_v13 = vld [vmem:[%s3593_s20 + $0x20] sm:$0xff]  ;;  %v347_v14 = vld [vmem:[%s3593_s20 + $0x28] sm:$0xff]  ;;  %vm797_vm10 = vsmask.f32 7440  ;;  %s2457_s15 = sshll.u32 %s3589_s21, 5 }
  0x8b   : > { %2816 = vmatprep.mubr.bf16.mxu0 %v350_v6  ;;  %v351_v15 = vpack.c.bf16 %v345_v12, %v344_v11  ;;  %v352_v16 = vpack.c.bf16 %v347_v14, %v346_v13  ;;  %v348_v17 = vld [vmem:[%s3593_s20 + $0x30] sm:$0xff]  ;;  %v349_v18 = vld [vmem:[%s3593_s20 + $0x38] sm:$0xff]  ;;  %vm3615_vm3 = vmand %vm498_vm0, %vm499_vm1  ;;  %s340_s29 = scalar_lea.vmem [#allocation12], %s2457_s15  ;;  %s2596_s8 = sshll.u32 %s3408_s28, 9 }
  0x8c   : > { %2803 = vmatpush3.bf16.msra.mxu0 %v3045_v1  ;;  %v353_v19 = vpack.c.bf16 %v349_v18, %v348_v17  ;;  %v501_v21 = vld [vmem:[#allocation2] sm:$0x1]  ;;  %v510_v22 = vld [vmem:[#allocation2 + $0x18] sm:$0x1]  ;;  %v528_v25 = vld [vmem:[#allocation2 + $0x48] sm:$0x1]  ;;  %s3970_s13 = scalar_lea.hbm %s4021_s7, %s2596_s8 }
  0x8d   : > { %2804 = vmatprep.subr.bf16.mxu0 %v3046_v2  ;;  %v502_v23 = vsel %vm3615_vm3, 0, %v501_v21  ;;  %v511_v24 = vsel %vm3615_vm3, 0, %v510_v22  ;;  %vm3624_vm4 = vmand %vm498_vm0, %vm531_vm2  ;;  %v533_v27 = vld [vmem:[#allocation2 + $0x4] sm:$0x1]  ;;  %v529_v28 = vsel %vm3615_vm3, 0, %v528_v25  ;;  %v3052_v47 = vld [vmem:[#allocation9 + $0x140] sm:$0xff]  }
  0x8e   : > { %503 = vst [vmem:[#allocation2] sm:$0x1] %v502_v23  ;;  %512 = vst [vmem:[#allocation2 + $0x18] sm:$0x1] %v511_v24  ;;  %v534_v29 = vsel %vm3624_vm4, 0, %v533_v27  ;;  %v3055_v56 = vld [vmem:[#allocation9 + $0x148] sm:$0xff]  }
  0x8f   : > { %v542_v30 = vld [vmem:[#allocation2 + $0x1c] sm:$0x1]  ;;  %v560_v31 = vld [vmem:[#allocation2 + $0x4c] sm:$0x1]  ;;  %530 = vst [vmem:[#allocation2 + $0x48] sm:$0x1] %v529_v28  ;;  %vm3697_vm6 = vmand %vm681_vm5, %vm531_vm2 }
  0x90   : > { %2805 = vmatpush3.bf16.msra.mxu0 %v3046_v2  ;;  %535 = vst [vmem:[#allocation2 + $0x4] sm:$0x1] %v534_v29  ;;  %v543_v32 = vsel %vm3624_vm4, 0, %v542_v30  ;;  %v561_v33 = vsel %vm3624_vm4, 0, %v560_v31  ;;  %563 = vst [vmem:[#allocation2] sm:$0xf] %v3343_v34 }
  0x91   : > { %2806 = vmatprep.subr.bf16.mxu0 %v3047_v3  ;;  %v504_v35 = vld [vmem:[#allocation2 + $0x8] sm:$0x1]  ;;  %v536_v36 = vld [vmem:[#allocation2 + $0xc] sm:$0x1]  ;;  %544 = vst [vmem:[#allocation2 + $0x1c] sm:$0x1] %v543_v32  ;;  %vm3744_vm11 = vmor %vm1004_vm7, %vm1005_vm8 }
  0x92   : > { %562 = vst [vmem:[#allocation2 + $0x4c] sm:$0x1] %v561_v33  ;;  %564 = vst [vmem:[#allocation2 + $0x4] sm:$0x1] %v3343_v34  ;;  %v505_v37 = vsel %vm3615_vm3, 0, %v504_v35  ;;  %v537_v38 = vsel %vm3624_vm4, 0, %v536_v36 }
  0x93   : > { %566 = vst [vmem:[#allocation2 + $0x48] sm:$0xf] %v3343_v34  ;;  %v513_v39 = vld [vmem:[#allocation2 + $0x20] sm:$0x1]  ;;  %v545_v40 = vld [vmem:[#allocation2 + $0x24] sm:$0x1]  ;;  %vm3787_vm12 = vmor %vm796_vm9, %vm797_vm10 }
  0x94   : > { %2807 = vmatpush3.bf16.msra.mxu0 %v3047_v3  ;;  %567 = vst [vmem:[#allocation2 + $0x4c] sm:$0x1] %v3343_v34  ;;  %506 = vst [vmem:[#allocation2 + $0x8] sm:$0x1] %v505_v37  ;;  %v514_v41 = vsel %vm3615_vm3, 0, %v513_v39  ;;  %v546_v42 = vsel %vm3624_vm4, 0, %v545_v40 }
  0x95   : > { %2808 = vmatprep.subr.bf16.mxu0 %v3048_v7  ;;  %538 = vst [vmem:[#allocation2 + $0xc] sm:$0x1] %v537_v38  ;;  %v507_v43 = vld [vmem:[#allocation2 + $0x10] sm:$0x1]  ;;  %v539_v44 = vld [vmem:[#allocation2 + $0x14] sm:$0x1] }
  0x96   : > { %515 = vst [vmem:[#allocation2 + $0x20] sm:$0x1] %v514_v41  ;;  %547 = vst [vmem:[#allocation2 + $0x24] sm:$0x1] %v546_v42  ;;  %v508_v45 = vsel %vm3615_vm3, 0, %v507_v43  ;;  %v540_v46 = vsel %vm3624_vm4, 0, %v539_v44 }
  0x97   : > { %509 = vst [vmem:[#allocation2 + $0x10] sm:$0x1] %v508_v45  ;;  %541 = vst [vmem:[#allocation2 + $0x14] sm:$0x1] %v540_v46  ;;  %v516_v48 = vld [vmem:[#allocation2 + $0x28] sm:$0x1] }
  0x98   : > { %2809 = vmatpush3.bf16.msra.mxu0 %v3048_v7  ;;  %v517_v49 = vsel %vm3615_vm3, 0, %v516_v48  ;;  %v548_v50 = vld [vmem:[#allocation2 + $0x2c] sm:$0x1]  ;;  %v522_v51 = vld [vmem:[#allocation2 + $0x38] sm:$0x1]  ;;  %v3056_v4 = vld [vmem:[#allocation9 + $0x108] sm:$0xff]  }
  0x99   : > { %2810 = vmatprep.subr.bf16.mxu0 %v3049_v8  ;;  %v554_v52 = vld [vmem:[#allocation2 + $0x3c] sm:$0x1]  ;;  %518 = vst [vmem:[#allocation2 + $0x28] sm:$0x1] %v517_v49  ;;  %v523_v53 = vsel %vm3615_vm3, 0, %v522_v51  ;;  %v549_v55 = vsel %vm3624_vm4, 0, %v548_v50 }
  0x9a   : > { %v555_v54 = vsel %vm3624_vm4, 0, %v554_v52  ;;  %524 = vst [vmem:[#allocation2 + $0x38] sm:$0x1] %v523_v53  ;;  %550 = vst [vmem:[#allocation2 + $0x2c] sm:$0x1] %v549_v55  ;;  %v3053_v59 = vld [vmem:[#allocation9 + $0x100] sm:$0xff]  }
  0x9b   : > { %556 = vst [vmem:[#allocation2 + $0x3c] sm:$0x1] %v555_v54  ;;  %v525_v57 = vld [vmem:[#allocation2 + $0x40] sm:$0x1]  ;;  %v557_v58 = vld [vmem:[#allocation2 + $0x44] sm:$0x1]  ;;  %2632 = vmatprep.subr.bf16.mxu1 %v3053_v59 }
  0x9c   : > { %2811 = vmatpush3.bf16.msra.mxu0 %v3049_v8  ;;  %v526_v60 = vsel %vm3615_vm3, 0, %v525_v57  ;;  %v558_v61 = vsel %vm3624_vm4, 0, %v557_v58  ;;  %v3054_v62 = vld [vmem:[#allocation9 + $0xc0] sm:$0xff]   ;;  %v3058_v63 = vld [vmem:[#allocation9 + $0x150] sm:$0xff]   ;;  %v519_v0 = vld [vmem:[#allocation2 + $0x30] sm:$0x1] }
  0x9d   : > { %2812 = vmatprep.subr.bf16.mxu0 %v3050_v9  ;;  %527 = vst [vmem:[#allocation2 + $0x40] sm:$0x1] %v526_v60  ;;  %559 = vst [vmem:[#allocation2 + $0x44] sm:$0x1] %v558_v61  ;;  %v551_v1 = vld [vmem:[#allocation2 + $0x34] sm:$0x1]  ;;  %2633 = vmatpush3.bf16.msra.mxu1 %v3054_v62 }
  0x9e   : > { %v520_v2 = vsel %vm3615_vm3, 0, %v519_v0  ;;  %v552_v3 = vsel %vm3624_vm4, 0, %v551_v1  ;;  %v3057_v5 = vld [vmem:[#allocation9 + $0xc8] sm:$0xff]   ;;  %2634 = vmatprep.subr.bf16.mxu1 %v3056_v4  ;;  %v3061_v6 = vld [vmem:[#allocation9 + $0x158] sm:$0xff]   ;;  %v3059_v7 = vld [vmem:[#allocation9 + $0x110] sm:$0xff]   ;;  %s2341_s12 = sshll.u32 %s340_s29, 4  ;;  %s3965_s12 = int_to_ptr.vmem [resolvable:$true] %s2341_s12 }
  0x9f   : > { %521 = vst [vmem:[#allocation2 + $0x30] sm:$0x1] %v520_v2  ;;  %553 = vst [vmem:[#allocation2 + $0x34] sm:$0x1] %v552_v3  ;;  %v3060_v8 = vld [vmem:[#allocation9 + $0xd0] sm:$0xff]   ;;  %v3063_v11 = vld [vmem:[#allocation9 + $0xd8] sm:$0xff]  }
  0xa0   : > { %2813 = vmatpush3.bf16.msra.mxu0 %v3050_v9  ;;  %v3064_v9 = vld [vmem:[#allocation9 + $0x160] sm:$0xff]   ;;  %v3067_v12 = vld [vmem:[#allocation9 + $0x168] sm:$0xff]   ;;  %v3071_v18 = vld [vmem:[#allocation9 + $0x130] sm:$0xff]   ;;  %s3259_s28 = scalar_lea.vmem %s3965_s12, 512  ;;  %s3344_s30 = smov [#allocation12]  }
  0xa1   : > { %2814 = vmatprep.subr.bf16.mxu0 %v3051_v10  ;;  %2635 = vmatpush3.bf16.msra.mxu1 %v3057_v5  ;;  %v3065_v13 = vld [vmem:[#allocation9 + $0x120] sm:$0xff]   ;;  %v3069_v17 = vld [vmem:[#allocation9 + $0xe8] sm:$0xff]   ;;  %v3073_v21 = vld [vmem:[#allocation9 + $0x178] sm:$0xff]   ;;  %p3260_p10 = scmp.ne.s32.totalorder %s3965_s12, %s3259_s28  ;;  %s3263_s9 = sshll.u32 %s3344_s30, 4  ;;  %s3264_s9 = int_to_ptr.vmem [resolvable:$false] %s3263_s9 }
  0xa2   : > { %2636 = vmatprep.subr.bf16.mxu1 %v3059_v7  ;;  %v3066_v14 = vld [vmem:[#allocation9 + $0xe0] sm:$0xff]   ;;  %v3074_v22 = vld [vmem:[#allocation9 + $0x138] sm:$0xff]   ;;  %v695_v58 = vld [vmem:[#allocation2 + $0x18] sm:$0xf]  ;;  %s3265_s23 = scalar_lea.vmem %s3264_s9, 1024  ;;  %p3266_p12 = scmp.lt.s32.totalorder %s3965_s12, %s3264_s9 }
  0xa3   : > { %v3664_v23 = vld [vmem:[#allocation9 + $0x80] sm:$0xff]   ;;  %v3075_v24 = vld [vmem:[#allocation9 + $0xf8] sm:$0xff]   ;;  %v698_v59 = vld [vmem:[#allocation2 + $0x1c] sm:$0x1]  ;;  %p3261_p3 = pnand %p3260_p10, %p3541_p5  ;;  %p3267_p1 = scmp.lt.s32.totalorder %s3265_s23, %s3259_s28 }
  0xa4   : > { %2815 = vmatpush3.bf16.msra.mxu0 %v3051_v10  ;;  %v3062_v10 = vld [vmem:[#allocation9 + $0x118] sm:$0xff]   ;;  %v3077_v25 = vld [vmem:[#allocation9 + $0x40] sm:$0xff]  }
  0xa5   : > { %2824 = vmatprep.subr.bf16.mxu0 %v3052_v47  ;;  %2637 = vmatpush3.bf16.msra.mxu1 %v3060_v8  ;;  %v776_v26 = vld [vmem:[#allocation2] sm:$0xf]  ;;  %v3676_v36 = vld [vmem:[#allocation2 + $0x4] sm:$0x1]  ;;  %v3686_v45 = vld [vmem:[#allocation2 + $0x48] sm:$0xf]  ;;  %p3262_p7 = pneg %p3261_p3  ;;  %p3268_p2 = por %p3267_p1, %p3266_p12 }
  0xa6   : > { %2638 = vmatprep.subr.bf16.mxu1 %v3062_v10  ;;  %v3670_v27 = vld [vmem:[%s4016_s2] ss:$0 sm:$0xff]  ;;  %v800_v28 = vshrl.u32 %v776_v26, 16  ;;  %v803_v29 = vshll.u32 %v776_v26, 16  ;;  %v3674_v35 = vld [vmem:[#allocation2] sm:$0xe] }
  0xa7   : > { %2817 = vmatmul.mubr.bf16.vlgmr.msra.gmra.mrb[0].mxu0 %v351_v15  ;;  %v3070_v15 = vld [vmem:[#allocation9 + $0x170] sm:$0xff]   ;;  %v3679_v40 = vld [vmem:[#allocation2 + $0x4] sm:$0x1]  ;;  %v2485_v48 = vrot.slane %v3674_v35, 9  ;;  %v1009_v51 = vrot.slane %v3676_v36, 5  ;;  %p3269_p4 = pnand %p3268_p2, %p3262_p7 }
  0xa8   : > { %2820 = vmatprep.mubr.bf16.mxu0 %v352_v16  ;;  %2825 = vmatpush3.bf16.msra.mxu0 %v3052_v47  ;;  %v3068_v16 = vld [vmem:[#allocation9 + $0x128] sm:$0xff]   ;;  %v3681_v41 = vrot.slane %v800_v28, 4  ;;  %v3683_v42 = vrot.slane %v803_v29, 5  ;;  %v809_v52 = vshll.u32 %v3679_v40, 16  ;;  %v683_v1 = vld [vmem:[#allocation2 + $0x8] sm:$0xf] }
  0xa9   : > { %2826 = vmatprep.subr.bf16.mxu0 %v3055_v56  ;;  %2639 = vmatpush3.bf16.msra.mxu1 %v3063_v11  ;;  %v686_v8 = vld [vmem:[#allocation2 + $0xc] sm:$0x1] }
  0xaa   : > { %2640 = vmatprep.subr.bf16.mxu1 %v3065_v13  ;;  %v806_v55 = vor.u32 %v3683_v42, %v3681_v41  ;;  %v929_v42 = vshll.u32 %v3686_v45, 16 }
  0xac   : > { %2827 = vmatpush3.bf16.msra.mxu0 %v3055_v56  ;;  %v926_v56 = vshrl.u32 %v3686_v45, 16 }
  0xad   : > { %2828 = vmatprep.subr.bf16.mxu0 %v3058_v63  ;;  %2641 = vmatpush3.bf16.msra.mxu1 %v3066_v14 }
  0xae   : > { %2642 = vmatprep.subr.bf16.mxu1 %v3068_v16  ;;  %v701_v16 = vld [vmem:[#allocation2 + $0x20] sm:$0xf]  ;;  %v3737_v41 = vrot.slane %v926_v56, 4 }
  0xaf   : > { %2821 = vmatmul.mubr.bf16.gmra.mrb[4].mxu0 %v353_v19  ;;  %v3072_v19 = vld [vmem:[#allocation9 + $0xf0] sm:$0xff]  }
  0xb0   : > { %2829 = vmatpush3.bf16.msra.mxu0 %v3058_v63 }
  0xb1   : > { %2830 = vmatprep.subr.bf16.mxu0 %v3061_v6  ;;  %2643 = vmatpush3.bf16.msra.mxu1 %v3069_v17 }
  0xb2   : > { %2644 = vmatprep.subr.bf16.mxu1 %v3071_v18 }
  0xb4   : > { %2831 = vmatpush3.bf16.msra.mxu0 %v3061_v6 }
  0xb5   : > { %2832 = vmatprep.subr.bf16.mxu0 %v3064_v9  ;;  %2645 = vmatpush3.bf16.msra.mxu1 %v3072_v19 }
  0xb6   : > { %2646 = vmatprep.subr.bf16.mxu1 %v3074_v22  ;;  %v704_v22 = vld [vmem:[#allocation2 + $0x24] sm:$0x1] }
  0xb8   : > { %2833 = vmatpush3.bf16.msra.mxu0 %v3064_v9 }
  0xb9   : > { %2834 = vmatprep.subr.bf16.mxu0 %v3067_v12  ;;  %2647 = vmatpush3.bf16.msra.mxu1 %v3075_v24 }
  0xba   : > { %2684 = vmatprep.subr.bf16.mxu1 %v3077_v25 }
  0xbc   : > { %2835 = vmatpush3.bf16.msra.mxu0 %v3067_v12 }
  0xbd   : > { %2836 = vmatprep.subr.bf16.mxu0 %v3070_v15 }
  0xc0   : > { %2837 = vmatpush3.bf16.msra.mxu0 %v3070_v15 }
  0xc1   : > { %2838 = vmatprep.subr.bf16.mxu0 %v3073_v21 }
  0xc4   : > { %2839 = vmatpush3.bf16.msra.mxu0 %v3073_v21 }
  0xc5   : > { %2848 = vmatprep.subr.bf16.mxu0 %v3664_v23 }
 0x17a   : > { %v2818_v30 = vpop.f32.mrb[0].mxu0 }
 0x17b   : > { %v468_v31 = vadd.f32 %v2818_v30, %v3670_v27  ;;  %v459_v32 = vpop.f32.mrb[1].mxu0 }
 0x17c   : > { %v460_v33 = vadd.f32 %v3670_v27, %v459_v32  ;;  %v2819_v34 = vpop.f32.mrb[2].mxu0  ;;  %v692_v32 = vld [vmem:[#allocation2 + $0x14] sm:$0x1] }
 0x17d   : > { %v492_v37 = vmax.f32 %v468_v31, 0.0  ;;  %v471_v38 = vadd.f32 %v2819_v34, %v3670_v27  ;;  %v462_v39 = vpop.f32.mrb[3].mxu0  ;;  %v689_v31 = vld [vmem:[#allocation2 + $0x10] sm:$0xf] }
 0x17e   : > { %v490_v43 = vmax.f32 %v460_v33, 0.0  ;;  %v463_v44 = vadd.f32 %v3670_v27, %v462_v39 }
 0x17f   : > { %v2590_v46 = vpack.c.bf16 %v492_v37, %v492_v37  ;;  %v493_v47 = vmax.f32 %v471_v38, 0.0 }
 0x180   : > { %v2588_v49 = vpack.c.bf16 %v490_v43, %v490_v43  ;;  %v491_v50 = vmax.f32 %v463_v44, 0.0 }
 0x181   : > { %v617_v53 = vshrl.u32 %v2590_v46, 16  ;;  %v2591_v54 = vpack.c.bf16 %v493_v47, %v493_v47  ;;  %v620_v57 = vshll.u32 %v2590_v46, 16 }
 0x182   : > { %v601_v60 = vshrl.u32 %v2588_v49, 16  ;;  %v604_v61 = vshll.u32 %v2588_v49, 16  ;;  %v2589_v62 = vpack.c.bf16 %v491_v50, %v491_v50  ;;  %v2822_v63 = vpop.f32.mrb[4].mxu0 }
 0x183   : > { %v619_v0 = vrot.slane %v617_v53, 7  ;;  %v625_v2 = vshrl.u32 %v2591_v54, 16  ;;  %v628_v3 = vshll.u32 %v2591_v54, 16  ;;  %v484_v4 = vadd.f32 %v2822_v63, %v3670_v27  ;;  %v475_v5 = vpop.f32.mrb[5].mxu0  ;;  %v3720_v54 = vld [vmem:[#allocation2 + $0x48] sm:$0xe] }
 0x184   : > { %v603_v7 = vrot.slane %v601_v60, 7  ;;  %v609_v9 = vshrl.u32 %v2589_v62, 16  ;;  %v612_v10 = vshll.u32 %v2589_v62, 16  ;;  %v476_v11 = vadd.f32 %v3670_v27, %v475_v5  ;;  %v2823_v12 = vpop.f32.mrb[6].mxu0  ;;  %v707_v62 = vld [vmem:[#allocation2 + $0x28] sm:$0xf] }
 0x185   : > { %v622_v13 = vor.u32 %v620_v57, %v619_v0  ;;  %v623_v14 = vrot.slane %v619_v0, 4  ;;  %v627_v15 = vrot.slane %v625_v2, 7  ;;  %v496_v17 = vmax.f32 %v484_v4, 0.0  ;;  %v478_v18 = vpop.f32.mrb[7].mxu0  ;;  %v3722_v57 = vld [vmem:[#allocation2 + $0x4c] sm:$0x1] }
 0x186   : > { %v606_v19 = vor.u32 %v604_v61, %v603_v7  ;;  %v607_v21 = vrot.slane %v603_v7, 4  ;;  %v611_v24 = vrot.slane %v609_v9, 7  ;;  %v494_v25 = vmax.f32 %v476_v11, 0.0  ;;  %v710_v9 = vld [vmem:[#allocation2 + $0x2c] sm:$0x1] }
 0x187   : > { %v696_v26 = vsel %vm3697_vm6, %v622_v13, %v695_v58  ;;  %v699_v28 = vsel %vm3615_vm3, %v623_v14, %v698_v59  ;;  %v630_v29 = vor.u32 %v628_v3, %v627_v15  ;;  %v631_v30 = vrot.slane %v627_v15, 4  ;;  %v719_v3 = vld [vmem:[#allocation2 + $0x38] sm:$0xf]  ;;  %v3740_v13 = vld [vmem:[#allocation2 + $0x4c] sm:$0x1] }
 0x188   : > { %697 = vst [vmem:[#allocation2 + $0x18] sm:$0xf] %v696_v26  ;;  %700 = vst [vmem:[#allocation2 + $0x1c] sm:$0x1] %v699_v28  ;;  %v684_v33 = vsel %vm3697_vm6, %v606_v19, %v683_v1  ;;  %v687_v34 = vsel %vm3615_vm3, %v607_v21, %v686_v8  ;;  %v614_v37 = vor.u32 %v612_v10, %v611_v24  ;;  %v615_v38 = vrot.slane %v611_v24, 4 }
 0x189   : > { %685 = vst [vmem:[#allocation2 + $0x8] sm:$0xf] %v684_v33  ;;  %688 = vst [vmem:[#allocation2 + $0xc] sm:$0x1] %v687_v34  ;;  %v702_v39 = vsel %vm3697_vm6, %v630_v29, %v701_v16  ;;  %v705_v43 = vsel %vm3615_vm3, %v631_v30, %v704_v22  ;;  %v2594_v44 = vpack.c.bf16 %v496_v17, %v496_v17  ;;  %v3727_v1 = vrot.slane %v806_v55, 4 }
 0x18a   : > { %v2592_v46 = vpack.c.bf16 %v494_v25, %v494_v25  ;;  %703 = vst [vmem:[#allocation2 + $0x20] sm:$0xf] %v702_v39  ;;  %706 = vst [vmem:[#allocation2 + $0x24] sm:$0x1] %v705_v43  ;;  %v690_v47 = vsel %vm3697_vm6, %v614_v37, %v689_v31  ;;  %v693_v49 = vsel %vm3615_vm3, %v615_v38, %v692_v32  ;;  %v2494_v5 = vrot.slane %v3720_v54, 9 }
 0x18b   : > { %v487_v50 = vadd.f32 %v2823_v12, %v3670_v27  ;;  %v479_v53 = vadd.f32 %v3670_v27, %v478_v18  ;;  %691 = vst [vmem:[#allocation2 + $0x10] sm:$0xf] %v690_v47  ;;  %694 = vst [vmem:[#allocation2 + $0x14] sm:$0x1] %v693_v49  ;;  %v649_v58 = vshrl.u32 %v2594_v44, 16  ;;  %v652_v59 = vshll.u32 %v2594_v44, 16 }
 0x18c   : > { %v633_v60 = vshrl.u32 %v2592_v46, 16  ;;  %v636_v61 = vshll.u32 %v2592_v46, 16  ;;  %v3731_v27 = vrot.slane %v809_v52, 5  ;;  %v1045_v7 = vrot.slane %v3722_v57, 5  ;;  %v722_v8 = vld [vmem:[#allocation2 + $0x3c] sm:$0x1] }
 0x18d   : > { %v497_v63 = vmax.f32 %v487_v50, 0.0  ;;  %v495_v0 = vmax.f32 %v479_v53, 0.0  ;;  %v651_v2 = vrot.slane %v649_v58, 7  ;;  %v725_v30 = vld [vmem:[#allocation2 + $0x40] sm:$0xf]  ;;  %v3764_v37 = vrot.slane %v929_v42, 5 }
 0x18e   : > { %v635_v4 = vrot.slane %v633_v60, 7  ;;  %v728_v31 = vld [vmem:[#allocation2 + $0x44] sm:$0x1]  ;;  %v713_v32 = vld [vmem:[#allocation2 + $0x30] sm:$0xf]  ;;  %v935_v38 = vshll.u32 %v3740_v13, 16  ;;  %v1010_v47 = vsel %vm3744_vm11, %v2485_v48, %v1009_v51 }
 0x18f   : > { %v2595_v10 = vpack.c.bf16 %v497_v63, %v497_v63  ;;  %v2593_v11 = vpack.c.bf16 %v495_v0, %v495_v0  ;;  %v654_v40 = vor.u32 %v652_v59, %v651_v2  ;;  %v655_v52 = vrot.slane %v651_v2, 4  ;;  %v716_v33 = vld [vmem:[#allocation2 + $0x34] sm:$0x1]  ;;  %v970_v34 = vld [vmem:[#allocation2 + $0x18] sm:$0xe] }
 0x190   : > { %v638_v55 = vor.u32 %v636_v61, %v635_v4  ;;  %v639_v12 = vrot.slane %v635_v4, 4  ;;  %v966_v18 = vld [vmem:[#allocation2 + $0x8] sm:$0xe]  ;;  %v967_v44 = vld [vmem:[#allocation2 + $0xc] sm:$0x1]  ;;  %v2488_v4 = vrot.slane %v970_v34, 9 }
 0x191   : > { %v657_v14 = vshrl.u32 %v2595_v10, 16  ;;  %v660_v15 = vshll.u32 %v2595_v10, 16  ;;  %v641_v16 = vshrl.u32 %v2593_v11, 16  ;;  %v644_v17 = vshll.u32 %v2593_v11, 16  ;;  %v3748_v56 = vld [vmem:[#allocation2 + $0x20] sm:$0xf] }
 0x192   : > { %v3750_v45 = vld [vmem:[#allocation2 + $0x20] sm:$0xe]  ;;  %v3752_v21 = vld [vmem:[#allocation2 + $0x24] sm:$0x1]  ;;  %v720_v22 = vsel %vm3697_vm6, %v654_v40, %v719_v3  ;;  %v723_v24 = vsel %vm3615_vm3, %v655_v52, %v722_v8  ;;  %v708_v25 = vsel %vm3697_vm6, %v638_v55, %v707_v62  ;;  %v711_v26 = vsel %vm3615_vm3, %v639_v12, %v710_v9  ;;  %v968_v46 = vld [vmem:[#allocation2 + $0x10] sm:$0xe] }
 0x193   : > { %v856_v28 = vshrl.u32 %v3748_v56, 16  ;;  %v859_v29 = vshll.u32 %v3748_v56, 16  ;;  %721 = vst [vmem:[#allocation2 + $0x38] sm:$0xf] %v720_v22  ;;  %724 = vst [vmem:[#allocation2 + $0x3c] sm:$0x1] %v723_v24 }
 0x194   : > { %709 = vst [vmem:[#allocation2 + $0x28] sm:$0xf] %v708_v25  ;;  %712 = vst [vmem:[#allocation2 + $0x2c] sm:$0x1] %v711_v26  ;;  %v659_v39 = vrot.slane %v657_v14, 7  ;;  %v643_v43 = vrot.slane %v641_v16, 7 }
 0x195   : > { %v2489_v49 = vrot.slane %v3750_v45, 9  ;;  %v1025_v50 = vrot.slane %v3752_v21, 5  ;;  %v969_v53 = vld [vmem:[#allocation2 + $0x14] sm:$0x1]  ;;  %v2486_v58 = vrot.slane %v966_v18, 9  ;;  %v1013_v59 = vrot.slane %v967_v44, 5 }
 0x196   : > { %v662_v60 = vor.u32 %v660_v15, %v659_v39  ;;  %v663_v61 = vrot.slane %v659_v39, 4  ;;  %v646_v62 = vor.u32 %v644_v17, %v643_v43  ;;  %v647_v63 = vrot.slane %v643_v43, 4  ;;  %v971_v0 = vld [vmem:[#allocation2 + $0x1c] sm:$0x1]  ;;  %v778_v2 = vld [vmem:[#allocation2 + $0x8] sm:$0xf] }
 0x197   : > { %v1014_v36 = vsel %vm3744_vm11, %v2486_v58, %v1013_v59  ;;  %v2487_v35 = vrot.slane %v968_v46, 9  ;;  %v1017_v3 = vrot.slane %v969_v53, 5  ;;  %v782_v11 = vld [vmem:[#allocation2 + $0x18] sm:$0xf]  ;;  %v1021_v42 = vrot.slane %v971_v0, 5  ;;  %v3102_v10 = vld [vmem:[#allocation9 + $0xb8] sm:$0xff]  }
 0x198   : > { %v726_v48 = vsel %vm3697_vm6, %v662_v60, %v725_v30  ;;  %v729_v51 = vsel %vm3615_vm3, %v663_v61, %v728_v31  ;;  %v714_v8 = vsel %vm3697_vm6, %v646_v62, %v713_v32  ;;  %v717_v9 = vsel %vm3615_vm3, %v647_v63, %v716_v33  ;;  %v3793_v6 = vld [vmem:[#allocation2] ss:$8 sps:$4 sm:$0xff]   ;;  %v780_v55 = vld [vmem:[#allocation2 + $0x10] sm:$0xf]  ;;  %v779_v14 = vld [vmem:[#allocation2 + $0xc] sm:$0x1] }
 0x199   : > { %727 = vst [vmem:[#allocation2 + $0x40] sm:$0xf] %v726_v48  ;;  %730 = vst [vmem:[#allocation2 + $0x44] sm:$0x1] %v729_v51  ;;  %v3791_v40 = vcombine.low %v1010_v47, %v1014_v36  ;;  %v814_v52 = vshrl.u32 %v778_v2, 16  ;;  %v1018_v12 = vsel %vm3744_vm11, %v2487_v35, %v1017_v3  ;;  %v812_v18 = vsel %vm3787_vm12, %v3727_v1, %v3731_v27 }
 0x19a   : > { %715 = vst [vmem:[#allocation2 + $0x30] sm:$0xf] %v714_v8  ;;  %718 = vst [vmem:[#allocation2 + $0x34] sm:$0x1] %v717_v9  ;;  %v3797_v15 = vld [vmem:[#allocation2 + $0x38] sm:$0xf]  ;;  %v1026_v45 = vsel %vm3744_vm11, %v2489_v49, %v1025_v50  ;;  %v3813_v21 = vsel %vm3744_vm11, %v2494_v5, %v1045_v7  ;;  %v1022_v25 = vsel %vm3744_vm11, %v2488_v4, %v1021_v42 }
 0x19b   : > { %v974_v20 = vld [vmem:[#allocation2 + $0x28] sm:$0xe]  ;;  %v975_v16 = vld [vmem:[#allocation2 + $0x2c] sm:$0x1]  ;;  %1067 = vst [vmem:[#allocation3 + $0x10] sm:$0xff] %v3791_v40  ;;  %771 = vst [vmem:[#allocation3] sm:$0xff] %v3793_v6  ;;  %v3821_v30 = vcombine.low %v1018_v12, %v1022_v25 }
 0x19c   : > { %v781_v17 = vld [vmem:[#allocation2 + $0x14] sm:$0x1]  ;;  %v2490_v22 = vrot.slane %v974_v20, 9  ;;  %v1029_v24 = vrot.slane %v975_v16, 5  ;;  %v816_v26 = vrot.slane %v814_v52, 4  ;;  %v817_v31 = vshll.u32 %v778_v2, 16 }
 0x19d   : > { %v3817_v1 = vld [vmem:[#allocation2 + $0x10] ss:$8 sps:$4 sm:$0xff]   ;;  %v3819_v27 = vld [vmem:[#allocation2 + $0x28] sm:$0xf]  ;;  %v823_v57 = vshll.u32 %v779_v14, 16  ;;  %v828_v32 = vshrl.u32 %v780_v55, 16 }
 0x19e   : > { %v898_v54 = vshrl.u32 %v3797_v15, 16  ;;  %v831_v33 = vshll.u32 %v780_v55, 16  ;;  %v842_v5 = vshrl.u32 %v782_v11, 16  ;;  %v845_v7 = vshll.u32 %v782_v11, 16  ;;  %v783_v39 = vld [vmem:[#allocation2 + $0x1c] sm:$0x1] }
 0x19f   : > { %v901_v34 = vshll.u32 %v3797_v15, 16  ;;  %v819_v43 = vrot.slane %v817_v31, 5  ;;  %v830_v44 = vrot.slane %v828_v32, 4  ;;  %v837_v46 = vshll.u32 %v781_v17, 16  ;;  %v978_v4 = vld [vmem:[#allocation2 + $0x38] sm:$0xe] }
 0x1a0   : > { %v870_v47 = vshrl.u32 %v3819_v27, 16  ;;  %v873_v49 = vshll.u32 %v3819_v27, 16  ;;  %v833_v53 = vrot.slane %v831_v33, 5  ;;  %v1030_v58 = vsel %vm3744_vm11, %v2490_v22, %v1029_v24  ;;  %v979_v48 = vld [vmem:[#allocation2 + $0x3c] sm:$0x1]  ;;  %v3081_v16 = vld [vmem:[#allocation9 + $0x88] sm:$0xff]  }
 0x1a1   : > { %v3827_v50 = vld [vmem:[#allocation2 + $0x30] sm:$0xf]  ;;  %v1218_v59 = vrot.slane %v3821_v30, 4  ;;  %v820_v60 = vor.u32 %v819_v43, %v816_v26  ;;  %v825_v61 = vrot.slane %v823_v57, 5  ;;  %v844_v62 = vrot.slane %v842_v5, 4 }
 0x1a2   : > { %v1134_v63 = vld [vmem:[#allocation3 + $0x10] sm:$0xf0]  ;;  %v834_v0 = vor.u32 %v833_v53, %v830_v44  ;;  %v847_v2 = vrot.slane %v845_v7, 5  ;;  %v851_v36 = vshll.u32 %v783_v39, 16  ;;  %v3832_v35 = vcombine.low %v1026_v45, %v1030_v58  ;;  %v976_v3 = vld [vmem:[#allocation2 + $0x30] sm:$0xe] }
 0x1a3   : > { %v884_v51 = vshrl.u32 %v3827_v50, 16  ;;  %v1217_v8 = vrot.slane %v1134_v63, 4  ;;  %v821_v9 = vrot.slane %v820_v60, 4  ;;  %v839_v11 = vrot.slane %v837_v46, 5  ;;  %v785_v42 = vld [vmem:[#allocation2 + $0x24] sm:$0x1] }
 0x1a4   : > { %v887_v52 = vshll.u32 %v3827_v50, 16  ;;  %v835_v55 = vrot.slane %v834_v0, 4  ;;  %v848_v20 = vor.u32 %v847_v2, %v844_v62  ;;  %v1224_v12 = vrot.slane %v3832_v35, 4  ;;  %v977_v14 = vld [vmem:[#allocation2 + $0x34] sm:$0x1]  ;;  %v3084_v62 = vld [vmem:[#allocation9 + $0x90] sm:$0xff]  }
 0x1a5   : > { %v1219_v17 = vsel %vm681_vm5, %v1217_v8, %v1218_v59  ;;  %v826_v45 = vsel %vm3787_vm12, %v821_v9, %v825_v61  ;;  %v853_v22 = vrot.slane %v851_v36, 5  ;;  %v3840_v24 = vld [vmem:[#allocation3] sm:$0xf0]  ;;  %v2491_v25 = vrot.slane %v976_v3, 9  ;;  %v787_v26 = vld [vmem:[#allocation2 + $0x2c] sm:$0x1] }
 0x1a6   : > { %2840 = vmatprep.mubr.bf16.mxu0 %v1219_v17  ;;  %v840_v27 = vsel %vm3787_vm12, %v835_v55, %v839_v11  ;;  %v849_v31 = vrot.slane %v848_v20, 4  ;;  %v3844_v57 = vcombine.low %v812_v18, %v826_v45  ;;  %v1225_v32 = vsel %vm681_vm5, %v1218_v59, %v1224_v12  ;;  %v980_v33 = vld [vmem:[#allocation2 + $0x40] sm:$0xe]  ;;  %v981_v58 = vld [vmem:[#allocation2 + $0x44] sm:$0x1] }
 0x1a7   : > { %2841 = vmatmul.mubr.bf16.vlgmr.msra.gmra.mrb[8].mxu0 %v1225_v32  ;;  %v1033_v5 = vrot.slane %v977_v14, 5  ;;  %v2492_v7 = vrot.slane %v978_v4, 9  ;;  %v1037_v39 = vrot.slane %v979_v48, 5  ;;  %v858_v43 = vrot.slane %v856_v28, 4  ;;  %v3849_v44 = vld [vmem:[#allocation2 + $0x20] ss:$8 sps:$4 sm:$0xff]  }
 0x1a8   : > { %v854_v46 = vsel %vm3787_vm12, %v849_v31, %v853_v22  ;;  %959 = vst [vmem:[#allocation3 + $0x8] sm:$0xff] %v3844_v57  ;;  %2849 = vmatpush3.bf16.msra.mxu0 %v3664_v23  ;;  %v861_v18 = vrot.slane %v859_v29, 5  ;;  %v865_v50 = vshll.u32 %v785_v42, 16  ;;  %v872_v53 = vrot.slane %v870_v47, 4  ;;  %v3866_v0 = vld [vmem:[#allocation2 + $0x30] ss:$8 sps:$4 sm:$0xff]  }
 0x1a9   : > { %v3857_v59 = vcombine.low %v840_v27, %v854_v46  ;;  %v1034_v28 = vsel %vm3744_vm11, %v2491_v25, %v1033_v5  ;;  %v1038_v60 = vsel %vm3744_vm11, %v2492_v7, %v1037_v39  ;;  %2850 = vmatprep.subr.bf16.mxu0 %v3081_v16  ;;  %v875_v61 = vrot.slane %v873_v49, 5  ;;  %v789_v3 = vld [vmem:[#allocation2 + $0x34] sm:$0x1]  ;;  %v791_v4 = vld [vmem:[#allocation2 + $0x3c] sm:$0x1]  ;;  %v3088_v17 = vld [vmem:[#allocation9 + $0x98] sm:$0xff]  }
 0x1aa   : > { %v1211_v63 = vrot.slane %v3840_v24, 4  ;;  %v3864_v23 = vcombine.low %v1034_v28, %v1038_v60  ;;  %v862_v56 = vor.u32 %v861_v18, %v858_v43  ;;  %v879_v29 = vshll.u32 %v787_v26, 16  ;;  %v3873_v45 = vld [vmem:[#allocation2 + $0x40] ss:$8 sps:$4 sm:$0xff]   ;;  %v793_v39 = vld [vmem:[#allocation2 + $0x44] sm:$0x1] }
 0x1ab   : > { %v876_v47 = vor.u32 %v875_v61, %v872_v53  ;;  %v2493_v2 = vrot.slane %v980_v33, 9  ;;  %v1041_v36 = vrot.slane %v981_v58, 5  ;;  %v932_v48 = vor.u32 %v3764_v37, %v3737_v41  ;;  %v792_v22 = vld [vmem:[#allocation2 + $0x40] sm:$0xf]  ;;  %775 = vst [vmem:[#allocation3 + $0x60] sm:$0xff] %v3873_v45  ;;  %v3082_v46 = vld [vmem:[#allocation9 + $0x48] sm:$0xff]  }
 0x1ac   : > { %v1230_v8 = vrot.slane %v3864_v23, 4  ;;  %2851 = vmatpush3.bf16.msra.mxu0 %v3081_v16  ;;  %v863_v49 = vrot.slane %v862_v56, 4  ;;  %v867_v9 = vrot.slane %v865_v50, 5  ;;  %v881_v11 = vrot.slane %v879_v29, 5  ;;  %v3091_v58 = vld [vmem:[#allocation9 + $0xa0] sm:$0xff]   ;;  %v3083_v29 = vld [vmem:[#allocation9 + $0x8] sm:$0xff]  }
 0x1ad   : > { %v877_v42 = vrot.slane %v876_v47, 4  ;;  %2852 = vmatprep.subr.bf16.mxu0 %v3084_v62  ;;  %v1042_v55 = vsel %vm3744_vm11, %v2493_v2, %v1041_v36  ;;  %v886_v20 = vrot.slane %v884_v51, 4  ;;  %v889_v14 = vrot.slane %v887_v52, 5 }
 0x1ae   : > { %v1215_v24 = vrot.slane %v3857_v59, 4  ;;  %v1231_v41 = vsel %vm681_vm5, %v1224_v12, %v1230_v8  ;;  %v868_v37 = vsel %vm3787_vm12, %v863_v49, %v867_v9  ;;  %v3882_v16 = vcombine.low %v1042_v55, %v3813_v21  ;;  %v3080_v12 = vld [vmem:[#allocation9] sm:$0xff]  }
 0x1af   : > { %v1133_v19 = vld [vmem:[#allocation3 + $0x8] sm:$0xf0]  ;;  %2844 = vmatprep.mubr.bf16.mxu0 %v1231_v41  ;;  %v882_v51 = vsel %vm3787_vm12, %v877_v42, %v881_v11  ;;  %v890_v52 = vor.u32 %v889_v14, %v886_v20  ;;  %v893_v25 = vshll.u32 %v789_v3, 16  ;;  %v900_v26 = vrot.slane %v898_v54, 4 }
 0x1b0   : > { %v1214_v27 = vrot.slane %v1133_v19, 4  ;;  %v3889_v31 = vcombine.low %v868_v37, %v882_v51  ;;  %1071 = vst [vmem:[#allocation3 + $0x70] sm:$0xff] %v3882_v16  ;;  %2853 = vmatpush3.bf16.msra.mxu0 %v3084_v62  ;;  %v903_v21 = vrot.slane %v901_v34, 5  ;;  %v907_v32 = vshll.u32 %v791_v4, 16  ;;  %v3085_v3 = vld [vmem:[#allocation9 + $0x50] sm:$0xff]  }
 0x1b1   : > { %v1212_v33 = vrot.slane %v3817_v1, 4  ;;  %v891_v5 = vrot.slane %v890_v52, 4  ;;  %v895_v7 = vrot.slane %v893_v25, 5  ;;  %2854 = vmatprep.subr.bf16.mxu0 %v3088_v17  ;;  %v912_v54 = vshrl.u32 %v792_v22, 16  ;;  %v3098_v37 = vld [vmem:[#allocation9 + $0xb0] sm:$0xff]   ;;  %v3090_v52 = vld [vmem:[#allocation9 + $0x18] sm:$0xff]  }
 0x1b2   : > { %v1216_v43 = vsel %vm681_vm5, %v1214_v27, %v1215_v24  ;;  %v1222_v18 = vrot.slane %v3889_v31, 4  ;;  %v904_v50 = vor.u32 %v903_v21, %v900_v26  ;;  %v909_v53 = vrot.slane %v907_v32, 5  ;;  %v3094_v26 = vld [vmem:[#allocation9 + $0x20] sm:$0xff]   ;;  %v1144_v21 = vld [vmem:[#allocation3 + $0x60] sm:$0xf] }
 0x1b3   : > { %1426 = vmatprep.mubr.bf16.mxu1 %v1216_v43  ;;  %v1213_v15 = vsel %vm681_vm5, %v1211_v63, %v1212_v33  ;;  %v914_v34 = vrot.slane %v912_v54, 4  ;;  %v915_v28 = vshll.u32 %v792_v22, 16  ;;  %v896_v61 = vsel %vm3787_vm12, %v891_v5, %v895_v7  ;;  %v3095_v63 = vld [vmem:[#allocation9 + $0xa8] sm:$0xff]   ;;  %v3089_v22 = vld [vmem:[#allocation9 + $0x58] sm:$0xff]   ;;  %v3099_v7 = vld [vmem:[#allocation9 + $0x70] sm:$0xff]  }
 0x1b4   : > { %1427 = vmatmul.mubr.bf16.vlgmr.msra.gmra.mrb[0].mxu1 %v1213_v15  ;;  %v1223_v60 = vsel %vm681_vm5, %v1215_v24, %v1222_v18  ;;  %v905_v62 = vrot.slane %v904_v50, 4  ;;  %2855 = vmatpush3.bf16.msra.mxu0 %v3088_v17  ;;  %v921_v56 = vshll.u32 %v793_v39, 16  ;;  %v933_v2 = vrot.slane %v932_v48, 4  ;;  %v3087_v48 = vld [vmem:[#allocation9 + $0x10] sm:$0xff]   ;;  %v3108_v43 = vld [vmem:[#allocation9 + $0x208] sm:$0xff]   ;;  %v3106_v15 = vld [vmem:[#allocation9 + $0x1c0] sm:$0xff]  }
 0x1b5   : > { %2685 = vmatpush3.bf16.msra.mxu1 %v3080_v12  ;;  %1434 = vmatprep.mubr.bf16.mxu1 %v1223_v60  ;;  %v917_v47 = vrot.slane %v915_v28, 5  ;;  %v937_v36 = vrot.slane %v935_v38, 5  ;;  %v1220_v9 = vrot.slane %v3849_v44, 4  ;;  %v1226_v25 = vrot.slane %v3866_v0, 4  ;;  %v3105_v12 = vld [vmem:[#allocation9 + $0x200] sm:$0xff]   ;;  %v3109_v60 = vld [vmem:[#allocation9 + $0x1c8] sm:$0xff]  }
 0x1b6   : > { %2686 = vmatprep.subr.bf16.mxu1 %v3082_v46  ;;  %v910_v4 = vsel %vm3787_vm12, %v905_v62, %v909_v53  ;;  %2856 = vmatprep.subr.bf16.mxu0 %v3091_v58  ;;  %v923_v55 = vrot.slane %v921_v56, 5  ;;  %v1232_v39 = vrot.slane %v1144_v21, 4  ;;  %v3101_v46 = vld [vmem:[#allocation9 + $0x30] sm:$0xff]   ;;  %v3107_v28 = vld [vmem:[#allocation9 + $0x180] sm:$0xff]   ;;  %v3120_v56 = vld [vmem:[#allocation9 + $0x228] sm:$0xff]  }
 0x1b7   : > { %v1146_v49 = vld [vmem:[#allocation3 + $0x70] sm:$0xf]  ;;  %v3906_v11 = vcombine.low %v896_v61, %v910_v4  ;;  %v918_v42 = vor.u32 %v917_v47, %v914_v34  ;;  %v938_v14 = vsel %vm3787_vm12, %v933_v2, %v937_v36  ;;  %v1221_v24 = vsel %vm681_vm5, %v1212_v33, %v1220_v9  ;;  %v3097_v33 = vld [vmem:[#allocation9 + $0x28] sm:$0xff]   ;;  %v3111_v53 = vld [vmem:[#allocation9 + $0x210] sm:$0xff]  }
 0x1b8   : > { %v1236_v20 = vrot.slane %v1146_v49, 4  ;;  %2857 = vmatpush3.bf16.msra.mxu0 %v3091_v58  ;;  %v1227_v27 = vsel %vm681_vm5, %v1220_v9, %v1226_v25  ;;  %v1233_v50 = vsel %vm681_vm5, %v1226_v25, %v1232_v39  ;;  %v3104_v58 = vld [vmem:[#allocation9 + $0x38] sm:$0xff]   ;;  %v3117_v61 = vld [vmem:[#allocation9 + $0x220] sm:$0xff]   ;;  %v3112_v62 = vld [vmem:[#allocation9 + $0x1d0] sm:$0xff]  }
 0x1b9   : > { %2687 = vmatpush3.bf16.msra.mxu1 %v3083_v29  ;;  %v1228_v13 = vrot.slane %v3906_v11, 4  ;;  %v919_v38 = vrot.slane %v918_v42, 4  ;;  %2858 = vmatprep.subr.bf16.mxu0 %v3095_v63  ;;  %v3114_v34 = vld [vmem:[#allocation9 + $0x218] sm:$0xff]   ;;  %v3113_v29 = vld [vmem:[#allocation9 + $0x190] sm:$0xff]   ;;  %v3118_v2 = vld [vmem:[#allocation9 + $0x1e0] sm:$0xff]  }
 0x1ba   : > { %v1237_v17 = vsel %vm681_vm5, %v1230_v8, %v1236_v20  ;;  %2688 = vmatprep.subr.bf16.mxu1 %v3085_v3  ;;  %v3092_v8 = vld [vmem:[#allocation9 + $0x60] sm:$0xff]   ;;  %v3115_v47 = vld [vmem:[#allocation9 + $0x1d8] sm:$0xff]   ;;  %v3121_v3 = vld [vmem:[#allocation9 + $0x1e8] sm:$0xff]  }
 0x1bb   : > { %2845 = vmatmul.mubr.bf16.gmra.mrb[12].mxu0 %v1237_v17  ;;  %v924_v41 = vsel %vm3787_vm12, %v919_v38, %v923_v55  ;;  %v1229_v19 = vsel %vm681_vm5, %v1222_v18, %v1228_v13  ;;  %v3103_v18 = vld [vmem:[#allocation9 + $0x78] sm:$0xff]   ;;  %v3122_v4 = vld [vmem:[#allocation9 + $0x1a8] sm:$0xff]   ;;  %v3124_v49 = vld [vmem:[#allocation9 + $0x1f0] sm:$0xff]  }
 0x1bc   : > { %1435 = vmatmul.mubr.bf16.gmra.mrb[4].mxu1 %v1221_v24  ;;  %2864 = vmatprep.mubr.bf16.mxu0 %v3791_v40  ;;  %v3919_v51 = vcombine.low %v924_v41, %v938_v14  ;;  %v3096_v40 = vld [vmem:[#allocation9 + $0x68] sm:$0xff]   ;;  %v3126_v36 = vld [vmem:[#allocation9 + $0x238] sm:$0xff]   ;;  %v3125_v9 = vld [vmem:[#allocation9 + $0x1b0] sm:$0xff]  }
 0x1bd   : > { %2689 = vmatpush3.bf16.msra.mxu1 %v3087_v48  ;;  %1442 = vmatprep.mubr.bf16.mxu1 %v1229_v19  ;;  %v3127_v42 = vld [vmem:[#allocation9 + $0x1f8] sm:$0xff]  }
 0x1be   : > { %2690 = vmatprep.subr.bf16.mxu1 %v3089_v22  ;;  %963 = vst [vmem:[#allocation3 + $0x68] sm:$0xff] %v3919_v51  ;;  %2859 = vmatpush3.bf16.msra.mxu0 %v3095_v63  ;;  %v3119_v63 = vld [vmem:[#allocation9 + $0x1a0] sm:$0xff]   ;;  %v3128_v55 = vld [vmem:[#allocation9 + $0x1b8] sm:$0xff]  }
 0x1bf   : > { %2860 = vmatprep.subr.bf16.mxu0 %v3098_v37 }
 0x1c1   : > { %2691 = vmatpush3.bf16.msra.mxu1 %v3090_v52 }
 0x1c2   : > { %2692 = vmatprep.subr.bf16.mxu1 %v3092_v8  ;;  %2861 = vmatpush3.bf16.msra.mxu0 %v3098_v37 }
 0x1c3   : > { %2862 = vmatprep.subr.bf16.mxu0 %v3102_v10 }
 0x1c4   : > { %1443 = vmatmul.mubr.bf16.gmra.mrb[8].mxu1 %v1227_v27 }
 0x1c5   : > { %2693 = vmatpush3.bf16.msra.mxu1 %v3094_v26  ;;  %v1145_v32 = vld [vmem:[#allocation3 + $0x68] sm:$0xf] }
 0x1c6   : > { %v1234_v5 = vrot.slane %v1145_v32, 4  ;;  %2694 = vmatprep.subr.bf16.mxu1 %v3096_v40  ;;  %2863 = vmatpush3.bf16.msra.mxu0 %v3102_v10 }
 0x1c7   : > { %2872 = vmatprep.subr.bf16.mxu0 %v3105_v12 }
 0x1c8   : > { %v1235_v54 = vsel %vm681_vm5, %v1228_v13, %v1234_v5 }
 0x1c9   : > { %1450 = vmatprep.mubr.bf16.mxu1 %v1235_v54  ;;  %2695 = vmatpush3.bf16.msra.mxu1 %v3097_v33 }
 0x1ca   : > { %2696 = vmatprep.subr.bf16.mxu1 %v3099_v7  ;;  %2865 = vmatmul.mubr.bf16.vlgmr.msra.gmra.mrb[8].mxu0 %v3821_v30 }
 0x1cb   : > { %2868 = vmatprep.mubr.bf16.mxu0 %v3832_v35  ;;  %2873 = vmatpush3.bf16.msra.mxu0 %v3105_v12 }
 0x1cc   : > { %1451 = vmatmul.mubr.bf16.gmra.mrb[12].mxu1 %v1233_v50  ;;  %2874 = vmatprep.subr.bf16.mxu0 %v3108_v43 }
 0x1cd   : > { %2697 = vmatpush3.bf16.msra.mxu1 %v3101_v46  ;;  %1700 = vmatprep.mubr.bf16.mxu1 %v3844_v57  ;;  %v3110_v57 = vld [vmem:[#allocation9 + $0x188] sm:$0xff]  }
 0x1ce   : > { %2698 = vmatprep.subr.bf16.mxu1 %v3103_v18 }
 0x1cf   : > { %2875 = vmatpush3.bf16.msra.mxu0 %v3108_v43 }
 0x1d0   : > { %2876 = vmatprep.subr.bf16.mxu0 %v3111_v53 }
 0x1d1   : > { %2699 = vmatpush3.bf16.msra.mxu1 %v3104_v58 }
 0x1d2   : > { %2736 = vmatprep.subr.bf16.mxu1 %v3106_v15  ;;  %2869 = vmatmul.mubr.bf16.gmra.mrb[12].mxu0 %v3864_v23 }
 0x1d3   : > { %2877 = vmatpush3.bf16.msra.mxu0 %v3111_v53  ;;  %2888 = vmatprep.mubr.bf16.mxu0 %v3821_v30  ;;  %v3116_v30 = vld [vmem:[#allocation9 + $0x198] sm:$0xff]  }
 0x1d4   : > { %1701 = vmatmul.mubr.bf16.vlgmr.msra.gmra.mrb[16].mxu1 %v3793_v6  ;;  %2878 = vmatprep.subr.bf16.mxu0 %v3114_v34  ;;  %v3123_v6 = vld [vmem:[#allocation9 + $0x230] sm:$0xff]  }
 0x1d5   : > { %2737 = vmatpush3.bf16.msra.mxu1 %v3107_v28  ;;  %1708 = vmatprep.mubr.bf16.mxu1 %v3857_v59 }
 0x1d6   : > { %2738 = vmatprep.subr.bf16.mxu1 %v3109_v60 }
 0x1d7   : > { %2879 = vmatpush3.bf16.msra.mxu0 %v3114_v34 }
 0x1d8   : > { %2880 = vmatprep.subr.bf16.mxu0 %v3117_v61 }
 0x1d9   : > { %2739 = vmatpush3.bf16.msra.mxu1 %v3110_v57 }
 0x1da   : > { %2740 = vmatprep.subr.bf16.mxu1 %v3112_v62 }
 0x1db   : > { %2881 = vmatpush3.bf16.msra.mxu0 %v3117_v61 }
 0x1dc   : > { %1709 = vmatmul.mubr.bf16.gmra.mrb[20].mxu1 %v3817_v1  ;;  %2882 = vmatprep.subr.bf16.mxu0 %v3120_v56 }
 0x1dd   : > { %2741 = vmatpush3.bf16.msra.mxu1 %v3113_v29  ;;  %1716 = vmatprep.mubr.bf16.mxu1 %v3889_v31 }
 0x1de   : > { %2742 = vmatprep.subr.bf16.mxu1 %v3115_v47 }
 0x1df   : > { %2883 = vmatpush3.bf16.msra.mxu0 %v3120_v56 }
 0x1e0   : > { %2884 = vmatprep.subr.bf16.mxu0 %v3123_v6 }
 0x1e1   : > { %2743 = vmatpush3.bf16.msra.mxu1 %v3116_v30 }
 0x1e2   : > { %2744 = vmatprep.subr.bf16.mxu1 %v3118_v2 }
 0x1e3   : > { %2885 = vmatpush3.bf16.msra.mxu0 %v3123_v6 }
 0x1e4   : > { %1717 = vmatmul.mubr.bf16.gmra.mrb[24].mxu1 %v3849_v44  ;;  %2886 = vmatprep.subr.bf16.mxu0 %v3126_v36 }
 0x1e5   : > { %2745 = vmatpush3.bf16.msra.mxu1 %v3119_v63  ;;  %1724 = vmatprep.mubr.bf16.mxu1 %v3906_v11 }
 0x1e6   : > { %2746 = vmatprep.subr.bf16.mxu1 %v3121_v3 }
 0x1e7   : > { %2887 = vmatpush3.bf16.msra.mxu0 %v3126_v36 }
 0x1e9   : > { %2747 = vmatpush3.bf16.msra.mxu1 %v3122_v4 }
 0x1ea   : > { %2748 = vmatprep.subr.bf16.mxu1 %v3124_v49  ;;  %2889 = vmatmul.mubr.bf16.vlgmr.msra.gmra.mrb[8].mxu0 %v3832_v35  ;;  %v3129_v35 = vld [vmem:[#allocation10] sm:$0xff]  }
 0x1eb   : > { %2892 = vmatprep.mubr.bf16.mxu0 %v3864_v23  ;;  %v3131_v23 = vld [vmem:[#allocation10 + $0x10] sm:$0xff]  }
 0x1ec   : > { %1725 = vmatmul.mubr.bf16.gmra.mrb[28].mxu1 %v3866_v0 }
 0x1ed   : > { %2749 = vmatpush3.bf16.msra.mxu1 %v3125_v9  ;;  %2026 = vmatprep.mubr.bf16.mxu1 %v3857_v59  ;;  %v3130_v59 = vld [vmem:[#allocation10 + $0x8] sm:$0xff]  }
 0x1ee   : > { %2750 = vmatprep.subr.bf16.mxu1 %v3127_v42 }
 0x1f1   : > { %2751 = vmatpush3.bf16.msra.mxu1 %v3128_v55 }
 0x1f2   : > { %2893 = vmatmul.mubr.bf16.gmra.mrb[12].mxu0 %v3882_v16  ;;  %2896 = vmatprep.subr.bf16.mxu1 %v3129_v35  ;;  %v3133_v16 = vld [vmem:[#allocation10 + $0x20] sm:$0xff]  }
 0x1f4   : > { %2027 = vmatmul.mubr.bf16.vlgmr.msra.gmra.mrb[32].mxu1 %v3817_v1  ;;  %v3132_v1 = vld [vmem:[#allocation10 + $0x18] sm:$0xff]  }
 0x1f5   : > { %2034 = vmatprep.mubr.bf16.mxu1 %v3889_v31  ;;  %2897 = vmatpush3.bf16.msra.mxu1 %v3129_v35 }
 0x1f6   : > { %2898 = vmatprep.subr.bf16.mxu1 %v3130_v59 }
 0x1f9   : > { %2899 = vmatpush3.bf16.msra.mxu1 %v3130_v59 }
 0x1fa   : > { %2900 = vmatprep.subr.bf16.mxu1 %v3131_v23 }
 0x1fc   : > { %2035 = vmatmul.mubr.bf16.gmra.mrb[36].mxu1 %v3849_v44  ;;  %v3134_v44 = vld [vmem:[#allocation10 + $0x28] sm:$0xff]  }
 0x1fd   : > { %2042 = vmatprep.mubr.bf16.mxu1 %v3906_v11  ;;  %2901 = vmatpush3.bf16.msra.mxu1 %v3131_v23 }
 0x1fe   : > { %2902 = vmatprep.subr.bf16.mxu1 %v3132_v1 }
 0x201   : > { %2903 = vmatpush3.bf16.msra.mxu1 %v3132_v1 }
 0x202   : > { %2904 = vmatprep.subr.bf16.mxu1 %v3133_v16 }
 0x204   : > { %2043 = vmatmul.mubr.bf16.gmra.mrb[40].mxu1 %v3866_v0  ;;  %v3135_v0 = vld [vmem:[#allocation10 + $0x30] sm:$0xff]  }
 0x205   : > { %2050 = vmatprep.mubr.bf16.mxu1 %v3919_v51  ;;  %2905 = vmatpush3.bf16.msra.mxu1 %v3133_v16 }
 0x206   : > { %2906 = vmatprep.subr.bf16.mxu1 %v3134_v44 }
 0x209   : > { %2907 = vmatpush3.bf16.msra.mxu1 %v3134_v44 }
 0x20a   : > { %2908 = vmatprep.subr.bf16.mxu1 %v3135_v0 }
 0x20c   : > { %2051 = vmatmul.mubr.bf16.gmra.mrb[44].mxu1 %v3873_v45  ;;  %v3136_v45 = vld [vmem:[#allocation10 + $0x38] sm:$0xff]  }
 0x20d   : > { %2909 = vmatpush3.bf16.msra.mxu1 %v3135_v0 }
 0x20e   : > { %2910 = vmatprep.subr.bf16.mxu1 %v3136_v45 }
 0x211   : > { %2911 = vmatpush3.bf16.msra.mxu1 %v3136_v45 }
 0x287   : > { %v2648_v31 = vpop.f32.mrb[0].mxu1 }
 0x288   : > { %v2649_v11 = vpop.f32.mrb[1].mxu1 }
 0x289   : > { %v2650_v20 = vadd.f32 %v2649_v11, %v2648_v31  ;;  %v2651_v48 = vpop.f32.mrb[2].mxu1 }
 0x28a   : > { %v2652_v13 = vpop.f32.mrb[3].mxu1 }
 0x28b   : > { %v2653_v38 = vadd.f32 %v2652_v13, %v2651_v48 }
 0x28f   : > { %v2654_v14 = vpop.f32.mrb[4].mxu1 }
 0x290   : > { %v2655_v17 = vpop.f32.mrb[5].mxu1 }
 0x291   : > { %v2656_v22 = vadd.f32 %v2655_v17, %v2654_v14  ;;  %v2657_v24 = vpop.f32.mrb[6].mxu1  ;;  %v2572_v17 = vld [vmem:[%s4018_s4] ss:$0 sm:$0xff] }
 0x292   : > { %v2658_v41 = vpop.f32.mrb[7].mxu1 }
 0x293   : > { %v2659_v37 = vadd.f32 %v2658_v41, %v2657_v24 }
 0x297   : > { %v2660_v19 = vpop.f32.mrb[8].mxu1 }
 0x298   : > { %v2661_v51 = vpop.f32.mrb[9].mxu1 }
 0x299   : > { %v2662_v52 = vadd.f32 %v2661_v51, %v2660_v19  ;;  %v2663_v8 = vpop.f32.mrb[10].mxu1 }
 0x29a   : > { %v2664_v25 = vpop.f32.mrb[11].mxu1 }
 0x29b   : > { %v2665_v10 = vadd.f32 %v2664_v25, %v2663_v8 }
 0x29f   : > { %v2666_v26 = vpop.f32.mrb[12].mxu1 }
 0x2a0   : > { %v2667_v40 = vpop.f32.mrb[13].mxu1 }
 0x2a1   : > { %v2668_v27 = vadd.f32 %v2667_v40, %v2666_v26  ;;  %v2669_v12 = vpop.f32.mrb[14].mxu1 }
 0x2a2   : > { %v2670_v21 = vpop.f32.mrb[15].mxu1 }
 0x2a3   : > { %v2671_v32 = vadd.f32 %v2670_v21, %v2669_v12 }
 0x2a7   : > { %v2700_v33 = vpop.f32.mrb[16].mxu1 }
 0x2a8   : > { %v2701_v5 = vpop.f32.mrb[17].mxu1 }
 0x2a9   : > { %v2702_v7 = vadd.f32 %v2701_v5, %v2700_v33  ;;  %v2703_v39 = vpop.f32.mrb[18].mxu1 }
 0x2aa   : > { %v2704_v54 = vpop.f32.mrb[19].mxu1 }
 0x2ab   : > { %v2923_v43 = vadd.f32 %v2702_v7, %v2650_v20  ;;  %v2705_v46 = vadd.f32 %v2704_v54, %v2703_v39 }
 0x2ad   : > { %v2929_v18 = vadd.f32 %v2705_v46, %v2653_v38 }
 0x2af   : > { %v2706_v50 = vpop.f32.mrb[20].mxu1 }
 0x2b0   : > { %v2707_v53 = vpop.f32.mrb[21].mxu1 }
 0x2b1   : > { %v2708_v58 = vadd.f32 %v2707_v53, %v2706_v50  ;;  %v2709_v15 = vpop.f32.mrb[22].mxu1 }
 0x2b2   : > { %v2710_v34 = vpop.f32.mrb[23].mxu1 }
 0x2b3   : > { %v2920_v28 = vadd.f32 %v2708_v58, %v2656_v22  ;;  %v2711_v60 = vadd.f32 %v2710_v34, %v2709_v15 }
 0x2b5   : > { %v2926_v61 = vadd.f32 %v2711_v60, %v2659_v37 }
 0x2b7   : > { %v2712_v57 = vpop.f32.mrb[24].mxu1 }
 0x2b8   : > { %v2713_v62 = vpop.f32.mrb[25].mxu1 }
 0x2b9   : > { %v2714_v56 = vadd.f32 %v2713_v62, %v2712_v57  ;;  %v2715_v29 = vpop.f32.mrb[26].mxu1 }
 0x2ba   : > { %v2716_v47 = vpop.f32.mrb[27].mxu1 }
 0x2bb   : > { %v2935_v6 = vadd.f32 %v2714_v56, %v2662_v52  ;;  %v2717_v30 = vadd.f32 %v2716_v47, %v2715_v29 }
 0x2bd   : > { %v2941_v2 = vadd.f32 %v2717_v30, %v2665_v10  ;;  %v2890_v36 = vpop.f32.mrb[8].mxu0 }
 0x2be   : > { %v2093_v63 = vpop.f32.mrb[9].mxu0 }
 0x2bf   : > { %v2718_v3 = vpop.f32.mrb[28].mxu1  ;;  %v2891_v4 = vpop.f32.mrb[10].mxu0 }
 0x2c0   : > { %v2719_v49 = vpop.f32.mrb[29].mxu1  ;;  %v2096_v9 = vpop.f32.mrb[11].mxu0 }
 0x2c1   : > { %v2720_v42 = vadd.f32 %v2719_v49, %v2718_v3  ;;  %v2721_v55 = vpop.f32.mrb[30].mxu1 }
 0x2c2   : > { %v2722_v35 = vpop.f32.mrb[31].mxu1 }
 0x2c3   : > { %v2932_v59 = vadd.f32 %v2720_v42, %v2668_v27  ;;  %v2723_v23 = vadd.f32 %v2722_v35, %v2721_v55 }
 0x2c5   : > { %v2938_v1 = vadd.f32 %v2723_v23, %v2671_v32  ;;  %v2894_v16 = vpop.f32.mrb[12].mxu0 }
 0x2c6   : > { %v2109_v44 = vpop.f32.mrb[13].mxu0 }
 0x2c7   : > { %v2752_v0 = vpop.f32.mrb[32].mxu1  ;;  %v2895_v45 = vpop.f32.mrb[14].mxu0 }
 0x2c8   : > { %v2753_v31 = vpop.f32.mrb[33].mxu1  ;;  %v2112_v11 = vpop.f32.mrb[15].mxu0 }
 0x2c9   : > { %v2754_v20 = vadd.f32 %v2753_v31, %v2752_v0  ;;  %v2755_v48 = vpop.f32.mrb[34].mxu1 }
 0x2ca   : > { %v2756_v13 = vpop.f32.mrb[35].mxu1 }
 0x2cb   : > { %v2924_v38 = vadd.f32 %v2923_v43, %v2754_v20  ;;  %v2757_v14 = vadd.f32 %v2756_v13, %v2755_v48  ;;  %v3137_v48 = vld [vmem:[%s3593_s20 + $0x10] sm:$0xff] }
 0x2cd   : > { %v2925_v22 = vadd.f32 %v2924_v38, %v2093_v63  ;;  %v2930_v24 = vadd.f32 %v2929_v18, %v2757_v14 }
 0x2cf   : > { %v2931_v41 = vadd.f32 %v2930_v24, %v2096_v9  ;;  %v2758_v37 = vpop.f32.mrb[36].mxu1  ;;  %v2139_v19 = vadd.f32 %v2925_v22, %v2572_v17 }
 0x2d0   : > { %v2759_v51 = vpop.f32.mrb[37].mxu1 }
 0x2d1   : > { %v2760_v52 = vadd.f32 %v2759_v51, %v2758_v37  ;;  %v2761_v8 = vpop.f32.mrb[38].mxu1  ;;  %v2140_v25 = vadd.f32 %v2931_v41, %v2572_v17  ;;  %v2147_v27 = vmax.f32 %v2139_v19, 0.0  ;;  %v3139_v41 = vld [vmem:[%s3593_s20 + $0x18] sm:$0xff]  ;;  %v3140_v19 = vld [vmem:[%s3593_s20 + $0x8] sm:$0xff] }
 0x2d2   : > { %v2762_v10 = vpop.f32.mrb[39].mxu1 }
 0x2d3   : > { %v2921_v26 = vadd.f32 %v2920_v28, %v2760_v52  ;;  %v2763_v40 = vadd.f32 %v2762_v10, %v2761_v8  ;;  %v2148_v12 = vmax.f32 %v2140_v25, 0.0 }
 0x2d5   : > { %v2922_v21 = vadd.f32 %v2921_v26, %v2890_v36  ;;  %v2927_v32 = vadd.f32 %v2926_v61, %v2763_v40  ;;  %v2155_v33 = vpack.c.bf16 %v2148_v12, %v2147_v27 }
 0x2d7   : > { %v2141_v5 = vadd.f32 %v2922_v21, %v2572_v17  ;;  %v2928_v7 = vadd.f32 %v2927_v32, %v2891_v4  ;;  %v2764_v39 = vpop.f32.mrb[40].mxu1  ;;  %2912 = vmatprep.mubr.bf16.mxu1 %v2155_v33 }
 0x2d8   : > { %v2765_v54 = vpop.f32.mrb[41].mxu1 }
 0x2d9   : > { %v2142_v43 = vadd.f32 %v2928_v7, %v2572_v17  ;;  %v2766_v46 = vadd.f32 %v2765_v54, %v2764_v39  ;;  %v2767_v18 = vpop.f32.mrb[42].mxu1  ;;  %v2149_v53 = vmax.f32 %v2141_v5, 0.0  ;;  %v3141_v5 = vld [vmem:[%s3593_s20 + $0x30] sm:$0xff] }
 0x2da   : > { %v2768_v50 = vpop.f32.mrb[43].mxu1 }
 0x2db   : > { %v2150_v58 = vmax.f32 %v2142_v43, 0.0  ;;  %v2936_v15 = vadd.f32 %v2935_v6, %v2766_v46  ;;  %v2769_v34 = vadd.f32 %v2768_v50, %v2767_v18  ;;  %v3142_v43 = vld [vmem:[%s3593_s20 + $0x20] sm:$0xff]  ;;  %v3143_v50 = vld [vmem:[%s3593_s20 + $0x38] sm:$0xff] }
 0x2dd   : > { %v2156_v28 = vpack.c.bf16 %v2150_v58, %v2149_v53  ;;  %v2937_v60 = vadd.f32 %v2936_v15, %v2109_v44  ;;  %v2942_v57 = vadd.f32 %v2941_v2, %v2769_v34  ;;  %v3144_v58 = vld [vmem:[%s3593_s20 + $0x28] sm:$0xff] }
 0x2df   : > { %v2943_v62 = vadd.f32 %v2942_v57, %v2112_v11  ;;  %v2770_v56 = vpop.f32.mrb[44].mxu1  ;;  %2913 = vmatmul.mubr.bf16.vlgmr.msra.gmra.mrb[48].mxu1 %v2156_v28  ;;  %v2143_v61 = vadd.f32 %v2937_v60, %v2572_v17 }
 0x2e0   : > { %v2771_v29 = vpop.f32.mrb[45].mxu1 }
 0x2e1   : > { %v2772_v47 = vadd.f32 %v2771_v29, %v2770_v56  ;;  %v2773_v30 = vpop.f32.mrb[46].mxu1  ;;  %v2144_v36 = vadd.f32 %v2943_v62, %v2572_v17  ;;  %v2151_v49 = vmax.f32 %v2143_v61, 0.0 }
 0x2e2   : > { %v2774_v63 = vpop.f32.mrb[47].mxu1 }
 0x2e3   : > { %v2933_v3 = vadd.f32 %v2932_v59, %v2772_v47  ;;  %v2775_v4 = vadd.f32 %v2774_v63, %v2773_v30  ;;  %v2152_v9 = vmax.f32 %v2144_v36, 0.0  ;;  %v2573_v59 = vld [vmem:[%s4020_s6] ss:$0 sm:$0xff] }
 0x2e5   : > { %v2934_v42 = vadd.f32 %v2933_v3, %v2894_v16  ;;  %v2939_v55 = vadd.f32 %v2938_v1, %v2775_v4  ;;  %v2157_v6 = vpack.c.bf16 %v2152_v9, %v2151_v49 }
 0x2e7   : > { %v2940_v35 = vadd.f32 %v2939_v55, %v2895_v45  ;;  %2916 = vmatprep.mubr.bf16.mxu1 %v2157_v6  ;;  %v2145_v2 = vadd.f32 %v2934_v42, %v2572_v17 }
 0x2e9   : > { %v2146_v23 = vadd.f32 %v2940_v35, %v2572_v17  ;;  %v2153_v44 = vmax.f32 %v2145_v2, 0.0  ;;  %v3138_v17 = vld [vmem:[%s3593_s20] sm:$0xff]  ;;  %s2328_s20 = scalar_lea.sflag [#allocation6], %s3589_s21 }
 0x2eb   : > { %v2154_v0 = vmax.f32 %v2146_v23, 0.0 }
 0x2ed   : > { %v2158_v31 = vpack.c.bf16 %v2154_v0, %v2153_v44 }
 0x2ef   : > { %2917 = vmatmul.mubr.bf16.gmra.mrb[52].mxu1 %v2158_v31 }
 0x3b2   : > { %v2914_v16 = vpop.f32.mrb[48].mxu1 }
 0x3b3   : > { %v2273_v1 = vadd.f32 %v2914_v16, %v2573_v59  ;;  %v2264_v11 = vpop.f32.mrb[49].mxu1 }
 0x3b4   : > { %v2265_v20 = vadd.f32 %v2573_v59, %v2264_v11  ;;  %v2915_v45 = vpop.f32.mrb[50].mxu1 }
 0x3b5   : > { %v2297_v13 = vadd.f32 %v3137_v48, %v2273_v1  ;;  %v2276_v38 = vadd.f32 %v2915_v45, %v2573_v59  ;;  %v2267_v14 = vpop.f32.mrb[51].mxu1 }
 0x3b6   : > { %v2295_v22 = vadd.f32 %v3138_v17, %v2265_v20  ;;  %v2268_v24 = vadd.f32 %v2573_v59, %v2267_v14 }
 0x3b7   : > { %v2298_v37 = vadd.f32 %v3139_v41, %v2276_v38  ;;  %v2305_v52 = vmax.f32 %v2297_v13, 0.0 }
 0x3b8   : > { %v2296_v51 = vadd.f32 %v3140_v19, %v2268_v24  ;;  %v2303_v25 = vmax.f32 %v2295_v22, 0.0 }
 0x3b9   : > { %v2306_v8 = vmax.f32 %v2298_v37, 0.0 }
 0x3ba   : > { %v2304_v10 = vmax.f32 %v2296_v51, 0.0 }
 0x3bb   : > { %v2605_v26 = vpack.c.bf16 %v2306_v8, %v2305_v52 }
 0x3bc   : > { %v2600_v40 = vpack.c.bf16 %v2304_v10, %v2303_v25 }
 0x3bd   : > { %2617 = vst [vmem:[%s340_s29 + $0x8] sm:$0xff] %v2605_v26  }
 0x3be   : > { %2601 = vst [vmem:[%s340_s29] sm:$0xff] %v2600_v40  }
 0x3c2   : > { %v2918_v27 = vpop.f32.mrb[52].mxu1 }
 0x3c3   : > { %v2289_v12 = vadd.f32 %v2918_v27, %v2573_v59  ;;  %v2280_v21 = vpop.f32.mrb[53].mxu1 }
 0x3c4   : > { %v2281_v32 = vadd.f32 %v2573_v59, %v2280_v21  ;;  %v2919_v33 = vpop.f32.mrb[54].mxu1 }
 0x3c5   : > { %v2301_v7 = vadd.f32 %v3141_v5, %v2289_v12  ;;  %v2292_v39 = vadd.f32 %v2919_v33, %v2573_v59  ;;  %v2283_v54 = vpop.f32.mrb[55].mxu1 }
 0x3c6   : > { %v2299_v46 = vadd.f32 %v3142_v43, %v2281_v32  ;;  %v2284_v18 = vadd.f32 %v2573_v59, %v2283_v54 }
 0x3c7   : > { %v2302_v53 = vadd.f32 %v3143_v50, %v2292_v39  ;;  %v2309_v34 = vmax.f32 %v2301_v7, 0.0 }
 0x3c8   : > { %v2300_v15 = vadd.f32 %v3144_v58, %v2284_v18  ;;  %v2307_v60 = vmax.f32 %v2299_v46, 0.0 }
 0x3c9   : > { %v2310_v28 = vmax.f32 %v2302_v53, 0.0 }
 0x3ca   : > { %v2308_v57 = vmax.f32 %v2300_v15, 0.0 }
 0x3cb   : > { %v2615_v62 = vpack.c.bf16 %v2310_v28, %v2309_v34 }
 0x3cc   : > { %v2610_v56 = vpack.c.bf16 %v2308_v57, %v2307_v60 }
 0x3cd   : > { %2619 = vst [vmem:[%s340_s29 + $0x18] sm:$0xff] %v2615_v62  }
 0x3ce   : > { %2618 = vst [vmem:[%s340_s29 + $0x10] sm:$0xff] %v2610_v56  }
 0x3cf   : > { %3272 = shalt.err (!%p3269_p4)
}
 0x3d0   : > { %s3273_s10 = scalar_lea.hbm %s3970_s13, 512  ;;  %s3277_s15 = scalar_lea.hbm %s4021_s7, 1024 }
 0x3d1   : > { %p3274_p9 = scmp.ne.s32.totalorder %s3970_s13, %s3273_s10  ;;  %p3278_p8 = scmp.lt.u32.totalorder %s3970_s13, %s4021_s7 }
 0x3d2   : > { %p3279_p13 = scmp.lt.u32.totalorder %s3277_s15, %s3273_s10  ;;  %p3281_p10 = scmp.lt.u32.totalorder %s3273_s10, %s3970_s13 }
 0x3d3   : > { %p3275_p0 = pnand %p3274_p9, %p3541_p5 }
 0x3d4   : > { %p3280_p6 = por %p3279_p13, %p3278_p8 }
 0x3d5   : > { %p3276_p11 = pneg %p3275_p0 }
 0x3d6   : > { %p3282_p3 = por %p3281_p10, %p3280_p6 }
 0x3d8   : > { %p3283_p7 = pnand %p3282_p3, %p3276_p11 }
 0x3da   : > { %3286 = shalt.err (!%p3283_p7)
}
 0x3db   : > { %s3345_s17 = smov 64   ;;  %s3346_s16 = smov 4  }
 0x3dc   : > { %2974 = dma.vmem_to_hbm [thread:$0]  (%p3541_p5), %s3965_s12, 512, %s3970_s13, %s2328_s20, %s3345_s17, %s3345_s17, %s3346_s16  }
 0x3dd PF: > { %s4051_s28 = sld [smem:[#allocation17_spill]]  ;;  %s2356_s30 = sand.u32 1, %s3321_s24  }
 0x3de   : > { %p4053_p1 = scmp.ge.s32.totalorder %s3333_s27, 2  ;;  %s2357_s9 = scalar_lea.sflag [#allocation6], %s2356_s30 }
 0x3e3   : > { %p4052_p12 = scmp.ne.s32.totalorder %s4051_s28, 0 }
 0x3e5   : > { %p2991_p2 = pnand %p4053_p1, %p4052_p12 }
 0x3e7   : > { %3316 = dma.done.wait (!%p2991_p2), %s2357_s9, 512  }
 0x3e8   : > { %3318 = vsyncadd (!%p2991_p2), %s2357_s9, 4294966784  ;;  %p22_p4 = scmp.ge.s32.totalorder %s3527_s22, 4   ;;  %s4054_s24 = smov %s3325_s25 }
 0x3e9   : > { %s4055_s25 = smov %s3329_s26  ;;  %s4056_s26 = smov %s3537_s18 }
 0x3ea   : > { %s4057_s27 = smov %s3527_s22  ;;  %24 = sbr.rel (!%p22_p4) target bundleno = 7 (0x7), region = 109 }
 0x3f1   :  { %2362 = vsyncpa [#allocation5], 1 }
 0x3f2   :  { %2364 = vsyncpa [#allocation5 + $0x1], 1 }
 0x3f3   :  { %2365 = vsyncpa [#allocation8], 1 }
 0x3f4   :  { %2366 = vsyncpa [#allocation11], 1 }
 0x3f5   :  { %2367 = vsyncpa [#allocation6], 1 }
 0x3f6   :  { %2369 = vsyncpa [#allocation6 + $0x1], 1 }

</bundles_post_ra>
